<compile_context>
chip_gen: v7x
topology: tpu7x:2x2x1
jax: 0.10.0
libtpu: 0.0.40
codegen_flags: <defaults>
</compile_context>

<pallas_src>
import jax
import jax.numpy as jnp
from jax.experimental import pallas as pl
from jax.experimental.pallas import tpu as pltpu

LAYER_NORM_EPS = 1e-6


def _round_up(x, m):
    return ((x + m - 1) // m) * m


def _vmem_capacity_bytes():
    try:
        info = pltpu.get_tpu_info()
        cap = getattr(info, "vmem_capacity_bytes", None)
        if cap:
            return int(cap)
    except Exception:
        pass
    return 128 << 20  # v5e / v6e default; v7x reports its 64 MiB via get_tpu_info.


def _t5_ff_kernel_single(x_ref, gamma_ref, wi_ref, wo_ref, o_ref):
    """Whole d_ff resident: norm -> wi -> relu -> wo -> residual in one grid step."""
    x = x_ref[...].astype(jnp.float32)
    var = jnp.mean(x * x, axis=-1, keepdims=True)
    y = x * jax.lax.rsqrt(var + LAYER_NORM_EPS) * gamma_ref[...].astype(jnp.float32)
    y = y.astype(wi_ref.dtype)  # native MXU operand dtype (e.g. bf16)
    h = jnp.dot(y, wi_ref[...], preferred_element_type=jnp.float32)
    h = jnp.maximum(h, 0.0).astype(wo_ref.dtype)
    f = jnp.dot(h, wo_ref[...], preferred_element_type=jnp.float32)
    # Residual add with the *un-normalized* input (pre-norm residual).
    o_ref[...] = (x + f).astype(o_ref.dtype)


def _t5_ff_kernel_multi(x_ref, gamma_ref, wi_ref, wo_ref, o_ref, y_ref, acc_ref):
    """d_ff streamed in slices: grid = (row_tiles, dff_tiles), dff axis is the reduction."""
    k = pl.program_id(1)

    @pl.when(k == 0)
    def _():
        # RMS norm + gamma once per row tile; store in weight dtype for the MXU.
        x = x_ref[...].astype(jnp.float32)
        var = jnp.mean(x * x, axis=-1, keepdims=True)
        y = x * jax.lax.rsqrt(var + LAYER_NORM_EPS) * gamma_ref[...].astype(jnp.float32)
        y_ref[...] = y.astype(y_ref.dtype)
        acc_ref[...] = jnp.zeros_like(acc_ref)

    h = jnp.dot(y_ref[...], wi_ref[...], preferred_element_type=jnp.float32)
    h = jnp.maximum(h, 0.0).astype(wo_ref.dtype)
    acc_ref[...] += jnp.dot(h, wo_ref[...], preferred_element_type=jnp.float32)

    @pl.when(k == pl.num_programs(1) - 1)
    def _():
        o_ref[...] = (x_ref[...].astype(jnp.float32) + acc_ref[...]).astype(o_ref.dtype)


def t5_layer_ff(hidden_states, gamma, wi, wo, *, row_tile=None, dff_tile=None,
                cast_f32_weights_to_bf16=True):
    """hidden_states: [B, S, D]; gamma: [D]; wi: [D, Dff]; wo: [Dff, D]."""
    B, S, D = hidden_states.shape
    D_wi, Dff = wi.shape
    assert D_wi == D and wo.shape == (Dff, D) and gamma.shape[-1] == D

    # bf16 MXU path for f32 checkpoints: ~4x MXU throughput, half the weight HBM/VMEM
    # bytes; accumulation stays f32 inside the kernel.
    if cast_f32_weights_to_bf16 and wi.dtype == jnp.float32:
        wi = wi.astype(jnp.bfloat16)
        wo = wo.astype(jnp.bfloat16)

    rows = B * S
    x2d = hidden_states.reshape(rows, D)
    gamma2d = gamma.reshape(1, D)

    # Pad d_ff up to a lane multiple so wi/wo can be tiled along it. Zero wi columns /
    # zero wo rows contribute exactly zero through relu -> wo, so this is a no-op.
    Dff_p = _round_up(Dff, 128)
    if Dff_p != Dff:
        wi = jnp.pad(wi, ((0, 0), (0, Dff_p - Dff)))
        wo = jnp.pad(wo, ((0, Dff_p - Dff), (0, 0)))

    x_isz = jnp.dtype(x2d.dtype).itemsize
    w_isz = jnp.dtype(wi.dtype).itemsize
    g_isz = jnp.dtype(gamma2d.dtype).itemsize
    out_isz = x_isz

    # Sublane multiple for the row dim of (tm, D) activation tiles: 8 f32 / 16 bf16 / 32 int8.
    sub = 8 * max(1, 4 // x_isz)

    vmem_cap = _vmem_capacity_bytes()
    budget = min(int(0.85 * vmem_cap), vmem_cap - (12 << 20))

    def need_bytes(tm, tk):
        steps = Dff_p // tk
        n = 2 * tm * D * x_isz               # x row tiles (double-buffered)
        n += 2 * tm * D * out_isz            # output row tiles
        n += 2 * D * g_isz                   # gamma
        n += 2 * (D * tk + tk * D) * w_isz   # wi / wo blocks (conservatively x2)
        n += tm * tk * 4 + tm * tk * w_isz   # h intermediate (f32) + cast copy
        if steps > 1:
            n += tm * D * w_isz + tm * D * 4  # y scratch + f32 accumulator
        return n

    def clamp_tm(t):
        return max(sub, _round_up(min(t, rows), sub))

    # ---- tile selection ----
    tm = clamp_tm(row_tile if row_tile is not None else 256)
    tk = None
    if dff_tile is None or dff_tile >= Dff_p:
        # Prefer fully resident weights (constant wi/wo block index -> fetched once).
        if need_bytes(tm, Dff_p) <= budget:
            tk = Dff_p
    if tk is None:
        # Streamed weights: bigger row tile on large-VMEM parts cuts re-stream count,
        # then pick the biggest d_ff slice that fits the budget.
        if row_tile is None:
            tm = clamp_tm(512 if budget >= (96 << 20) else 256)
        cap = dff_tile if dff_tile is not None else Dff_p
        cand_tks = [d * 128 for d in range(Dff_p // 128, 0, -1)
                    if (Dff_p // 128) % d == 0]
        while tk is None:
            for c in cand_tks:
                if c <= max(128, cap) and need_bytes(tm, c) <= budget:
                    tk = c
                    break
            if tk is None:
                if tm > sub:
                    tm = clamp_tm(tm // 2)
                else:
                    tk = 128  # last resort; Dff_p is a multiple of 128
    steps = Dff_p // tk

    # Keep both v7x TensorCores busy on small-batch calls: only when weights are
    # resident (single reduction step), so this never adds weight re-streaming.
    if steps == 1 and rows > sub and (rows + tm - 1) // tm < 2:
        tm = clamp_tm((rows + 1) // 2)

    rows_p = _round_up(rows, tm)
    if rows_p != rows:
        # Zero-padded rows are harmless: rsqrt(eps) * 0 = 0 through the whole FF.
        x2d = jnp.pad(x2d, ((0, rows_p - rows), (0, 0)))

    need = need_bytes(tm, tk)
    vmem_limit = int(min(max(int(1.25 * need) + (8 << 20), 32 << 20), vmem_cap - (2 << 20)))

    if steps == 1:
        grid = (rows_p // tm,)
        in_specs = [
            pl.BlockSpec((tm, D), lambda i: (i, 0)),        # x rows (full D -> lane dense)
            pl.BlockSpec((1, D), lambda i: (0, 0)),         # gamma (grid-constant)
            pl.BlockSpec((D, Dff_p), lambda i: (0, 0)),     # wi (resident, fetched once)
            pl.BlockSpec((Dff_p, D), lambda i: (0, 0)),     # wo (resident, fetched once)
        ]
        out_specs = pl.BlockSpec((tm, D), lambda i: (i, 0))
        scratch_shapes = []
        kernel = _t5_ff_kernel_single
        dims = ("parallel",)
    else:
        grid = (rows_p // tm, steps)
        in_specs = [
            pl.BlockSpec((tm, D), lambda i, k: (i, 0)),
            pl.BlockSpec((1, D), lambda i, k: (0, 0)),
            pl.BlockSpec((D, tk), lambda i, k: (0, k)),     # wi d_ff slice
            pl.BlockSpec((tk, D), lambda i, k: (k, 0)),     # wo d_ff slice
        ]
        out_specs = pl.BlockSpec((tm, D), lambda i, k: (i, 0))
        scratch_shapes = [
            pltpu.VMEM((tm, D), wi.dtype),     # normalized activations y (weight dtype)
            pltpu.VMEM((tm, D), jnp.float32),  # f32 accumulator for wo output
        ]
        kernel = _t5_ff_kernel_multi
        dims = ("parallel", "arbitrary")

    out2d = pl.pallas_call(
        kernel,
        out_shape=jax.ShapeDtypeStruct((rows_p, D), hidden_states.dtype),
        grid_spec=pltpu.PrefetchScalarGridSpec(
            num_scalar_prefetch=0,
            grid=grid,
            in_specs=in_specs,
            out_specs=out_specs,
            scratch_shapes=scratch_shapes,
        ),
        compiler_params=pltpu.CompilerParams(
            dimension_semantics=dims,
            vmem_limit_bytes=vmem_limit,
        ),
    )(x2d, gamma2d, wi, wo)

    if rows_p != rows:
        out2d = out2d[:rows]
    return out2d.reshape(B, S, D)


def reference(hidden_states, gamma, wi, wo):
    # Emulates the kernel's cast points (y and h in weight dtype, f32 accumulation)
    # so the comparison isolates kernel-structure errors from expected dtype rounding.
    x = hidden_states.astype(jnp.float32)
    var = jnp.mean(x * x, axis=-1, keepdims=True)
    y = x * jax.lax.rsqrt(var + LAYER_NORM_EPS) * gamma.astype(jnp.float32)
    y = y.astype(wi.dtype).astype(jnp.float32)
    h = jnp.maximum(
        jnp.dot(y, wi.astype(jnp.float32), precision=jax.lax.Precision.HIGHEST), 0.0
    )
    h = h.astype(wo.dtype).astype(jnp.float32)
    f = jnp.dot(h, wo.astype(jnp.float32), precision=jax.lax.Precision.HIGHEST)
    return (x + f).astype(hidden_states.dtype)


if __name__ == "__main__":
    key = jax.random.PRNGKey(0)
    k_x, k_g, k_wi, k_wo = jax.random.split(key, 4)

    B, S, D, DFF = 2, 256, 128, 1024
    x = jax.random.normal(k_x, (B, S, D), dtype=jnp.float32)
    gamma = 1.0 + 0.02 * jax.random.normal(k_g, (D,), dtype=jnp.float32)
    wi = 0.05 * jax.random.normal(k_wi, (D, DFF), dtype=jnp.float32)
    wo = 0.05 * jax.random.normal(k_wo, (DFF, D), dtype=jnp.float32)

    # 1) f32 checkpoint, default path: wrapper casts weights to bf16, weights resident,
    #    single-reduction-step kernel.
    out = jax.block_until_ready(t5_layer_ff(x, gamma, wi, wo))
    ref = reference(x, gamma, wi.astype(jnp.bfloat16), wo.astype(jnp.bfloat16))
    assert out.shape == (B, S, D)
    err = float(jnp.max(jnp.abs(out - ref)))
    assert jnp.allclose(out, ref, atol=2e-2, rtol=2e-2), f"resident path mismatch (max abs err {err})"

    # 2) bf16 checkpoint with forced weight streaming: exercises the multi-step
    #    accumulator kernel (grid = (4, 2)).
    wi16, wo16 = wi.astype(jnp.bfloat16), wo.astype(jnp.bfloat16)
    out2 = jax.block_until_ready(t5_layer_ff(x, gamma, wi16, wo16, row_tile=128, dff_tile=512))
    ref2 = reference(x, gamma, wi16, wo16)
    err2 = float(jnp.max(jnp.abs(out2 - ref2)))
    assert jnp.allclose(out2, ref2, atol=2e-2, rtol=2e-2), f"streamed path mismatch (max abs err {err2})"

    # 3) f32 weights kept in f32, d_ff not a multiple of 128 (exercises d_ff padding).
    DFF3 = 160
    wi3 = 0.05 * jax.random.normal(k_wi, (D, DFF3), dtype=jnp.float32)
    wo3 = 0.05 * jax.random.normal(k_wo, (DFF3, D), dtype=jnp.float32)
    out3 = jax.block_until_ready(t5_layer_ff(x, gamma, wi3, wo3, cast_f32_weights_to_bf16=False))
    ref3 = reference(x, gamma, wi3, wo3)
    err3 = float(jnp.max(jnp.abs(out3 - ref3)))
    assert jnp.allclose(out3, ref3, atol=2e-2, rtol=2e-2), f"f32/padded path mismatch (max abs err {err3})"

    print("KERNEL_OK")
</pallas_src>

<mosaic_0001>
module attributes {stable_mosaic.version = 11 : i64} {
  func.func @_t5_ff_kernel_single(%arg0: i32, %arg1: memref<256x128xf32, #tpu.memory_space<vmem>>, %arg2: memref<1x128xf32, #tpu.memory_space<vmem>>, %arg3: memref<128x1024xbf16, #tpu.memory_space<vmem>>, %arg4: memref<1024x128xbf16, #tpu.memory_space<vmem>>, %arg5: memref<256x128xf32, #tpu.memory_space<vmem>>) attributes {dimension_semantics = [#tpu.dimension_semantics<parallel>], iteration_bounds = array<i64: 2>, scalar_prefetch = 0 : i64, scratch_operands = 0 : i64, tpu.core_type = #tpu.core_type<tc>, window_params = [{transform_indices = @transform_0, window_bounds = array<i64: 256, 128>}, {pipeline_mode = #tpu.pipeline_mode<synchronous>, transform_indices = @transform_1, window_bounds = array<i64: 1, 128>}, {pipeline_mode = #tpu.pipeline_mode<synchronous>, transform_indices = @transform_2, window_bounds = array<i64: 128, 1024>}, {pipeline_mode = #tpu.pipeline_mode<synchronous>, transform_indices = @transform_3, window_bounds = array<i64: 1024, 128>}, {transform_indices = @transform_4, window_bounds = array<i64: 256, 128>}]} {
    %c0 = arith.constant 0 : index
    %c0_0 = arith.constant 0 : index
    %0 = vector.load %arg1[%c0, %c0_0] : memref<256x128xf32, #tpu.memory_space<vmem>>, vector<256x128xf32>
    %1 = arith.mulf %0, %0 : vector<256x128xf32>
    %cst = arith.constant dense<0.000000e+00> : vector<256xf32>
    %2 = vector.multi_reduction <add>, %1, %cst [1] : vector<256x128xf32> to vector<256xf32>
    %3 = vector.shape_cast %2 : vector<256xf32> to vector<256x1xf32>
    %cst_1 = arith.constant 1.280000e+02 : f32
    %4 = vector.broadcast %cst_1 : f32 to vector<256x1xf32>
    %5 = arith.divf %3, %4 : vector<256x1xf32>
    %cst_2 = arith.constant 9.99999997E-7 : f32
    %6 = vector.broadcast %cst_2 : f32 to vector<256x1xf32>
    %7 = arith.addf %5, %6 : vector<256x1xf32>
    %8 = math.rsqrt %7 : vector<256x1xf32>
    %9 = vector.broadcast %8 : vector<256x1xf32> to vector<256x128xf32>
    %10 = arith.mulf %0, %9 : vector<256x128xf32>
    %c0_3 = arith.constant 0 : index
    %c0_4 = arith.constant 0 : index
    %11 = vector.load %arg2[%c0_3, %c0_4] : memref<1x128xf32, #tpu.memory_space<vmem>>, vector<1x128xf32>
    %12 = vector.broadcast %11 : vector<1x128xf32> to vector<256x128xf32>
    %13 = arith.mulf %10, %12 : vector<256x128xf32>
    %14 = arith.truncf %13 : vector<256x128xf32> to vector<256x128xbf16>
    %c0_5 = arith.constant 0 : index
    %c0_6 = arith.constant 0 : index
    %15 = vector.load %arg3[%c0_5, %c0_6] : memref<128x1024xbf16, #tpu.memory_space<vmem>>, vector<128x1024xbf16>
    %cst_7 = arith.constant dense<0.000000e+00> : vector<256x1024xf32>
    %16 = tpu.matmul %14, %15, %cst_7 {dimension_numbers = #tpu.dot_dimension_numbers<[1], [0], [0], [1], [0, 0, 1, 1], [], []>} : vector<256x128xbf16>, vector<128x1024xbf16>, vector<256x1024xf32> -> vector<256x1024xf32>
    %cst_8 = arith.constant 0.000000e+00 : f32
    %17 = vector.broadcast %cst_8 : f32 to vector<256x1024xf32>
    %18 = arith.maximumf %16, %17 : vector<256x1024xf32>
    %19 = arith.truncf %18 : vector<256x1024xf32> to vector<256x1024xbf16>
    %c0_9 = arith.constant 0 : index
    %c0_10 = arith.constant 0 : index
    %20 = vector.load %arg4[%c0_9, %c0_10] : memref<1024x128xbf16, #tpu.memory_space<vmem>>, vector<1024x128xbf16>
    %cst_11 = arith.constant dense<0.000000e+00> : vector<256x128xf32>
    %21 = tpu.matmul %19, %20, %cst_11 {dimension_numbers = #tpu.dot_dimension_numbers<[1], [0], [0], [1], [0, 0, 1, 1], [], []>} : vector<256x1024xbf16>, vector<1024x128xbf16>, vector<256x128xf32> -> vector<256x128xf32>
    %22 = arith.addf %0, %21 : vector<256x128xf32>
    %c0_12 = arith.constant 0 : index
    %c0_13 = arith.constant 0 : index
    %23 = vector.load %arg5[%c0_12, %c0_13] : memref<256x128xf32, #tpu.memory_space<vmem>>, vector<256x128xf32>
    tpu.vector_store %arg5[%c0_12, %c0_13], %22 {strides = array<i32>} : memref<256x128xf32, #tpu.memory_space<vmem>>, vector<256x128xf32>,
    return
  }
  func.func @transform_0(%arg0: i32) -> (i32, i32) {
    %c0_i32 = arith.constant 0 : i32
    %c0_i32_0 = arith.constant 0 : i32
    return %arg0, %c0_i32 : i32, i32
  }
  func.func @transform_1(%arg0: i32) -> (i32, i32) {
    %c0_i32 = arith.constant 0 : i32
    %c0_i32_0 = arith.constant 0 : i32
    %c0_i32_1 = arith.constant 0 : i32
    return %c0_i32, %c0_i32_0 : i32, i32
  }
  func.func @transform_2(%arg0: i32) -> (i32, i32) {
    %c0_i32 = arith.constant 0 : i32
    %c0_i32_0 = arith.constant 0 : i32
    %c0_i32_1 = arith.constant 0 : i32
    return %c0_i32, %c0_i32_0 : i32, i32
  }
  func.func @transform_3(%arg0: i32) -> (i32, i32) {
    %c0_i32 = arith.constant 0 : i32
    %c0_i32_0 = arith.constant 0 : i32
    %c0_i32_1 = arith.constant 0 : i32
    return %c0_i32, %c0_i32_0 : i32, i32
  }
  func.func @transform_4(%arg0: i32) -> (i32, i32) {
    %c0_i32 = arith.constant 0 : i32
    %c0_i32_0 = arith.constant 0 : i32
    return %arg0, %c0_i32 : i32, i32
  }
}

</mosaic_0001>

<bundles_post_ra>
// kernel: tpu_custom_call.1
= control target key start
LH: loop header
LB: loop body
LE: loop exit
PB: predicated region body
PF: predicated region fallthrough
CT: control target
= control target key end

     0   :  { %9 = vsyncpa [#allocation3], 0  ;;  %s5653_s0 = inlined_call_operand.hbm [shape: f32[512,128], index: 0, kind: input, shape index: {}]   ;;  %s5654_s1 = inlined_call_operand.vmem [shape: f32[1,128], index: 1, kind: input, shape index: {}]   ;;  %s5655_s2 = inlined_call_operand.hbm [shape: bf16[128,1024], index: 2, kind: input, shape index: {}]   ;;  %s5656_s3 = inlined_call_operand.hbm [shape: bf16[1024,128], index: 3, kind: input, shape index: {}]   ;;  %s5657_s4 = inlined_call_operand.hbm [shape: f32[512,128], index: 4, kind: output, shape index: {}]  }
   0x1   :  { %11 = vsyncpa [#allocation3 + $0x1], 0 }
   0x2   :  { %12 = vsyncpa [#allocation6], 0 }
   0x3   :  { %13 = vsyncpa [#allocation4], 0 }
   0x4   :  { %15 = vsyncpa [#allocation4 + $0x1], 0  ;;  %s4455_s15 = smov 0   ;;  %s4457_s16 = smov 0  }
   0x5   :  { %s4459_s17 = smov 0   ;;  %s4461_s18 = smov 0  }
   0x6 LB: > { %s4476_s19 = sadd.s32 4294967295, %s4415_s18   ;;  %s3426_s20 = sadd.s32 4294967294, %s4415_s18   ;;  %s4415_s18 = sphi %s4461_s18, %s5677_s18   ;;  %s4411_s17 = sphi %s4459_s17, %s5676_s17   ;;  %s4407_s16 = sphi %s4457_s16, %s5675_s16   ;;  %s4403_s15 = sphi %s4455_s15, %s5674_s15  }
   0x7   : > { %p41_p0 = scmp.ne.s32.totalorder %s4407_s16, %s4403_s15  ;;  %p5658_p1 = scmp.eq.s32.totalorder %s4476_s19, 0 }
   0x8   : > { %p134_p3 = scmp.eq.s32.totalorder %s3426_s20, 1  ;;  %p3427_p5 = scmp.ge.s32.totalorder %s4415_s18, 1 }
   0x9   : > { %p4485_p4 = por %p5658_p1, %p41_p0  ;;  %p141_p7 = scmp.lt.s32.totalorder %s4415_s18, 3 }
   0xa   : > { %p4490_p6 = por %p134_p3, %p41_p0  ;;  %s4417_s24 = smov [#allocation5]  }
   0xb   : > { %s5661_s21 = scalar_select %p4485_p4, 1, 0 }
   0xc   : > { %s5662_s22 = scalar_select %p4490_p6, 1, 0 }
   0xd   : > { %p4495_p8 = pnand %p3427_p5, %p141_p7  ;;  %s156_s25 = sshll.u32 %s4417_s24, 4  ;;  %s4499_s25 = int_to_ptr.vmem [resolvable:$true] %s156_s25 }
   0xe   : > { %s4418_s27 = smov [#allocation7]   ;;  %s4259_s5 = scalar_lea.hbm %s5655_s2, 8192 }
   0xf   : > { %p4035_p9 = pneg %p4495_p8  ;;  %s169_s28 = sshll.u32 %s4418_s27, 4  ;;  %s4510_s28 = int_to_ptr.vmem [resolvable:$true] %s169_s28 }
  0x10   : > { %p4260_p12 = scmp.ne.s32.totalorder %s5655_s2, %s4259_s5  ;;  %p4266_p5 = scmp.lt.u32.totalorder %s4259_s5, %s5655_s2 }
  0x11   : > { %p4506_p11 = pnand %p4035_p9, %p5658_p1 }
  0x13   : > { %p4261_p13 = pneg %p4506_p11 }
  0x15   : > { %p4262_p0 = pnand %p4261_p13, %p4260_p12 }
  0x17   : > { %p4263_p3 = pneg %p4262_p0 }
  0x19   : > { %p4268_p7 = pnand %p4266_p5, %p4263_p3 }
  0x1b   : > { %4271 = shalt.err (!%p4268_p7)
}
  0x1c   : > { %s4272_s10 = scalar_lea.vmem %s4499_s25, 8192  ;;  %p4280_p2 = scmp.lt.s32.totalorder %s4499_s25, %s4499_s25 }
  0x1d   : > { %p4273_p9 = scmp.ne.s32.totalorder %s4499_s25, %s4272_s10  ;;  %p4281_p12 = scmp.lt.s32.totalorder %s4272_s10, %s4272_s10 }
  0x1f   : > { %p4275_p10 = pnand %p4273_p9, %p4261_p13  ;;  %p4282_p0 = por %p4281_p12, %p4280_p2 }
  0x21   : > { %p4276_p1 = pneg %p4275_p10 }
  0x23   : > { %p4283_p6 = pnand %p4282_p0, %p4276_p1 }
  0x25   : > { %4286 = shalt.err (!%p4283_p6)
}
  0x26   : > { %s4419_s11 = smov 512   ;;  %s4420_s12 = smov 32  }
  0x27   : > { %4038 = dma.hbm_to_vmem [thread:$0]  (!%p4506_p11), %s5655_s2, 8192, %s4499_s25, [#allocation6], %s4419_s11, %s4419_s11, %s4420_s12  }
  0x28   : > { %s4287_s27 = scalar_lea.hbm %s5656_s3, 8192 }
  0x29   : > { %p4288_p2 = scmp.ne.s32.totalorder %s5656_s3, %s4287_s27  ;;  %p4294_p10 = scmp.lt.u32.totalorder %s4287_s27, %s5656_s3 }
  0x2b   : > { %p4290_p1 = pnand %p4288_p2, %p4261_p13 }
  0x2d   : > { %p4291_p6 = pneg %p4290_p1 }
  0x2f   : > { %p4296_p3 = pnand %p4294_p10, %p4291_p6 }
  0x31   : > { %4299 = shalt.err (!%p4296_p3)
}
  0x32   : > { %s4300_s25 = scalar_lea.vmem %s4510_s28, 8192  ;;  %p4308_p12 = scmp.lt.s32.totalorder %s4510_s28, %s4510_s28 }
  0x33   : > { %p4301_p5 = scmp.ne.s32.totalorder %s4510_s28, %s4300_s25  ;;  %p4309_p0 = scmp.lt.s32.totalorder %s4300_s25, %s4300_s25 }
  0x35   : > { %p4303_p7 = pnand %p4301_p5, %p4261_p13  ;;  %p4310_p2 = por %p4309_p0, %p4308_p12 }
  0x37   : > { %p4304_p9 = pneg %p4303_p7 }
  0x39   : > { %p4311_p1 = pnand %p4310_p2, %p4304_p9 }
  0x3b   : > { %4314 = shalt.err (!%p4311_p1)
}
  0x3c   : > { %s4421_s7 = smov 64   ;;  %s4422_s8 = smov 4  }
  0x3d   : > { %4041 = dma.hbm_to_vmem [thread:$0]  (!%p4506_p11), %s5656_s3, 8192, %s4510_s28, [#allocation6], %s4421_s7, %s4421_s7, %s4422_s8  }
  0x3e   : > { %s4565_s11 = sadd.s32 1, %s4415_s18   ;;  %s28_s13 = sadd.s32 1, %s4411_s17 }
  0x3f   : > { %s25_s12 = ssub.s32 %s4415_s18, %s4565_s11  ;;  %p35_p6 = scmp.ne.s32.totalorder %s4411_s17, %s4407_s16 }
  0x40   : > { %p26_p13 = scmp.eq.s32.totalorder %s25_s12, 0  ;;  %p36_p10 = scmp.eq.s32.totalorder %s4415_s18, 0 }
  0x41   : > { %p5665_p5 = scmp.eq.s32.totalorder %s4476_s19, 1  ;;  %p4052_p9 = scmp.lt.s32.totalorder %s4415_s18, 2 }
  0x42   : > { %s4574_s14 = scalar_select %p26_p13, %s4411_s17, %s28_s13  }
  0x43   : > { %p37_p3 = por %p36_p10, %p35_p6  ;;  %p4578_p7 = por %p5665_p5, %p35_p6 }
  0x44   : > { %s183_s26 = sand.u32 1, %s4411_s17   ;;  %s3573_s28 = sshll.u32 %s4415_s18, 12 }
  0x45   : > { %s5666_s20 = scalar_select %p4578_p7, 1, 0 }
  0x46   : > { %s3431_s24 = sshll.u32 %s183_s26, 8  ;;  %s4588_s30 = scalar_lea.hbm %s5653_s0, %s3573_s28 }
  0x47   : > { %s187_s5 = scalar_lea.vmem [#allocation2], %s3431_s24  ;;  %p4592_p11 = pnand %p4052_p9, %p37_p3 }
  0x48   : > { %s194_s6 = sshll.u32 %s187_s5, 4  ;;  %s4596_s7 = scalar_lea.sflag [#allocation3], %s183_s26  ;;  %s4590_s6 = int_to_ptr.vmem [resolvable:$true] %s194_s6 }
  0x49   : > { %s4315_s8 = scalar_lea.hbm %s4588_s30, 4096  ;;  %p4317_p0 = pneg %p4592_p11 }
  0x4a   : > { %p4316_p12 = scmp.ne.s32.totalorder %s4588_s30, %s4315_s8  ;;  %s4320_s12 = scalar_lea.hbm %s5653_s0, 8192 }
  0x4b   : > { %p4321_p13 = scmp.lt.u32.totalorder %s4588_s30, %s5653_s0  ;;  %p4322_p6 = scmp.lt.u32.totalorder %s4320_s12, %s4315_s8 }
  0x4c   : > { %p4318_p2 = pnand %p4317_p0, %p4316_p12  ;;  %p4324_p3 = scmp.lt.u32.totalorder %s4315_s8, %s4588_s30 }
  0x4d   : > { %p4323_p10 = por %p4322_p6, %p4321_p13 }
  0x4e   : > { %p4319_p1 = pneg %p4318_p2 }
  0x4f   : > { %p4325_p5 = por %p4324_p3, %p4323_p10 }
  0x51   : > { %p4326_p9 = pnand %p4325_p5, %p4319_p1 }
  0x53   : > { %4329 = shalt.err (!%p4326_p9)
}
  0x54   : > { %s4330_s26 = scalar_lea.vmem %s4590_s6, 4096  ;;  %s4423_s28 = smov [#allocation2]  }
  0x55   : > { %p4331_p12 = scmp.ne.s32.totalorder %s4590_s6, %s4330_s26  ;;  %s4335_s27 = sshll.u32 %s4423_s28, 4  ;;  %s4336_s27 = int_to_ptr.vmem [resolvable:$false] %s4335_s27 }
  0x56   : > { %s4337_s29 = scalar_lea.vmem %s4336_s27, 8192  ;;  %p4338_p4 = scmp.lt.s32.totalorder %s4590_s6, %s4336_s27 }
  0x57   : > { %p4333_p2 = pnand %p4331_p12, %p4317_p0  ;;  %p4339_p13 = scmp.lt.s32.totalorder %s4337_s29, %s4330_s26 }
  0x59   : > { %p4334_p7 = pneg %p4333_p2  ;;  %p4340_p6 = por %p4339_p13, %p4338_p4 }
  0x5b   : > { %p4341_p10 = pnand %p4340_p6, %p4334_p7 }
  0x5d   : > { %4344 = shalt.err (!%p4341_p10)
}
  0x5e   : > { %s4424_s5 = smov 128   ;;  %s4425_s8 = smov 8  }
  0x5f   : > { %4045 = dma.hbm_to_vmem [thread:$0]  (!%p4592_p11), %s4588_s30, 4096, %s4590_s6, %s4596_s7, %s4424_s5, %s4424_s5, %s4425_s8  }
  0x60   : > { %206 = sbr.rel (%p4495_p8) target bundleno = 1019 (0x3fb), region = 36  ;;  %s4627_s9 = sand.u32 (!%p4495_p8), 1, %s4407_s16  }
  0x61   : > { %s3435_s10 = sshll.u32 (!%p4495_p8), %s4627_s9, 8  ;;  %s209_s12 = scalar_lea.sflag (!%p4495_p8), [#allocation3], %s4627_s9 }
  0x62   : > { %s4633_s13 = scalar_lea.vmem (!%p4495_p8), [#allocation2], %s3435_s10  ;;  %p5668_p4 = scmp.ne.s32.totalorder (!%p4495_p8), %s5661_s21, 0 }
  0x67   : > { %4390 = dma.done.wait (%p5668_p4), %s209_s12, 4096  }
  0x68   : > { %4392 = vsyncadd (%p5668_p4), %s209_s12, 4294963200  ;;  %p5669_p7 = scmp.eq.s32.totalorder %s4476_s19, 0 }
  0x6a   : > { %4394 = dma.done.wait (%p5669_p7), [#allocation6], 16384   ;;  %p5670_p8 = pmov %p5669_p7 }
  0x6b   : > { %v4644_v0 = vld [vmem:[%s4633_s13] sm:$0xff]  ;;  %v4647_v1 = vld [vmem:[%s4633_s13 + $0x10] sm:$0xff]  ;;  %v4650_v2 = vld [vmem:[%s4633_s13 + $0x8] sm:$0xff]  ;;  %s5507_s30 = scalar_lea.vmem [#allocation8], %s3435_s10  ;;  %s3574_s6 = sshll.u32 %s4476_s19, 12 }
  0x6c   : > { %4396 = vsyncadd (%p5670_p8), [#allocation6], 4294950912  ;;  %v280_v3 = vmul.f32 %v4644_v0, %v4644_v0  ;;  %v282_v4 = vmul.f32 %v4647_v1, %v4647_v1  ;;  %v4657_v5 = vld [vmem:[%s4633_s13 + $0x18] sm:$0xff]  ;;  %v281_v6 = vmul.f32 %v4650_v2, %v4650_v2  ;;  %v4664_v8 = vld [vmem:[%s4633_s13 + $0x28] sm:$0xff]  ;;  %s3334_s25 = sshll.u32 %s5507_s30, 4  ;;  %s5604_s26 = scalar_lea.hbm %s5657_s4, %s3574_s6  ;;  %s5606_s25 = int_to_ptr.vmem [resolvable:$true] %s3334_s25 }
  0x6d   : > { %v283_v7 = vmul.f32 %v4657_v5, %v4657_v5  ;;  %v4667_v9 = vld [vmem:[%s4633_s13 + $0x20] sm:$0xff]  ;;  %v285_v10 = vmul.f32 %v4664_v8, %v4664_v8  ;;  %v4674_v12 = vld [vmem:[%s4633_s13 + $0x38] sm:$0xff]  ;;  %v4677_v13 = vld [vmem:[%s4633_s13 + $0x30] sm:$0xff]  ;;  %s3321_s28 = scalar_lea.sflag [#allocation4], %s4627_s9  ;;  %s4345_s19 = scalar_lea.vmem %s5606_s25, 4096 }
  0x6e   : > { %312 = vadd.xlane.f32.xlu0 %v280_v3  ;;  %316 = vadd.xlane.f32.xlu1 %v282_v4  ;;  %v284_v11 = vmul.f32 %v4667_v9, %v4667_v9  ;;  %v4680_v14 = vld [vmem:[%s4633_s13 + $0x48] sm:$0xff]  ;;  %v4683_v15 = vld [vmem:[%s4633_s13 + $0x40] sm:$0xff]  ;;  %v287_v17 = vmul.f32 %v4674_v12, %v4674_v12  ;;  %v286_v18 = vmul.f32 %v4677_v13, %v4677_v13  ;;  %v4690_v31 = vld [vmem:[%s4633_s13 + $0x58] sm:$0xff]  ;;  %p4346_p11 = scmp.ne.s32.totalorder %s5606_s25, %s4345_s19  ;;  %p5671_p0 = scmp.ne.s32.totalorder %s5666_s20, 0 }
  0x6f   : > { %v560_v16 = vld [vmem:[#allocation5] sm:$0xff]  ;;  %v561_v20 = vld [vmem:[#allocation5 + $0x8] sm:$0xff]  ;;  %v4693_v32 = vld [vmem:[%s4633_s13 + $0x50] sm:$0xff]  ;;  %v289_v34 = vmul.f32 %v4680_v14, %v4680_v14  ;;  %v288_v35 = vmul.f32 %v4683_v15, %v4683_v15  ;;  %v291_v46 = vmul.f32 %v4690_v31, %v4690_v31  ;;  %s4427_s27 = smov [#allocation8]  }
  0x70   : > { %v564_v19 = vld [vmem:[#allocation5 + $0x20] sm:$0xff]  ;;  %v565_v21 = vld [vmem:[#allocation5 + $0x28] sm:$0xff]  ;;  %v290_v47 = vmul.f32 %v4693_v32, %v4693_v32  ;;  %v4710_v56 = vld [vmem:[%s4633_s13 + $0x78] sm:$0xff]  ;;  %p4347_p1 = pnand %p4346_p11, %p5671_p0  ;;  %s4349_s29 = sshll.u32 %s4427_s27, 4  ;;  %s4350_s29 = int_to_ptr.vmem [resolvable:$false] %s4349_s29 }
  0x71   : > { %v3441_v22 = vcombine.high %v560_v16, %v564_v19  ;;  %v3440_v23 = vcombine.low %v560_v16, %v564_v19  ;;  %v3443_v24 = vcombine.high %v561_v20, %v565_v21  ;;  %v3442_v25 = vcombine.low %v561_v20, %v565_v21  ;;  %v568_v26 = vld [vmem:[#allocation5 + $0x40] sm:$0xff]  ;;  %v569_v28 = vld [vmem:[#allocation5 + $0x48] sm:$0xff]  ;;  %v4713_v57 = vld [vmem:[%s4633_s13 + $0x70] sm:$0xff]  ;;  %s4351_s5 = scalar_lea.vmem %s4350_s29, 8192  ;;  %p4352_p5 = scmp.lt.s32.totalorder %s5606_s25, %s4350_s29 }
  0x72   : > { %314 = vadd.xlane.f32.xlu0 %v281_v6  ;;  %318 = vadd.xlane.f32.xlu1 %v283_v7  ;;  %v572_v27 = vld [vmem:[#allocation5 + $0x60] sm:$0xff]  ;;  %v573_v30 = vld [vmem:[#allocation5 + $0x68] sm:$0xff]  ;;  %p4348_p3 = pneg %p4347_p1  ;;  %p4353_p9 = scmp.lt.s32.totalorder %s4351_s5, %s4345_s19 }
  0x73   : > { %v3449_v29 = vcombine.high %v568_v26, %v572_v27  ;;  %944 = vmatprep.subr.bf16.mxu0 %v3441_v22  ;;  %1137 = vmatprep.subr.bf16.mxu1 %v3443_v24  ;;  %v3451_v33 = vcombine.high %v569_v28, %v573_v30  ;;  %v576_v36 = vld [vmem:[#allocation5 + $0x80] sm:$0xff]  ;;  %v577_v38 = vld [vmem:[#allocation5 + $0x88] sm:$0xff]  ;;  %v3448_v39 = vcombine.low %v568_v26, %v572_v27  ;;  %v4730_v27 = vld [vmem:[%s4633_s13 + $0x98] sm:$0xff] }
  0x74   : > { %v580_v37 = vld [vmem:[#allocation5 + $0xa0] sm:$0xff]  ;;  %945 = vmatpush1.bf16.msra.mxu0 %v3440_v23  ;;  %1138 = vmatpush1.bf16.msra.mxu1 %v3442_v25  ;;  %v3450_v40 = vcombine.low %v569_v28, %v573_v30  ;;  %v581_v41 = vld [vmem:[#allocation5 + $0xa8] sm:$0xff]  ;;  %p4354_p12 = por %p4353_p9, %p4352_p5 }
  0x75   : > { %946 = vmatprep.subr.bf16.mxu0 %v3449_v29  ;;  %1139 = vmatprep.subr.bf16.mxu1 %v3451_v33  ;;  %v3457_v42 = vcombine.high %v576_v36, %v580_v37  ;;  %v3459_v43 = vcombine.high %v577_v38, %v581_v41  ;;  %v4700_v44 = vld [vmem:[%s4633_s13 + $0x68] sm:$0xff]  ;;  %v4703_v45 = vld [vmem:[%s4633_s13 + $0x60] sm:$0xff]  ;;  %v3456_v51 = vcombine.low %v576_v36, %v580_v37  ;;  %v4739_v36 = vld [vmem:[#allocation5 + $0x10] sm:$0xff] }
  0x76   : > { %322 = vadd.xlane.f32.xlu1 %v285_v10  ;;  %320 = vadd.xlane.f32.xlu0 %v284_v11  ;;  %v584_v48 = vld [vmem:[#allocation5 + $0xc0] sm:$0xff]  ;;  %v585_v50 = vld [vmem:[#allocation5 + $0xc8] sm:$0xff]  ;;  %v3458_v52 = vcombine.low %v577_v38, %v581_v41  ;;  %v293_v58 = vmul.f32 %v4700_v44, %v4700_v44  ;;  %v292_v59 = vmul.f32 %v4703_v45, %v4703_v45  ;;  %v4741_v37 = vld [vmem:[#allocation5 + $0x30] sm:$0xff]  ;;  %p4355_p2 = pnand %p4354_p12, %p4348_p3 }
  0x77   : > { %v588_v49 = vld [vmem:[#allocation5 + $0xe0] sm:$0xff]  ;;  %v589_v53 = vld [vmem:[#allocation5 + $0xe8] sm:$0xff] }
  0x78   : > { %947 = vmatpush1.bf16.msra.mxu0 %v3448_v39  ;;  %1140 = vmatpush1.bf16.msra.mxu1 %v3450_v40  ;;  %v3465_v54 = vcombine.high %v584_v48, %v588_v49  ;;  %v3467_v55 = vcombine.high %v585_v50, %v589_v53  ;;  %v592_v60 = vld [vmem:[#allocation5 + $0x100] sm:$0xff]  ;;  %v593_v62 = vld [vmem:[#allocation5 + $0x108] sm:$0xff]  ;;  %v3464_v63 = vcombine.low %v584_v48, %v588_v49 }
  0x79   : > { %948 = vmatprep.subr.bf16.mxu0 %v3457_v42  ;;  %1141 = vmatprep.subr.bf16.mxu1 %v3459_v43  ;;  %v596_v61 = vld [vmem:[#allocation5 + $0x120] sm:$0xff]  ;;  %v3466_v3 = vcombine.low %v585_v50, %v589_v53  ;;  %v597_v4 = vld [vmem:[#allocation5 + $0x128] sm:$0xff]  ;;  %v3444_v43 = vcombine.low %v4739_v36, %v4741_v37 }
  0x7a   : > { %326 = vadd.xlane.f32.xlu1 %v287_v17  ;;  %324 = vadd.xlane.f32.xlu0 %v286_v18  ;;  %v3473_v6 = vcombine.high %v592_v60, %v596_v61  ;;  %v3475_v7 = vcombine.high %v593_v62, %v597_v4  ;;  %v600_v10 = vld [vmem:[#allocation5 + $0x140] sm:$0xff]  ;;  %v601_v16 = vld [vmem:[#allocation5 + $0x148] sm:$0xff]  ;;  %v295_v17 = vmul.f32 %v4710_v56, %v4710_v56 }
  0x7b   : > { %v604_v11 = vld [vmem:[#allocation5 + $0x160] sm:$0xff]  ;;  %v294_v18 = vmul.f32 %v4713_v57, %v4713_v57  ;;  %v4724_v19 = vld [vmem:[%s4633_s13 + $0x88] sm:$0xff]  ;;  %v3472_v22 = vcombine.low %v592_v60, %v596_v61  ;;  %v3474_v23 = vcombine.low %v593_v62, %v597_v4  ;;  %v4758_v60 = vld [vmem:[%s4633_s13 + $0xb8] sm:$0xff] }
  0x7c   : > { %949 = vmatpush1.bf16.msra.mxu0 %v3456_v51  ;;  %1142 = vmatpush1.bf16.msra.mxu1 %v3458_v52  ;;  %v605_v20 = vld [vmem:[#allocation5 + $0x168] sm:$0xff]  ;;  %v4727_v21 = vld [vmem:[%s4633_s13 + $0x80] sm:$0xff]  ;;  %v3481_v25 = vcombine.high %v600_v10, %v604_v11  ;;  %v297_v33 = vmul.f32 %v4724_v19, %v4724_v19  ;;  %v3480_v38 = vcombine.low %v600_v10, %v604_v11  ;;  %v4426_v51 = vmov 0   ;;  %v4761_v61 = vld [vmem:[%s4633_s13 + $0xb0] sm:$0xff] }
  0x7d   : > { %950 = vmatprep.subr.bf16.mxu0 %v3465_v54  ;;  %1143 = vmatprep.subr.bf16.mxu1 %v3467_v55  ;;  %v608_v24 = vld [vmem:[#allocation5 + $0x180] sm:$0xff]  ;;  %v3483_v26 = vcombine.high %v601_v16, %v605_v20  ;;  %v609_v29 = vld [vmem:[#allocation5 + $0x188] sm:$0xff]  ;;  %v3482_v39 = vcombine.low %v601_v16, %v605_v20  ;;  %v299_v52 = vmul.f32 %v4730_v27, %v4730_v27 }
  0x7e   : > { %330 = vadd.xlane.f32.xlu1 %v289_v34  ;;  %328 = vadd.xlane.f32.xlu0 %v288_v35  ;;  %v612_v28 = vld [vmem:[#allocation5 + $0x1a0] sm:$0xff]  ;;  %v613_v30 = vld [vmem:[#allocation5 + $0x1a8] sm:$0xff]  ;;  %v296_v34 = vmul.f32 %v4727_v21, %v4727_v21  ;;  %v4737_v35 = vld [vmem:[%s4633_s13 + $0x90] sm:$0xff]  ;;  %v303_v11 = vmul.f32 %v4758_v60, %v4758_v60  ;;  %v302_v16 = vmul.f32 %v4761_v61, %v4761_v61 }
  0x7f   : > { %v616_v40 = vld [vmem:[#allocation5 + $0x1c0] sm:$0xff]  ;;  %v617_v42 = vld [vmem:[#allocation5 + $0x1c8] sm:$0xff]  ;;  %976 = vmatprep.mubr.bf16.mxu0 %v4426_v51  ;;  %1169 = vmatprep.mubr.bf16.mxu1 %v4426_v51  ;;  %v298_v53 = vmul.f32 %v4737_v35, %v4737_v35  ;;  %v3488_v54 = vcombine.low %v608_v24, %v612_v28  ;;  %v3490_v55 = vcombine.low %v609_v29, %v613_v30 }
  0x80   : > { %951 = vmatpush1.bf16.msra.mxu0 %v3464_v63  ;;  %1144 = vmatpush1.bf16.msra.mxu1 %v3466_v3  ;;  %v620_v41 = vld [vmem:[#allocation5 + $0x1e0] sm:$0xff]  ;;  %v621_v48 = vld [vmem:[#allocation5 + $0x1e8] sm:$0xff] }
  0x81   : > { %952 = vmatprep.subr.bf16.mxu0 %v3473_v6  ;;  %1145 = vmatprep.subr.bf16.mxu1 %v3475_v7  ;;  %v4746_v49 = vld [vmem:[%s4633_s13 + $0xa8] sm:$0xff]  ;;  %v4749_v50 = vld [vmem:[%s4633_s13 + $0xa0] sm:$0xff]  ;;  %v3496_v3 = vcombine.low %v616_v40, %v620_v41  ;;  %v3498_v4 = vcombine.low %v617_v42, %v621_v48  ;;  %v3445_v6 = vcombine.high %v4739_v36, %v4741_v37  ;;  %v586_v37 = vld [vmem:[#allocation5 + $0xd0] sm:$0xff] }
  0x82   : > { %334 = vadd.xlane.f32.xlu1 %v291_v46  ;;  %332 = vadd.xlane.f32.xlu0 %v290_v47  ;;  %v3489_v46 = vcombine.high %v608_v24, %v612_v28  ;;  %v3491_v47 = vcombine.high %v609_v29, %v613_v30  ;;  %v301_v62 = vmul.f32 %v4746_v49, %v4746_v49  ;;  %v4770_v7 = vld [vmem:[%s4633_s13 + $0xc8] sm:$0xff]  ;;  %v4773_v10 = vld [vmem:[%s4633_s13 + $0xc0] sm:$0xff]  ;;  %v4791_v24 = vld [vmem:[%s4633_s13 + $0xd0] sm:$0xff] }
  0x83   : > { %v300_v63 = vmul.f32 %v4749_v50, %v4749_v50  ;;  %v306_v29 = vmul.f32 %v4791_v24, %v4791_v24  ;;  %v4802_v30 = vld [vmem:[%s4633_s13 + $0xe8] sm:$0xff] }
  0x84   : > { %953 = vmatpush1.bf16.msra.mxu0 %v3472_v22  ;;  %1146 = vmatpush1.bf16.msra.mxu1 %v3474_v23  ;;  %v4788_v23 = vld [vmem:[%s4633_s13 + $0xd8] sm:$0xff] }
  0x85   : > { %954 = vmatprep.subr.bf16.mxu0 %v3481_v25  ;;  %1147 = vmatprep.subr.bf16.mxu1 %v3483_v26  ;;  %v305_v25 = vmul.f32 %v4770_v7, %v4770_v7  ;;  %v304_v26 = vmul.f32 %v4773_v10, %v4773_v10  ;;  %v307_v28 = vmul.f32 %v4788_v23, %v4788_v23 }
  0x86   : > { %338 = vadd.xlane.f32.xlu1 %v293_v58  ;;  %336 = vadd.xlane.f32.xlu0 %v292_v59  ;;  %v3497_v58 = vcombine.high %v616_v40, %v620_v41  ;;  %v3499_v59 = vcombine.high %v617_v42, %v621_v48 }
  0x88   : > { %955 = vmatpush1.bf16.msra.mxu0 %v3480_v38  ;;  %1148 = vmatpush1.bf16.msra.mxu1 %v3482_v39  ;;  %v4811_v38 = vld [vmem:[%s4633_s13 + $0xf0] sm:$0xff]  ;;  %v309_v39 = vmul.f32 %v4802_v30, %v4802_v30 }
  0x89   : > { %956 = vmatprep.subr.bf16.mxu0 %v3489_v46  ;;  %1149 = vmatprep.subr.bf16.mxu1 %v3491_v47  ;;  %v310_v42 = vmul.f32 %v4811_v38, %v4811_v38 }
  0x8a   : > { %342 = vadd.xlane.f32.xlu1 %v295_v17  ;;  %340 = vadd.xlane.f32.xlu0 %v294_v18  ;;  %v4779_v17 = vld [vmem:[#allocation5 + $0x18] sm:$0xff] }
  0x8b   : > { %v4781_v18 = vld [vmem:[#allocation5 + $0x38] sm:$0xff] }
  0x8c   : > { %957 = vmatpush1.bf16.msra.mxu0 %v3488_v54  ;;  %1150 = vmatpush1.bf16.msra.mxu1 %v3490_v55  ;;  %v3446_v20 = vcombine.low %v4779_v17, %v4781_v18  ;;  %v3447_v22 = vcombine.high %v4779_v17, %v4781_v18 }
  0x8d   : > { %958 = vmatprep.subr.bf16.mxu0 %v3497_v58  ;;  %1151 = vmatprep.subr.bf16.mxu1 %v3499_v59 }
  0x8e   : > { %346 = vadd.xlane.f32.xlu1 %v297_v33  ;;  %344 = vadd.xlane.f32.xlu0 %v296_v34  ;;  %v4805_v33 = vld [vmem:[%s4633_s13 + $0xe0] sm:$0xff]  ;;  %v4808_v34 = vld [vmem:[%s4633_s13 + $0xf8] sm:$0xff] }
  0x8f   : > { %v308_v40 = vmul.f32 %v4805_v33, %v4805_v33  ;;  %v311_v41 = vmul.f32 %v4808_v34, %v4808_v34 }
  0x90   : > { %959 = vmatpush1.bf16.msra.mxu0 %v3496_v3  ;;  %1152 = vmatpush1.bf16.msra.mxu1 %v3498_v4 }
  0x91   : > { %1330 = vmatprep.subr.bf16.mxu0 %v3445_v6  ;;  %1523 = vmatprep.subr.bf16.mxu1 %v3447_v22 }
  0x92   : > { %350 = vadd.xlane.f32.xlu1 %v299_v52  ;;  %348 = vadd.xlane.f32.xlu0 %v298_v53 }
  0x96   : > { %354 = vadd.xlane.f32.xlu1 %v301_v62  ;;  %352 = vadd.xlane.f32.xlu0 %v300_v63 }
  0x9a   : > { %358 = vadd.xlane.f32.xlu1 %v303_v11  ;;  %356 = vadd.xlane.f32.xlu0 %v302_v16 }
  0x9e   : > { %362 = vadd.xlane.f32.xlu1 %v305_v25  ;;  %360 = vadd.xlane.f32.xlu0 %v304_v26 }
  0xa2   : > { %366 = vadd.xlane.f32.xlu1 %v307_v28  ;;  %364 = vadd.xlane.f32.xlu0 %v306_v29 }
  0xa6   : > { %370 = vadd.xlane.f32.xlu1 %v309_v39  ;;  %368 = vadd.xlane.f32.xlu0 %v308_v40 }
  0xaa   : > { %374 = vadd.xlane.f32.xlu1 %v311_v41  ;;  %372 = vadd.xlane.f32.xlu0 %v310_v42 }
  0xfb   : > { %v313_v46 = vpop.xlane.xlu0 %312  ;;  %v317_v47 = vpop.xlane.xlu1 %316 }
  0xfc   : > { %v377_v48 = vmul.f32 0.0078125, %v313_v46  ;;  %v379_v52 = vmul.f32 0.0078125, %v317_v47  ;;  %v4825_v46 = vld [vmem:[%s5654_s1] ss:$0 sm:$0xff] }
  0xfe   : > { %v409_v53 = vadd.f32 1e-06, %v377_v48  ;;  %v411_v62 = vadd.f32 1e-06, %v379_v52 }
  0xff   : > { %v315_v54 = vpop.xlane.xlu0 %314  ;;  %v319_v55 = vpop.xlane.xlu1 %318 }
 0x100   : > { %4163 = vrsqrt.f32 %v409_v53  ;;  %v378_v58 = vmul.f32 0.0078125, %v315_v54  ;;  %v380_v59 = vmul.f32 0.0078125, %v319_v55 }
 0x102   : > { %v410_v63 = vadd.f32 1e-06, %v378_v58  ;;  %v412_v3 = vadd.f32 1e-06, %v380_v59  ;;  %v570_v58 = vld [vmem:[#allocation5 + $0x50] sm:$0xff] }
 0x103   : > { %v323_v4 = vpop.xlane.xlu1 %322  ;;  %v321_v6 = vpop.xlane.xlu0 %320 }
 0x104   : > { %4165 = vrsqrt.f32 %v410_v63  ;;  %v382_v11 = vmul.f32 0.0078125, %v323_v4  ;;  %v381_v16 = vmul.f32 0.0078125, %v321_v6  ;;  %v575_v4 = vld [vmem:[#allocation5 + $0x78] sm:$0xff] }
 0x105   : > { %4167 = vrsqrt.f32 %v411_v62 }
 0x106   : > { %4169 = vrsqrt.f32 %v412_v3  ;;  %v414_v22 = vadd.f32 1e-06, %v382_v11  ;;  %v413_v26 = vadd.f32 1e-06, %v381_v16  ;;  %v571_v3 = vld [vmem:[#allocation5 + $0x58] sm:$0xff] }
 0x107   : > { %v327_v25 = vpop.xlane.xlu1 %326  ;;  %v325_v28 = vpop.xlane.xlu0 %324 }
 0x108   : > { %v384_v39 = vmul.f32 0.0078125, %v327_v25  ;;  %4171 = vrsqrt.f32 %v414_v22  ;;  %v383_v40 = vmul.f32 0.0078125, %v325_v28  ;;  %v578_v22 = vld [vmem:[#allocation5 + $0x90] sm:$0xff] }
 0x109   : > { %4173 = vrsqrt.f32 %v413_v26  ;;  %v582_v25 = vld [vmem:[#allocation5 + $0xb0] sm:$0xff] }
 0x10a   : > { %v4164_v29 = vpop.eup %4163  ;;  %v416_v47 = vadd.f32 1e-06, %v384_v39  ;;  %v415_v54 = vadd.f32 1e-06, %v383_v40  ;;  %v579_v39 = vld [vmem:[#allocation5 + $0x98] sm:$0xff] }
 0x10b   : > { %v473_v41 = vmul.f32 %v4164_v29, %v4644_v0  ;;  %v331_v55 = vpop.xlane.xlu1 %330  ;;  %v329_v63 = vpop.xlane.xlu0 %328  ;;  %v574_v0 = vld [vmem:[#allocation5 + $0x70] sm:$0xff]  ;;  %v3455_v29 = vcombine.high %v571_v3, %v575_v4  ;;  %v583_v40 = vld [vmem:[#allocation5 + $0xb8] sm:$0xff] }
 0x10c   : > { %4175 = vrsqrt.f32 %v416_v47  ;;  %v385_v26 = vmul.f32 0.0078125, %v329_v63  ;;  %v3453_v28 = vcombine.high %v570_v58, %v574_v0  ;;  %v3461_v47 = vcombine.high %v578_v22, %v582_v25 }
 0x10d   : > { %v512_v59 = vmul.f32 %v4825_v46, %v473_v41  ;;  %4177 = vrsqrt.f32 %v415_v54  ;;  %v3463_v54 = vcombine.high %v579_v39, %v583_v40 }
 0x10e   : > { %v4166_v42 = vpop.eup %4165 }
 0x10f   : > { %v4168_v48 = vpop.eup %4167  ;;  %v474_v52 = vmul.f32 %v4166_v42, %v4650_v2  ;;  %v386_v2 = vmul.f32 0.0078125, %v331_v55  ;;  %v417_v55 = vadd.f32 1e-06, %v385_v26  ;;  %v335_v36 = vpop.xlane.xlu1 %334  ;;  %v595_v26 = vld [vmem:[#allocation5 + $0x118] sm:$0xff] }
 0x110   : > { %v4170_v53 = vpop.eup %4169  ;;  %v475_v11 = vmul.f32 %v4168_v48, %v4647_v1  ;;  %v3452_v1 = vcombine.low %v570_v58, %v574_v0  ;;  %v333_v18 = vpop.xlane.xlu0 %332  ;;  %v587_v58 = vld [vmem:[#allocation5 + $0xd8] sm:$0xff]  ;;  %v388_v0 = vmul.f32 0.0078125, %v335_v36  ;;  %v606_v36 = vld [vmem:[#allocation5 + $0x170] sm:$0xff] }
 0x111   : > { %v513_v62 = vmul.f32 %v4825_v46, %v474_v52  ;;  %v476_v16 = vmul.f32 %v4170_v53, %v4657_v5  ;;  %v3454_v5 = vcombine.low %v571_v3, %v575_v4  ;;  %v418_v53 = vadd.f32 1e-06, %v386_v2 }
 0x112   : > { %v4172_v41 = vpop.eup %4171  ;;  %v514_v48 = vmul.f32 %v4825_v46, %v475_v11  ;;  %v3462_v3 = vcombine.low %v579_v39, %v583_v40  ;;  %v387_v11 = vmul.f32 0.0078125, %v333_v18  ;;  %v420_v39 = vadd.f32 1e-06, %v388_v0  ;;  %v610_v0 = vld [vmem:[#allocation5 + $0x190] sm:$0xff] }
 0x113   : > { %v4830_v6 = vpack.c.bf16 %v513_v62, %v512_v59  ;;  %v4174_v42 = vpop.eup %4173  ;;  %v515_v52 = vmul.f32 %v4825_v46, %v476_v16  ;;  %v478_v17 = vmul.f32 %v4172_v41, %v4664_v8  ;;  %v591_v59 = vld [vmem:[#allocation5 + $0xf8] sm:$0xff]  ;;  %v3460_v62 = vcombine.low %v578_v22, %v582_v25  ;;  %v594_v8 = vld [vmem:[#allocation5 + $0x110] sm:$0xff] }
 0x114   : > { %4179 = vrsqrt.f32 %v418_v53  ;;  %v3471_v16 = vcombine.high %v587_v58, %v591_v59  ;;  %v598_v25 = vld [vmem:[#allocation5 + $0x130] sm:$0xff]  ;;  %v3470_v41 = vcombine.low %v587_v58, %v591_v59 }
 0x115   : > { %977 = vmatmul.mubr.bf16.vlgmr.msra.gmra.mrb[0].mxu0 %v4830_v6  ;;  %1170 = vmatmul.mubr.bf16.vlgmr.msra.gmra.mrb[0].mxu1 %v4830_v6  ;;  %v4848_v63 = vpack.c.bf16 %v515_v52, %v514_v48  ;;  %4181 = vrsqrt.f32 %v417_v55  ;;  %v517_v22 = vmul.f32 %v4825_v46, %v478_v17  ;;  %v602_v48 = vld [vmem:[#allocation5 + $0x150] sm:$0xff]  ;;  %v337_v55 = vpop.xlane.xlu0 %336  ;;  %v607_v17 = vld [vmem:[#allocation5 + $0x178] sm:$0xff]  ;;  %v3476_v18 = vcombine.low %v594_v8, %v598_v25 }
 0x116   : > { %1331 = vmatpush1.bf16.msra.mxu0 %v3444_v43  ;;  %1524 = vmatpush1.bf16.msra.mxu1 %v3446_v20  ;;  %v477_v43 = vmul.f32 %v4174_v42, %v4667_v9  ;;  %v590_v20 = vld [vmem:[#allocation5 + $0xf0] sm:$0xff]  ;;  %v4176_v4 = vpop.eup %4175  ;;  %v419_v42 = vadd.f32 1e-06, %v387_v11  ;;  %4183 = vrsqrt.f32 %v420_v39  ;;  %v389_v58 = vmul.f32 0.0078125, %v337_v55  ;;  %v611_v11 = vld [vmem:[#allocation5 + $0x198] sm:$0xff] }
 0x117   : > { %986 = vmatprep.mubr.bf16.mxu0 %v4426_v51  ;;  %1179 = vmatprep.mubr.bf16.mxu1 %v4426_v51  ;;  %v3469_v9 = vcombine.high %v586_v37, %v590_v20  ;;  %v3468_v40 = vcombine.low %v586_v37, %v590_v20  ;;  %v3485_v59 = vcombine.high %v602_v48, %v606_v36  ;;  %v618_v39 = vld [vmem:[#allocation5 + $0x1d0] sm:$0xff] }
 0x118   : > { %1332 = vmatprep.subr.bf16.mxu0 %v3453_v28  ;;  %1525 = vmatprep.subr.bf16.mxu1 %v3455_v29  ;;  %v516_v2 = vmul.f32 %v4825_v46, %v477_v43  ;;  %v599_v28 = vld [vmem:[#allocation5 + $0x138] sm:$0xff]  ;;  %v4178_v29 = vpop.eup %4177  ;;  %4185 = vrsqrt.f32 %v419_v42 }
 0x119   : > { %v479_v53 = vmul.f32 %v4178_v29, %v4677_v13  ;;  %v603_v43 = vld [vmem:[#allocation5 + $0x158] sm:$0xff]  ;;  %v3478_v20 = vcombine.low %v595_v26, %v599_v28 }
 0x11a   : > { %1333 = vmatpush1.bf16.msra.mxu0 %v3452_v1  ;;  %1526 = vmatpush1.bf16.msra.mxu1 %v3454_v5  ;;  %v339_v1 = vpop.xlane.xlu1 %338  ;;  %v3477_v5 = vcombine.high %v594_v8, %v598_v25  ;;  %v4856_v52 = vpack.c.bf16 %v517_v22, %v516_v2  ;;  %v3484_v2 = vcombine.low %v602_v48, %v606_v36  ;;  %v421_v25 = vadd.f32 1e-06, %v389_v58 }
 0x11b   : > { %1334 = vmatprep.subr.bf16.mxu0 %v3461_v47  ;;  %1527 = vmatprep.subr.bf16.mxu1 %v3463_v54  ;;  %v3479_v47 = vcombine.high %v595_v26, %v599_v28  ;;  %v480_v54 = vmul.f32 %v4176_v4, %v4674_v12  ;;  %v390_v37 = vmul.f32 0.0078125, %v339_v1  ;;  %v518_v12 = vmul.f32 %v4825_v46, %v479_v53  ;;  %v614_v4 = vld [vmem:[#allocation5 + $0x1b0] sm:$0xff]  ;;  %v341_v1 = vpop.xlane.xlu0 %340  ;;  %v623_v53 = vld [vmem:[#allocation5 + $0x1f8] sm:$0xff] }
 0x11c   : > { %v3486_v22 = vcombine.low %v603_v43, %v607_v17  ;;  %v3493_v28 = vcombine.high %v610_v0, %v614_v4  ;;  %v391_v36 = vmul.f32 0.0078125, %v341_v1 }
 0x11d   : > { %987 = vmatmul.mubr.bf16.gmra.mrb[4].mxu0 %v4848_v63  ;;  %1180 = vmatmul.mubr.bf16.gmra.mrb[4].mxu1 %v4848_v63  ;;  %v422_v8 = vadd.f32 1e-06, %v390_v37 }
 0x11e   : > { %996 = vmatprep.mubr.bf16.mxu0 %v4426_v51  ;;  %1189 = vmatprep.mubr.bf16.mxu1 %v4426_v51  ;;  %v4180_v13 = vpop.eup %4179  ;;  %v343_v26 = vpop.xlane.xlu1 %342 }
 0x11f   : > { %1335 = vmatpush1.bf16.msra.mxu0 %v3460_v62  ;;  %1528 = vmatpush1.bf16.msra.mxu1 %v3462_v3  ;;  %v3487_v62 = vcombine.high %v603_v43, %v607_v17  ;;  %v519_v3 = vmul.f32 %v4825_v46, %v480_v54  ;;  %v482_v42 = vmul.f32 %v4180_v13, %v4680_v14  ;;  %4187 = vrsqrt.f32 %v422_v8  ;;  %v4099_v13 = vld [vmem:[#allocation7 + $0x40] sm:$0xff]  }
 0x120   : > { %1336 = vmatprep.subr.bf16.mxu0 %v3469_v9  ;;  %1529 = vmatprep.subr.bf16.mxu1 %v3471_v16  ;;  %v615_v9 = vld [vmem:[#allocation5 + $0x1b8] sm:$0xff]  ;;  %v4182_v16 = vpop.eup %4181  ;;  %v392_v48 = vmul.f32 0.0078125, %v343_v26  ;;  %v3492_v54 = vcombine.low %v610_v0, %v614_v4  ;;  %4189 = vrsqrt.f32 %v421_v25 }
 0x121   : > { %v3495_v29 = vcombine.high %v611_v11, %v615_v9  ;;  %v3494_v55 = vcombine.low %v611_v11, %v615_v9  ;;  %v4184_v37 = vpop.eup %4183  ;;  %v345_v9 = vpop.xlane.xlu0 %344 }
 0x122   : > { %v347_v0 = vpop.xlane.xlu1 %346  ;;  %v484_v11 = vmul.f32 %v4184_v37, %v4690_v31  ;;  %v393_v8 = vmul.f32 0.0078125, %v345_v9 }
 0x123   : > { %1337 = vmatpush1.bf16.msra.mxu0 %v3468_v40  ;;  %1530 = vmatpush1.bf16.msra.mxu1 %v3470_v41  ;;  %v4866_v40 = vpack.c.bf16 %v519_v3, %v518_v12  ;;  %v481_v41 = vmul.f32 %v4182_v16, %v4683_v15  ;;  %v521_v15 = vmul.f32 %v4825_v46, %v482_v42  ;;  %v4101_v12 = vld [vmem:[#allocation7 + $0xc0] sm:$0xff]   ;;  %v394_v16 = vmul.f32 0.0078125, %v347_v0 }
 0x124   : > { %1338 = vmatprep.subr.bf16.mxu0 %v3477_v5  ;;  %1531 = vmatprep.subr.bf16.mxu1 %v3479_v47  ;;  %v622_v5 = vld [vmem:[#allocation5 + $0x1f0] sm:$0xff]  ;;  %v619_v47 = vld [vmem:[#allocation5 + $0x1d8] sm:$0xff]  ;;  %v425_v26 = vadd.f32 1e-06, %v393_v8 }
 0x125   : > { %997 = vmatmul.mubr.bf16.gmra.mrb[8].mxu0 %v4856_v52  ;;  %1190 = vmatmul.mubr.bf16.gmra.mrb[8].mxu1 %v4856_v52  ;;  %v3501_v43 = vcombine.high %v618_v39, %v622_v5  ;;  %v3503_v17 = vcombine.high %v619_v47, %v623_v53  ;;  %v520_v14 = vmul.f32 %v4825_v46, %v481_v41  ;;  %v426_v31 = vadd.f32 1e-06, %v394_v16  ;;  %v349_v42 = vpop.xlane.xlu0 %348 }
 0x126   : > { %1006 = vmatprep.mubr.bf16.mxu0 %v4426_v51  ;;  %1199 = vmatprep.mubr.bf16.mxu1 %v4426_v51  ;;  %v3500_v58 = vcombine.low %v618_v39, %v622_v5  ;;  %v395_v5 = vmul.f32 0.0078125, %v349_v42 }
 0x127   : > { %1339 = vmatpush1.bf16.msra.mxu0 %v3476_v18  ;;  %1532 = vmatpush1.bf16.msra.mxu1 %v3478_v20  ;;  %v4186_v18 = vpop.eup %4185  ;;  %v424_v20 = vadd.f32 1e-06, %v392_v48  ;;  %v4876_v3 = vpack.c.bf16 %v521_v15, %v520_v14 }
 0x128   : > { %1340 = vmatprep.subr.bf16.mxu0 %v3485_v59  ;;  %1533 = vmatprep.subr.bf16.mxu1 %v3487_v62  ;;  %v3502_v59 = vcombine.low %v619_v47, %v623_v53  ;;  %v423_v62 = vadd.f32 1e-06, %v391_v36  ;;  %v483_v4 = vmul.f32 %v4186_v18, %v4693_v32  ;;  %v523_v32 = vmul.f32 %v4825_v46, %v484_v11 }
 0x129   : > { %4191 = vrsqrt.f32 %v424_v20  ;;  %v353_v37 = vpop.xlane.xlu0 %352 }
 0x12a   : > { %4193 = vrsqrt.f32 %v423_v62  ;;  %v397_v15 = vmul.f32 0.0078125, %v353_v37 }
 0x12b   : > { %1341 = vmatpush1.bf16.msra.mxu0 %v3484_v2  ;;  %1534 = vmatpush1.bf16.msra.mxu1 %v3486_v22  ;;  %v4188_v2 = vpop.eup %4187  ;;  %v522_v22 = vmul.f32 %v4825_v46, %v483_v4  ;;  %4195 = vrsqrt.f32 %v426_v31 }
 0x12c   : > { %1342 = vmatprep.subr.bf16.mxu0 %v3493_v28  ;;  %1535 = vmatprep.subr.bf16.mxu1 %v3495_v29  ;;  %v4190_v25 = vpop.eup %4189  ;;  %v351_v28 = vpop.xlane.xlu1 %350  ;;  %v486_v41 = vmul.f32 %v4188_v2, %v4700_v44  ;;  %4197 = vrsqrt.f32 %v425_v26 }
 0x12d   : > { %1007 = vmatmul.mubr.bf16.gmra.mrb[12].mxu0 %v4866_v40  ;;  %1200 = vmatmul.mubr.bf16.gmra.mrb[12].mxu1 %v4866_v40  ;;  %v4886_v29 = vpack.c.bf16 %v523_v32, %v522_v22  ;;  %v485_v39 = vmul.f32 %v4190_v25, %v4703_v45  ;;  %v396_v1 = vmul.f32 0.0078125, %v351_v28  ;;  %v427_v45 = vadd.f32 1e-06, %v395_v5  ;;  %v357_v4 = vpop.xlane.xlu0 %356 }
 0x12e   : > { %1016 = vmatprep.mubr.bf16.mxu0 %v4426_v51  ;;  %1209 = vmatprep.mubr.bf16.mxu1 %v4426_v51  ;;  %v525_v48 = vmul.f32 %v4825_v46, %v486_v41  ;;  %v399_v9 = vmul.f32 0.0078125, %v357_v4 }
 0x12f   : > { %1343 = vmatpush1.bf16.msra.mxu0 %v3492_v54  ;;  %1536 = vmatpush1.bf16.msra.mxu1 %v3494_v55  ;;  %v524_v53 = vmul.f32 %v4825_v46, %v485_v39  ;;  %v428_v44 = vadd.f32 1e-06, %v396_v1 }
 0x130   : > { %1344 = vmatprep.subr.bf16.mxu0 %v3501_v43  ;;  %1537 = vmatprep.subr.bf16.mxu1 %v3503_v17  ;;  %v355_v55 = vpop.xlane.xlu1 %354 }
 0x131   : > { %v4896_v36 = vpack.c.bf16 %v525_v48, %v524_v53  ;;  %4199 = vrsqrt.f32 %v428_v44  ;;  %v398_v14 = vmul.f32 0.0078125, %v355_v55  ;;  %v361_v28 = vpop.xlane.xlu0 %360 }
 0x132   : > { %4201 = vrsqrt.f32 %v427_v45  ;;  %v401_v41 = vmul.f32 0.0078125, %v361_v28 }
 0x133   : > { %1345 = vmatpush1.bf16.msra.mxu0 %v3500_v58  ;;  %1538 = vmatpush1.bf16.msra.mxu1 %v3502_v59  ;;  %v4192_v47 = vpop.eup %4191 }
 0x134   : > { %3575 = vmatprep.subr.bf16.mxu0 %v4099_v13  ;;  %3687 = vmatprep.subr.bf16.mxu1 %v4101_v12  ;;  %v4194_v54 = vpop.eup %4193  ;;  %v488_v17 = vmul.f32 %v4192_v47, %v4710_v56  ;;  %v430_v56 = vadd.f32 1e-06, %v398_v14  ;;  %v359_v62 = vpop.xlane.xlu1 %358 }
 0x135   : > { %1017 = vmatmul.mubr.bf16.gmra.mrb[16].mxu0 %v4876_v3  ;;  %1210 = vmatmul.mubr.bf16.gmra.mrb[16].mxu1 %v4876_v3  ;;  %v487_v43 = vmul.f32 %v4194_v54, %v4713_v57  ;;  %v4196_v18 = vpop.eup %4195  ;;  %v429_v57 = vadd.f32 1e-06, %v397_v15  ;;  %v400_v11 = vmul.f32 0.0078125, %v359_v62  ;;  %v365_v45 = vpop.xlane.xlu0 %364 }
 0x136   : > { %1026 = vmatprep.mubr.bf16.mxu0 %v4426_v51  ;;  %1219 = vmatprep.mubr.bf16.mxu1 %v4426_v51  ;;  %v527_v58 = vmul.f32 %v4825_v46, %v488_v17  ;;  %v4198_v59 = vpop.eup %4197  ;;  %v490_v12 = vmul.f32 %v4196_v18, %v4724_v19  ;;  %4203 = vrsqrt.f32 %v430_v56 }
 0x137   : > { %v526_v20 = vmul.f32 %v4825_v46, %v487_v43  ;;  %v489_v13 = vmul.f32 %v4198_v59, %v4727_v21  ;;  %4205 = vrsqrt.f32 %v429_v57  ;;  %v432_v19 = vadd.f32 1e-06, %v400_v11 }
 0x138   : > { %v529_v2 = vmul.f32 %v4825_v46, %v490_v12  ;;  %v431_v21 = vadd.f32 1e-06, %v399_v9  ;;  %v363_v32 = vpop.xlane.xlu1 %362  ;;  %v403_v43 = vmul.f32 0.0078125, %v365_v45 }
 0x139   : > { %v4906_v0 = vpack.c.bf16 %v527_v58, %v526_v20  ;;  %v528_v8 = vmul.f32 %v4825_v46, %v489_v13  ;;  %4207 = vrsqrt.f32 %v432_v19  ;;  %v402_v39 = vmul.f32 0.0078125, %v363_v32  ;;  %v369_v56 = vpop.xlane.xlu0 %368 }
 0x13a   : > { %4209 = vrsqrt.f32 %v431_v21  ;;  %v405_v62 = vmul.f32 0.0078125, %v369_v56  ;;  %v4111_v56 = vld [vmem:[#allocation7 + $0x58] sm:$0xff]  }
 0x13b   : > { %v4200_v16 = vpop.eup %4199  ;;  %v4916_v25 = vpack.c.bf16 %v529_v2, %v528_v8 }
 0x13c   : > { %v4202_v22 = vpop.eup %4201  ;;  %v492_v26 = vmul.f32 %v4200_v16, %v4730_v27  ;;  %v434_v27 = vadd.f32 1e-06, %v402_v39  ;;  %v367_v53 = vpop.xlane.xlu1 %366 }
 0x13d   : > { %1027 = vmatmul.mubr.bf16.gmra.mrb[20].mxu0 %v4886_v29  ;;  %1220 = vmatmul.mubr.bf16.gmra.mrb[20].mxu1 %v4886_v29  ;;  %v491_v31 = vmul.f32 %v4202_v22, %v4737_v35  ;;  %v433_v35 = vadd.f32 1e-06, %v401_v41  ;;  %v404_v55 = vmul.f32 0.0078125, %v367_v53  ;;  %v373_v22 = vpop.xlane.xlu0 %372 }
 0x13e   : > { %1036 = vmatprep.mubr.bf16.mxu0 %v4426_v51  ;;  %1229 = vmatprep.mubr.bf16.mxu1 %v4426_v51  ;;  %v531_v5 = vmul.f32 %v4825_v46, %v492_v26  ;;  %4211 = vrsqrt.f32 %v434_v27  ;;  %v407_v21 = vmul.f32 0.0078125, %v373_v22  ;;  %v4124_v22 = vld [vmem:[#allocation7 + $0x30] sm:$0xff]  }
 0x13f   : > { %v530_v1 = vmul.f32 %v4825_v46, %v491_v31  ;;  %4213 = vrsqrt.f32 %v433_v35 }
 0x140   : > { %v4204_v42 = vpop.eup %4203  ;;  %v371_v18 = vpop.xlane.xlu1 %370 }
 0x141   : > { %v4206_v47 = vpop.eup %4205  ;;  %v4926_v48 = vpack.c.bf16 %v531_v5, %v530_v1  ;;  %v494_v44 = vmul.f32 %v4204_v42, %v4746_v49  ;;  %v436_v49 = vadd.f32 1e-06, %v404_v55  ;;  %v406_v57 = vmul.f32 0.0078125, %v371_v18  ;;  %v4109_v18 = vld [vmem:[#allocation7 + $0xd0] sm:$0xff]  }
 0x142   : > { %v493_v54 = vmul.f32 %v4206_v47, %v4749_v50  ;;  %v435_v50 = vadd.f32 1e-06, %v403_v43 }
 0x143   : > { %v4208_v17 = vpop.eup %4207  ;;  %v533_v14 = vmul.f32 %v4825_v46, %v494_v44  ;;  %4215 = vrsqrt.f32 %v436_v49  ;;  %v4106_v49 = vld [vmem:[#allocation7 + $0x88] sm:$0xff]  }
 0x144   : > { %v532_v37 = vmul.f32 %v4825_v46, %v493_v54  ;;  %v4210_v15 = vpop.eup %4209  ;;  %v496_v59 = vmul.f32 %v4208_v17, %v4758_v60  ;;  %4217 = vrsqrt.f32 %v435_v50  ;;  %v438_v60 = vadd.f32 1e-06, %v406_v57  ;;  %v375_v9 = vpop.xlane.xlu1 %374  ;;  %v4107_v50 = vld [vmem:[#allocation7 + $0x50] sm:$0xff]   ;;  %v4112_v57 = vld [vmem:[#allocation7 + $0x18] sm:$0xff]  }
 0x145   : > { %1037 = vmatmul.mubr.bf16.gmra.mrb[24].mxu0 %v4896_v36  ;;  %1230 = vmatmul.mubr.bf16.gmra.mrb[24].mxu1 %v4896_v36  ;;  %v495_v58 = vmul.f32 %v4210_v15, %v4761_v61  ;;  %v437_v61 = vadd.f32 1e-06, %v405_v62  ;;  %v408_v19 = vmul.f32 0.0078125, %v375_v9  ;;  %v4105_v15 = vld [vmem:[#allocation7 + $0xc8] sm:$0xff]   ;;  %v4114_v62 = vld [vmem:[#allocation7 + $0x98] sm:$0xff]  }
 0x146   : > { %1046 = vmatprep.mubr.bf16.mxu0 %v4426_v51  ;;  %1239 = vmatprep.mubr.bf16.mxu1 %v4426_v51  ;;  %v4936_v20 = vpack.c.bf16 %v533_v14, %v532_v37  ;;  %v535_v4 = vmul.f32 %v4825_v46, %v496_v59  ;;  %4219 = vrsqrt.f32 %v438_v60  ;;  %v4103_v14 = vld [vmem:[#allocation7 + $0x48] sm:$0xff]   ;;  %v4110_v59 = vld [vmem:[#allocation7 + $0x90] sm:$0xff]  }
 0x147   : > { %v534_v12 = vmul.f32 %v4825_v46, %v495_v58  ;;  %4221 = vrsqrt.f32 %v437_v61  ;;  %v4108_v58 = vld [vmem:[#allocation7 + $0x10] sm:$0xff]   ;;  %v4119_v60 = vld [vmem:[#allocation7 + $0x68] sm:$0xff]  }
 0x148   : > { %v4212_v13 = vpop.eup %4211  ;;  %v4120_v61 = vld [vmem:[#allocation7 + $0x28] sm:$0xff]  }
 0x149   : > { %v4214_v11 = vpop.eup %4213  ;;  %v4946_v16 = vpack.c.bf16 %v535_v4, %v534_v12  ;;  %v498_v2 = vmul.f32 %v4212_v13, %v4770_v7  ;;  %v440_v7 = vadd.f32 1e-06, %v408_v19  ;;  %v4115_v13 = vld [vmem:[#allocation7 + $0x60] sm:$0xff]   ;;  %v4122_v9 = vld [vmem:[#allocation7 + $0xa8] sm:$0xff]   ;;  %v4126_v19 = vld [vmem:[#allocation7 + $0xb0] sm:$0xff]  }
 0x14a   : > { %v497_v8 = vmul.f32 %v4214_v11, %v4773_v10  ;;  %v439_v10 = vadd.f32 1e-06, %v407_v21  ;;  %v4117_v12 = vld [vmem:[#allocation7 + $0xe0] sm:$0xff]   ;;  %v4127_v21 = vld [vmem:[#allocation7 + $0x78] sm:$0xff]  }
 0x14b   : > { %v537_v26 = vmul.f32 %v4825_v46, %v498_v2  ;;  %4223 = vrsqrt.f32 %v440_v7  ;;  %v4116_v4 = vld [vmem:[#allocation7 + $0x20] sm:$0xff]   ;;  %v4125_v2 = vld [vmem:[#allocation7 + $0xf0] sm:$0xff]  }
 0x14c   : > { %v536_v31 = vmul.f32 %v4825_v46, %v497_v8  ;;  %4225 = vrsqrt.f32 %v439_v10  ;;  %v4118_v11 = vld [vmem:[#allocation7 + $0xa0] sm:$0xff]   ;;  %v4123_v8 = vld [vmem:[#allocation7 + $0x70] sm:$0xff]  }
 0x14d   : > { %1047 = vmatmul.mubr.bf16.gmra.mrb[28].mxu0 %v4906_v0  ;;  %1240 = vmatmul.mubr.bf16.gmra.mrb[28].mxu1 %v4906_v0  ;;  %v4216_v32 = vpop.eup %4215 }
 0x14e   : > { %1056 = vmatprep.mubr.bf16.mxu0 %v4426_v51  ;;  %1249 = vmatprep.mubr.bf16.mxu1 %v4426_v51  ;;  %v4218_v28 = vpop.eup %4217  ;;  %v4956_v39 = vpack.c.bf16 %v537_v26, %v536_v31  ;;  %v500_v42 = vmul.f32 %v4216_v32, %v4788_v23  ;;  %v4128_v32 = vld [vmem:[#allocation7 + $0x38] sm:$0xff]   ;;  %v4131_v26 = vld [vmem:[#allocation7 + $0x140] sm:$0xff]  }
 0x14f   : > { %v499_v41 = vmul.f32 %v4218_v28, %v4791_v24  ;;  %v4130_v31 = vld [vmem:[#allocation7 + $0xb8] sm:$0xff]   ;;  %v4133_v28 = vld [vmem:[#allocation7 + $0x1c0] sm:$0xff]  }
 0x150   : > { %v4220_v1 = vpop.eup %4219  ;;  %v539_v47 = vmul.f32 %v4825_v46, %v500_v42 }
 0x151   : > { %v538_v5 = vmul.f32 %v4825_v46, %v499_v41  ;;  %v4222_v27 = vpop.eup %4221  ;;  %v502_v24 = vmul.f32 %v4220_v1, %v4802_v30 }
 0x152   : > { %v501_v23 = vmul.f32 %v4222_v27, %v4805_v33 }
 0x153   : > { %v4966_v35 = vpack.c.bf16 %v539_v47, %v538_v5  ;;  %v541_v44 = vmul.f32 %v4825_v46, %v502_v24 }
 0x154   : > { %v540_v54 = vmul.f32 %v4825_v46, %v501_v23 }
 0x155   : > { %1057 = vmatmul.mubr.bf16.gmra.mrb[32].mxu0 %v4916_v25  ;;  %1250 = vmatmul.mubr.bf16.gmra.mrb[32].mxu1 %v4916_v25  ;;  %v4224_v53 = vpop.eup %4223 }
 0x156   : > { %1066 = vmatprep.mubr.bf16.mxu0 %v4426_v51  ;;  %1259 = vmatprep.mubr.bf16.mxu1 %v4426_v51  ;;  %v4226_v45 = vpop.eup %4225  ;;  %v4976_v55 = vpack.c.bf16 %v541_v44, %v540_v54  ;;  %v504_v30 = vmul.f32 %v4224_v53, %v4808_v34  ;;  %v4100_v34 = vld [vmem:[#allocation7] sm:$0xff]  }
 0x157   : > { %v503_v33 = vmul.f32 %v4226_v45, %v4811_v38  ;;  %v4102_v38 = vld [vmem:[#allocation7 + $0x80] sm:$0xff]  }
 0x158   : > { %v543_v17 = vmul.f32 %v4825_v46, %v504_v30 }
 0x159   : > { %v542_v43 = vmul.f32 %v4825_v46, %v503_v33  ;;  %v4104_v46 = vld [vmem:[#allocation7 + $0x8] sm:$0xff]  }
 0x15b   : > { %v4986_v37 = vpack.c.bf16 %v543_v17, %v542_v43 }
 0x15d   : > { %1067 = vmatmul.mubr.bf16.gmra.mrb[36].mxu0 %v4926_v48  ;;  %1260 = vmatmul.mubr.bf16.gmra.mrb[36].mxu1 %v4926_v48 }
 0x15e   : > { %1076 = vmatprep.mubr.bf16.mxu0 %v4426_v51  ;;  %1269 = vmatprep.mubr.bf16.mxu1 %v4426_v51 }
 0x165   : > { %1077 = vmatmul.mubr.bf16.gmra.mrb[40].mxu0 %v4936_v20  ;;  %1270 = vmatmul.mubr.bf16.gmra.mrb[40].mxu1 %v4936_v20 }
 0x166   : > { %1086 = vmatprep.mubr.bf16.mxu0 %v4426_v51  ;;  %1279 = vmatprep.mubr.bf16.mxu1 %v4426_v51 }
 0x16d   : > { %1087 = vmatmul.mubr.bf16.gmra.mrb[44].mxu0 %v4946_v16  ;;  %1280 = vmatmul.mubr.bf16.gmra.mrb[44].mxu1 %v4946_v16 }
 0x16e   : > { %1096 = vmatprep.mubr.bf16.mxu0 %v4426_v51  ;;  %1289 = vmatprep.mubr.bf16.mxu1 %v4426_v51 }
 0x175   : > { %1097 = vmatmul.mubr.bf16.gmra.mrb[48].mxu0 %v4956_v39  ;;  %1290 = vmatmul.mubr.bf16.gmra.mrb[48].mxu1 %v4956_v39 }
 0x176   : > { %1106 = vmatprep.mubr.bf16.mxu0 %v4426_v51  ;;  %1299 = vmatprep.mubr.bf16.mxu1 %v4426_v51 }
 0x17d   : > { %1107 = vmatmul.mubr.bf16.gmra.mrb[52].mxu0 %v4966_v35  ;;  %1300 = vmatmul.mubr.bf16.gmra.mrb[52].mxu1 %v4966_v35 }
 0x17e   : > { %1116 = vmatprep.mubr.bf16.mxu0 %v4426_v51  ;;  %1309 = vmatprep.mubr.bf16.mxu1 %v4426_v51 }
 0x185   : > { %1117 = vmatmul.mubr.bf16.gmra.mrb[56].mxu0 %v4976_v55  ;;  %1310 = vmatmul.mubr.bf16.gmra.mrb[56].mxu1 %v4976_v55 }
 0x186   : > { %1126 = vmatprep.mubr.bf16.mxu0 %v4426_v51  ;;  %1319 = vmatprep.mubr.bf16.mxu1 %v4426_v51 }
 0x18d   : > { %1127 = vmatmul.mubr.bf16.gmra.mrb[60].mxu0 %v4986_v37  ;;  %1320 = vmatmul.mubr.bf16.gmra.mrb[60].mxu1 %v4986_v37 }
 0x18e   : > { %1362 = vmatprep.mubr.bf16.mxu0 %v4426_v51  ;;  %1555 = vmatprep.mubr.bf16.mxu1 %v4426_v51 }
 0x195   : > { %1363 = vmatmul.mubr.bf16.vlgmr.msra.gmra.mrb[64].mxu0 %v4830_v6  ;;  %1556 = vmatmul.mubr.bf16.vlgmr.msra.gmra.mrb[64].mxu1 %v4830_v6  ;;  %v4113_v6 = vld [vmem:[#allocation7 + $0xd8] sm:$0xff]  }
 0x196   : > { %3576 = vmatpush3.bf16.msra.mxu0 %v4100_v34  ;;  %3688 = vmatpush3.bf16.msra.mxu1 %v4102_v38 }
 0x197   : > { %1372 = vmatprep.mubr.bf16.mxu0 %v4426_v51  ;;  %1565 = vmatprep.mubr.bf16.mxu1 %v4426_v51 }
 0x198   : > { %3577 = vmatprep.subr.bf16.mxu0 %v4103_v14  ;;  %3689 = vmatprep.subr.bf16.mxu1 %v4105_v15 }
 0x19a   : > { %3578 = vmatpush3.bf16.msra.mxu0 %v4104_v46  ;;  %3690 = vmatpush3.bf16.msra.mxu1 %v4106_v49 }
 0x19b   : > { %3579 = vmatprep.subr.bf16.mxu0 %v4107_v50  ;;  %3691 = vmatprep.subr.bf16.mxu1 %v4109_v18 }
 0x19d   : > { %1373 = vmatmul.mubr.bf16.gmra.mrb[68].mxu0 %v4848_v63  ;;  %1566 = vmatmul.mubr.bf16.gmra.mrb[68].mxu1 %v4848_v63  ;;  %v4121_v63 = vld [vmem:[#allocation7 + $0xe8] sm:$0xff]  }
 0x19e   : > { %1382 = vmatprep.mubr.bf16.mxu0 %v4426_v51  ;;  %1575 = vmatprep.mubr.bf16.mxu1 %v4426_v51 }
 0x19f   : > { %3580 = vmatpush3.bf16.msra.mxu0 %v4108_v58  ;;  %3692 = vmatpush3.bf16.msra.mxu1 %v4110_v59 }
 0x1a0   : > { %3581 = vmatprep.subr.bf16.mxu0 %v4111_v56  ;;  %3693 = vmatprep.subr.bf16.mxu1 %v4113_v6 }
 0x1a3   : > { %3582 = vmatpush3.bf16.msra.mxu0 %v4112_v57  ;;  %3694 = vmatpush3.bf16.msra.mxu1 %v4114_v62 }
 0x1a4   : > { %3583 = vmatprep.subr.bf16.mxu0 %v4115_v13  ;;  %3695 = vmatprep.subr.bf16.mxu1 %v4117_v12 }
 0x1a5   : > { %1383 = vmatmul.mubr.bf16.gmra.mrb[72].mxu0 %v4856_v52  ;;  %1576 = vmatmul.mubr.bf16.gmra.mrb[72].mxu1 %v4856_v52  ;;  %v4129_v52 = vld [vmem:[#allocation7 + $0xf8] sm:$0xff]  }
 0x1a6   : > { %1392 = vmatprep.mubr.bf16.mxu0 %v4426_v51  ;;  %1585 = vmatprep.mubr.bf16.mxu1 %v4426_v51 }
 0x1a7   : > { %3584 = vmatpush3.bf16.msra.mxu0 %v4116_v4  ;;  %3696 = vmatpush3.bf16.msra.mxu1 %v4118_v11 }
 0x1a8   : > { %3585 = vmatprep.subr.bf16.mxu0 %v4119_v60  ;;  %3697 = vmatprep.subr.bf16.mxu1 %v4121_v63 }
 0x1ab   : > { %3586 = vmatpush3.bf16.msra.mxu0 %v4120_v61  ;;  %3698 = vmatpush3.bf16.msra.mxu1 %v4122_v9 }
 0x1ac   : > { %3587 = vmatprep.subr.bf16.mxu0 %v4123_v8  ;;  %3699 = vmatprep.subr.bf16.mxu1 %v4125_v2 }
 0x1ad   : > { %1393 = vmatmul.mubr.bf16.gmra.mrb[76].mxu0 %v4866_v40  ;;  %1586 = vmatmul.mubr.bf16.gmra.mrb[76].mxu1 %v4866_v40 }
 0x1ae   : > { %1402 = vmatprep.mubr.bf16.mxu0 %v4426_v51  ;;  %1595 = vmatprep.mubr.bf16.mxu1 %v4426_v51 }
 0x1af   : > { %3588 = vmatpush3.bf16.msra.mxu0 %v4124_v22  ;;  %3700 = vmatpush3.bf16.msra.mxu1 %v4126_v19 }
 0x1b0   : > { %3589 = vmatprep.subr.bf16.mxu0 %v4127_v21  ;;  %3701 = vmatprep.subr.bf16.mxu1 %v4129_v52 }
 0x1b3   : > { %3590 = vmatpush3.bf16.msra.mxu0 %v4128_v32  ;;  %3702 = vmatpush3.bf16.msra.mxu1 %v4130_v31 }
 0x1b4   : > { %3799 = vmatprep.subr.bf16.mxu0 %v4131_v26  ;;  %3911 = vmatprep.subr.bf16.mxu1 %v4133_v28 }
 0x1b5   : > { %1403 = vmatmul.mubr.bf16.gmra.mrb[80].mxu0 %v4876_v3  ;;  %1596 = vmatmul.mubr.bf16.gmra.mrb[80].mxu1 %v4876_v3 }
 0x1b6   : > { %1412 = vmatprep.mubr.bf16.mxu0 %v4426_v51  ;;  %1605 = vmatprep.mubr.bf16.mxu1 %v4426_v51 }
 0x1bd   : > { %1413 = vmatmul.mubr.bf16.gmra.mrb[84].mxu0 %v4886_v29  ;;  %1606 = vmatmul.mubr.bf16.gmra.mrb[84].mxu1 %v4886_v29 }
 0x1be   : > { %1422 = vmatprep.mubr.bf16.mxu0 %v4426_v51  ;;  %1615 = vmatprep.mubr.bf16.mxu1 %v4426_v51 }
 0x1c5   : > { %1423 = vmatmul.mubr.bf16.gmra.mrb[88].mxu0 %v4896_v36  ;;  %1616 = vmatmul.mubr.bf16.gmra.mrb[88].mxu1 %v4896_v36 }
 0x1c6   : > { %1432 = vmatprep.mubr.bf16.mxu0 %v4426_v51  ;;  %1625 = vmatprep.mubr.bf16.mxu1 %v4426_v51 }
 0x1cd   : > { %1433 = vmatmul.mubr.bf16.gmra.mrb[92].mxu0 %v4906_v0  ;;  %1626 = vmatmul.mubr.bf16.gmra.mrb[92].mxu1 %v4906_v0 }
 0x1ce   : > { %1442 = vmatprep.mubr.bf16.mxu0 %v4426_v51  ;;  %1635 = vmatprep.mubr.bf16.mxu1 %v4426_v51 }
 0x1d5   : > { %1443 = vmatmul.mubr.bf16.gmra.mrb[96].mxu0 %v4916_v25  ;;  %1636 = vmatmul.mubr.bf16.gmra.mrb[96].mxu1 %v4916_v25 }
 0x1d6   : > { %1452 = vmatprep.mubr.bf16.mxu0 %v4426_v51  ;;  %1645 = vmatprep.mubr.bf16.mxu1 %v4426_v51 }
 0x1dd   : > { %1453 = vmatmul.mubr.bf16.gmra.mrb[100].mxu0 %v4926_v48  ;;  %1646 = vmatmul.mubr.bf16.gmra.mrb[100].mxu1 %v4926_v48 }
 0x1de   : > { %1462 = vmatprep.mubr.bf16.mxu0 %v4426_v51  ;;  %1655 = vmatprep.mubr.bf16.mxu1 %v4426_v51 }
 0x1e5   : > { %1463 = vmatmul.mubr.bf16.gmra.mrb[104].mxu0 %v4936_v20  ;;  %1656 = vmatmul.mubr.bf16.gmra.mrb[104].mxu1 %v4936_v20 }
 0x1e6   : > { %1472 = vmatprep.mubr.bf16.mxu0 %v4426_v51  ;;  %1665 = vmatprep.mubr.bf16.mxu1 %v4426_v51 }
 0x1e8   : > { %v978_v40 = vpop.f32.mrb[0].mxu0  ;;  %v1171_v3 = vpop.f32.mrb[0].mxu1 }
 0x1e9   : > { %v980_v29 = vpop.f32.mrb[1].mxu0  ;;  %v1173_v36 = vpop.f32.mrb[1].mxu1  ;;  %v1716_v7 = vmax.f32 %v978_v40, 0.0  ;;  %v1718_v48 = vmax.f32 %v1171_v3, 0.0 }
 0x1ea   : > { %v982_v0 = vpop.f32.mrb[2].mxu0  ;;  %v1175_v25 = vpop.f32.mrb[2].mxu1  ;;  %v1717_v5 = vmax.f32 %v980_v29, 0.0  ;;  %v1719_v47 = vmax.f32 %v1173_v36, 0.0 }
 0x1eb   : > { %v1724_v10 = vmax.f32 %v982_v0, 0.0  ;;  %v1726_v41 = vmax.f32 %v1175_v25, 0.0  ;;  %v984_v42 = vpop.f32.mrb[3].mxu0  ;;  %v1177_v1 = vpop.f32.mrb[3].mxu1 }
 0x1ec   : > { %v1725_v27 = vmax.f32 %v984_v42, 0.0  ;;  %v1727_v20 = vmax.f32 %v1177_v1, 0.0 }
 0x1ed   : > { %v5036_v23 = vpack.c.bf16 %v1724_v10, %v1716_v7  ;;  %v5038_v24 = vpack.c.bf16 %v1726_v41, %v1718_v48  ;;  %1473 = vmatmul.mubr.bf16.gmra.mrb[108].mxu0 %v4946_v16  ;;  %1666 = vmatmul.mubr.bf16.gmra.mrb[108].mxu1 %v4946_v16 }
 0x1ee   : > { %v5042_v53 = vpack.c.bf16 %v1725_v27, %v1717_v5  ;;  %v5044_v54 = vpack.c.bf16 %v1727_v20, %v1719_v47  ;;  %1482 = vmatprep.mubr.bf16.mxu0 %v4426_v51  ;;  %1675 = vmatprep.mubr.bf16.mxu1 %v4426_v51 }
 0x1f0   : > { %v988_v44 = vpop.f32.mrb[4].mxu0  ;;  %v1181_v45 = vpop.f32.mrb[4].mxu1 }
 0x1f1   : > { %v990_v33 = vpop.f32.mrb[5].mxu0  ;;  %v1183_v30 = vpop.f32.mrb[5].mxu1  ;;  %v1732_v34 = vmax.f32 %v988_v44, 0.0  ;;  %v1734_v38 = vmax.f32 %v1181_v45, 0.0 }
 0x1f2   : > { %v992_v43 = vpop.f32.mrb[6].mxu0  ;;  %v1185_v17 = vpop.f32.mrb[6].mxu1  ;;  %v1733_v49 = vmax.f32 %v990_v33, 0.0  ;;  %v1735_v50 = vmax.f32 %v1183_v30, 0.0 }
 0x1f3   : > { %v1740_v14 = vmax.f32 %v992_v43, 0.0  ;;  %v1742_v15 = vmax.f32 %v1185_v17, 0.0  ;;  %v994_v46 = vpop.f32.mrb[7].mxu0  ;;  %v1187_v16 = vpop.f32.mrb[7].mxu1 }
 0x1f4   : > { %v1741_v18 = vmax.f32 %v994_v46, 0.0  ;;  %v1743_v58 = vmax.f32 %v1187_v16, 0.0 }
 0x1f5   : > { %v5048_v59 = vpack.c.bf16 %v1740_v14, %v1732_v34  ;;  %v5050_v56 = vpack.c.bf16 %v1742_v15, %v1734_v38  ;;  %1483 = vmatmul.mubr.bf16.gmra.mrb[112].mxu0 %v4956_v39  ;;  %1676 = vmatmul.mubr.bf16.gmra.mrb[112].mxu1 %v4956_v39 }
 0x1f6   : > { %v5054_v6 = vpack.c.bf16 %v1741_v18, %v1733_v49  ;;  %v5056_v57 = vpack.c.bf16 %v1743_v58, %v1735_v50  ;;  %1492 = vmatprep.mubr.bf16.mxu0 %v4426_v51  ;;  %1685 = vmatprep.mubr.bf16.mxu1 %v4426_v51 }
 0x1f8   : > { %v998_v62 = vpop.f32.mrb[8].mxu0  ;;  %v1191_v13 = vpop.f32.mrb[8].mxu1 }
 0x1f9   : > { %v1000_v12 = vpop.f32.mrb[9].mxu0  ;;  %v1193_v4 = vpop.f32.mrb[9].mxu1  ;;  %v1748_v63 = vmax.f32 %v998_v62, 0.0  ;;  %v1750_v61 = vmax.f32 %v1191_v13, 0.0 }
 0x1fa   : > { %v1002_v11 = vpop.f32.mrb[10].mxu0  ;;  %v1195_v60 = vpop.f32.mrb[10].mxu1  ;;  %v1749_v22 = vmax.f32 %v1000_v12, 0.0  ;;  %v1751_v19 = vmax.f32 %v1193_v4, 0.0 }
 0x1fb   : > { %v1756_v9 = vmax.f32 %v1002_v11, 0.0  ;;  %v1758_v8 = vmax.f32 %v1195_v60, 0.0  ;;  %v1004_v2 = vpop.f32.mrb[11].mxu0  ;;  %v1197_v39 = vpop.f32.mrb[11].mxu1 }
 0x1fc   : > { %v1757_v21 = vmax.f32 %v1004_v2, 0.0  ;;  %v1759_v52 = vmax.f32 %v1197_v39, 0.0  ;;  %v4132_v39 = vld [vmem:[#allocation7 + $0x100] sm:$0xff]  }
 0x1fd   : > { %v5060_v32 = vpack.c.bf16 %v1756_v9, %v1748_v63  ;;  %v5062_v31 = vpack.c.bf16 %v1758_v8, %v1750_v61  ;;  %1493 = vmatmul.mubr.bf16.gmra.mrb[116].mxu0 %v4966_v35  ;;  %1686 = vmatmul.mubr.bf16.gmra.mrb[116].mxu1 %v4966_v35 }
 0x1fe   : > { %v5066_v26 = vpack.c.bf16 %v1757_v21, %v1749_v22  ;;  %v5068_v28 = vpack.c.bf16 %v1759_v52, %v1751_v19  ;;  %1502 = vmatprep.mubr.bf16.mxu0 %v4426_v51  ;;  %1695 = vmatprep.mubr.bf16.mxu1 %v4426_v51  ;;  %v4134_v22 = vld [vmem:[#allocation7 + $0x180] sm:$0xff]  }
 0x200   : > { %v1008_v40 = vpop.f32.mrb[12].mxu0  ;;  %v1201_v3 = vpop.f32.mrb[12].mxu1 }
 0x201   : > { %v1010_v29 = vpop.f32.mrb[13].mxu0  ;;  %v1203_v36 = vpop.f32.mrb[13].mxu1  ;;  %v1764_v7 = vmax.f32 %v1008_v40, 0.0  ;;  %v1766_v48 = vmax.f32 %v1201_v3, 0.0 }
 0x202   : > { %v1012_v0 = vpop.f32.mrb[14].mxu0  ;;  %v1205_v25 = vpop.f32.mrb[14].mxu1  ;;  %v1765_v1 = vmax.f32 %v1010_v29, 0.0  ;;  %v1767_v5 = vmax.f32 %v1203_v36, 0.0 }
 0x203   : > { %v1772_v10 = vmax.f32 %v1012_v0, 0.0  ;;  %v1774_v41 = vmax.f32 %v1205_v25, 0.0  ;;  %v1014_v42 = vpop.f32.mrb[15].mxu0  ;;  %v1207_v35 = vpop.f32.mrb[15].mxu1  ;;  %v4135_v25 = vld [vmem:[#allocation7 + $0x148] sm:$0xff]  }
 0x204   : > { %v1773_v47 = vmax.f32 %v1014_v42, 0.0  ;;  %v1775_v27 = vmax.f32 %v1207_v35, 0.0  ;;  %v4136_v42 = vld [vmem:[#allocation7 + $0x108] sm:$0xff]  }
 0x205   : > { %v5072_v20 = vpack.c.bf16 %v1772_v10, %v1764_v7  ;;  %v5074_v44 = vpack.c.bf16 %v1774_v41, %v1766_v48  ;;  %1503 = vmatmul.mubr.bf16.gmra.mrb[120].mxu0 %v4976_v55  ;;  %1696 = vmatmul.mubr.bf16.gmra.mrb[120].mxu1 %v4976_v55  ;;  %v4138_v35 = vld [vmem:[#allocation7 + $0x188] sm:$0xff]  }
 0x206   : > { %v5078_v45 = vpack.c.bf16 %v1773_v47, %v1765_v1  ;;  %v5080_v33 = vpack.c.bf16 %v1775_v27, %v1767_v5  ;;  %1512 = vmatprep.mubr.bf16.mxu0 %v4426_v51  ;;  %1705 = vmatprep.mubr.bf16.mxu1 %v4426_v51  ;;  %v4139_v1 = vld [vmem:[#allocation7 + $0x150] sm:$0xff]  }
 0x208   : > { %v1018_v30 = vpop.f32.mrb[16].mxu0  ;;  %v1211_v43 = vpop.f32.mrb[16].mxu1 }
 0x209   : > { %v1020_v17 = vpop.f32.mrb[17].mxu0  ;;  %v1213_v34 = vpop.f32.mrb[17].mxu1  ;;  %v1780_v15 = vmax.f32 %v1018_v30, 0.0  ;;  %v1782_v46 = vmax.f32 %v1211_v43, 0.0 }
 0x20a   : > { %v1022_v38 = vpop.f32.mrb[18].mxu0  ;;  %v1215_v14 = vpop.f32.mrb[18].mxu1  ;;  %v1781_v18 = vmax.f32 %v1020_v17, 0.0  ;;  %v1783_v58 = vmax.f32 %v1213_v34, 0.0  ;;  %v4140_v17 = vld [vmem:[#allocation7 + $0x110] sm:$0xff]  }
 0x20b   : > { %v1788_v16 = vmax.f32 %v1022_v38, 0.0  ;;  %v1790_v49 = vmax.f32 %v1215_v14, 0.0  ;;  %v1024_v50 = vpop.f32.mrb[19].mxu0  ;;  %v1217_v55 = vpop.f32.mrb[19].mxu1  ;;  %v4142_v34 = vld [vmem:[#allocation7 + $0x190] sm:$0xff]  }
 0x20c   : > { %v1789_v62 = vmax.f32 %v1024_v50, 0.0  ;;  %v1791_v13 = vmax.f32 %v1217_v55, 0.0 }
 0x20d   : > { %v5084_v12 = vpack.c.bf16 %v1788_v16, %v1780_v15  ;;  %v5086_v4 = vpack.c.bf16 %v1790_v49, %v1782_v46  ;;  %1513 = vmatmul.mubr.bf16.gmra.mrb[124].mxu0 %v4986_v37  ;;  %1706 = vmatmul.mubr.bf16.gmra.mrb[124].mxu1 %v4986_v37 }
 0x20e   : > { %v5090_v51 = vpack.c.bf16 %v1789_v62, %v1781_v18  ;;  %v5092_v11 = vpack.c.bf16 %v1791_v13, %v1783_v58  ;;  %2644 = vmatprep.mubr.bf16.mxu0 %v5042_v53  ;;  %2805 = vmatprep.mubr.bf16.mxu1 %v5044_v54  ;;  %v4137_v54 = vld [vmem:[#allocation7 + $0x1c8] sm:$0xff]   ;;  %v4143_v18 = vld [vmem:[#allocation7 + $0x158] sm:$0xff]  }
 0x20f   : > { %v4145_v58 = vld [vmem:[#allocation7 + $0x1d8] sm:$0xff]  }
 0x210   : > { %v1028_v60 = vpop.f32.mrb[20].mxu0  ;;  %v1221_v63 = vpop.f32.mrb[20].mxu1 }
 0x211   : > { %v1030_v61 = vpop.f32.mrb[21].mxu0  ;;  %v1223_v9 = vpop.f32.mrb[21].mxu1  ;;  %v1796_v19 = vmax.f32 %v1028_v60, 0.0  ;;  %v1798_v21 = vmax.f32 %v1221_v63, 0.0 }
 0x212   : > { %v1032_v8 = vpop.f32.mrb[22].mxu0  ;;  %v1225_v2 = vpop.f32.mrb[22].mxu1  ;;  %v1797_v29 = vmax.f32 %v1030_v61, 0.0  ;;  %v1799_v36 = vmax.f32 %v1223_v9, 0.0  ;;  %v4144_v61 = vld [vmem:[#allocation7 + $0x118] sm:$0xff]  }
 0x213   : > { %v1804_v52 = vmax.f32 %v1032_v8, 0.0  ;;  %v1806_v37 = vmax.f32 %v1225_v2, 0.0  ;;  %v1034_v40 = vpop.f32.mrb[23].mxu0  ;;  %v1227_v3 = vpop.f32.mrb[23].mxu1  ;;  %v4146_v9 = vld [vmem:[#allocation7 + $0x198] sm:$0xff]  }
 0x214   : > { %v1805_v0 = vmax.f32 %v1034_v40, 0.0  ;;  %v1807_v53 = vmax.f32 %v1227_v3, 0.0 }
 0x215   : > { %v5096_v7 = vpack.c.bf16 %v1804_v52, %v1796_v19  ;;  %v5098_v48 = vpack.c.bf16 %v1806_v37, %v1798_v21  ;;  %2645 = vmatmul.mubr.bf16.vlgmr.msra.gmra.mrb[128].mxu0 %v5036_v23  ;;  %2806 = vmatmul.mubr.bf16.vlgmr.msra.gmra.mrb[128].mxu1 %v5038_v24  ;;  %v4141_v23 = vld [vmem:[#allocation7 + $0x1d0] sm:$0xff]   ;;  %v4148_v52 = vld [vmem:[#allocation7 + $0x120] sm:$0xff]  }
 0x216   : > { %v5102_v10 = vpack.c.bf16 %v1805_v0, %v1797_v29  ;;  %v5104_v41 = vpack.c.bf16 %v1807_v53, %v1799_v36  ;;  %3800 = vmatpush3.bf16.msra.mxu0 %v4132_v39  ;;  %2652 = vmatprep.mubr.bf16.mxu0 %v5054_v6  ;;  %v4147_v39 = vld [vmem:[#allocation7 + $0x160] sm:$0xff]  }
 0x217   : > { %2813 = vmatprep.mubr.bf16.mxu1 %v5056_v57  ;;  %3912 = vmatpush3.bf16.msra.mxu1 %v4134_v22  ;;  %v4150_v37 = vld [vmem:[#allocation7 + $0x1a0] sm:$0xff]  }
 0x218   : > { %v1038_v5 = vpop.f32.mrb[24].mxu0  ;;  %v1231_v47 = vpop.f32.mrb[24].mxu1  ;;  %3801 = vmatprep.subr.bf16.mxu0 %v4135_v25  ;;  %3913 = vmatprep.subr.bf16.mxu1 %v4137_v54 }
 0x219   : > { %v1040_v27 = vpop.f32.mrb[25].mxu0  ;;  %v1233_v24 = vpop.f32.mrb[25].mxu1  ;;  %v1812_v38 = vmax.f32 %v1038_v5, 0.0  ;;  %v1814_v6 = vmax.f32 %v1231_v47, 0.0 }
 0x21a   : > { %v1042_v30 = vpop.f32.mrb[26].mxu0  ;;  %v1235_v43 = vpop.f32.mrb[26].mxu1  ;;  %3802 = vmatpush3.bf16.msra.mxu0 %v4136_v42  ;;  %v1813_v16 = vmax.f32 %v1040_v27, 0.0  ;;  %v1815_v49 = vmax.f32 %v1233_v24, 0.0  ;;  %v4151_v42 = vld [vmem:[#allocation7 + $0x168] sm:$0xff]  }
 0x21b   : > { %v1820_v14 = vmax.f32 %v1042_v30, 0.0  ;;  %v1822_v15 = vmax.f32 %v1235_v43, 0.0  ;;  %v1044_v57 = vpop.f32.mrb[27].mxu0  ;;  %v1237_v46 = vpop.f32.mrb[27].mxu1  ;;  %3914 = vmatpush3.bf16.msra.mxu1 %v4138_v35  ;;  %3803 = vmatprep.subr.bf16.mxu0 %v4139_v1  ;;  %v4153_v35 = vld [vmem:[#allocation7 + $0x1e8] sm:$0xff]  }
 0x21c   : > { %v1821_v50 = vmax.f32 %v1044_v57, 0.0  ;;  %v1823_v55 = vmax.f32 %v1237_v46, 0.0  ;;  %3915 = vmatprep.subr.bf16.mxu1 %v4141_v23  ;;  %v4152_v27 = vld [vmem:[#allocation7 + $0x128] sm:$0xff]  }
 0x21d   : > { %v5108_v62 = vpack.c.bf16 %v1820_v14, %v1812_v38  ;;  %v5110_v13 = vpack.c.bf16 %v1822_v15, %v1814_v6  ;;  %2653 = vmatmul.mubr.bf16.gmra.mrb[132].mxu0 %v5048_v59  ;;  %2814 = vmatmul.mubr.bf16.gmra.mrb[132].mxu1 %v5050_v56  ;;  %v4149_v59 = vld [vmem:[#allocation7 + $0x1e0] sm:$0xff]   ;;  %v4154_v24 = vld [vmem:[#allocation7 + $0x1a8] sm:$0xff]   ;;  %v4156_v14 = vld [vmem:[#allocation7 + $0x130] sm:$0xff]  }
 0x21e   : > { %v5114_v60 = vpack.c.bf16 %v1821_v50, %v1813_v16  ;;  %v5116_v63 = vpack.c.bf16 %v1823_v55, %v1815_v49  ;;  %2660 = vmatprep.mubr.bf16.mxu0 %v5066_v26  ;;  %2821 = vmatprep.mubr.bf16.mxu1 %v5068_v28  ;;  %v4158_v15 = vld [vmem:[#allocation7 + $0x1b0] sm:$0xff]  }
 0x21f   : > { %3804 = vmatpush3.bf16.msra.mxu0 %v4140_v17  ;;  %3916 = vmatpush3.bf16.msra.mxu1 %v4142_v34  ;;  %v4155_v17 = vld [vmem:[#allocation7 + $0x170] sm:$0xff]  }
 0x220   : > { %v1048_v8 = vpop.f32.mrb[28].mxu0  ;;  %v1241_v2 = vpop.f32.mrb[28].mxu1  ;;  %3805 = vmatprep.subr.bf16.mxu0 %v4143_v18  ;;  %3917 = vmatprep.subr.bf16.mxu1 %v4145_v58 }
 0x221   : > { %v1050_v22 = vpop.f32.mrb[29].mxu0  ;;  %v1243_v56 = vpop.f32.mrb[29].mxu1  ;;  %v1828_v40 = vmax.f32 %v1048_v8, 0.0  ;;  %v1830_v26 = vmax.f32 %v1241_v2, 0.0 }
 0x222   : > { %v1052_v19 = vpop.f32.mrb[30].mxu0  ;;  %v1245_v21 = vpop.f32.mrb[30].mxu1  ;;  %v1829_v0 = vmax.f32 %v1050_v22, 0.0  ;;  %v1831_v53 = vmax.f32 %v1243_v56, 0.0  ;;  %v4160_v22 = vld [vmem:[#allocation7 + $0x138] sm:$0xff]  }
 0x223   : > { %v1836_v3 = vmax.f32 %v1052_v19, 0.0  ;;  %v1838_v28 = vmax.f32 %v1245_v21, 0.0  ;;  %v1054_v29 = vpop.f32.mrb[31].mxu0  ;;  %v1247_v36 = vpop.f32.mrb[31].mxu1  ;;  %3806 = vmatpush3.bf16.msra.mxu0 %v4144_v61  ;;  %3918 = vmatpush3.bf16.msra.mxu1 %v4146_v9  ;;  %v4159_v61 = vld [vmem:[#allocation7 + $0x178] sm:$0xff]  }
 0x224   : > { %v1837_v25 = vmax.f32 %v1054_v29, 0.0  ;;  %v1839_v54 = vmax.f32 %v1247_v36, 0.0  ;;  %3807 = vmatprep.subr.bf16.mxu0 %v4147_v39  ;;  %3919 = vmatprep.subr.bf16.mxu1 %v4149_v59  ;;  %v4161_v9 = vld [vmem:[#allocation7 + $0x1f8] sm:$0xff]  }
 0x225   : > { %v5120_v1 = vpack.c.bf16 %v1836_v3, %v1828_v40  ;;  %v5122_v5 = vpack.c.bf16 %v1838_v28, %v1830_v26  ;;  %2661 = vmatmul.mubr.bf16.gmra.mrb[136].mxu0 %v5060_v32  ;;  %2822 = vmatmul.mubr.bf16.gmra.mrb[136].mxu1 %v5062_v31  ;;  %v4157_v32 = vld [vmem:[#allocation7 + $0x1f0] sm:$0xff]   ;;  %v4162_v56 = vld [vmem:[#allocation7 + $0x1b8] sm:$0xff]  }
 0x226   : > { %v5126_v47 = vpack.c.bf16 %v1837_v25, %v1829_v0  ;;  %v5128_v23 = vpack.c.bf16 %v1839_v54, %v1831_v53  ;;  %2668 = vmatprep.mubr.bf16.mxu0 %v5078_v45  ;;  %2829 = vmatprep.mubr.bf16.mxu1 %v5080_v33 }
 0x227   : > { %3808 = vmatpush3.bf16.msra.mxu0 %v4148_v52  ;;  %3920 = vmatpush3.bf16.msra.mxu1 %v4150_v37 }
 0x228   : > { %v1058_v30 = vpop.f32.mrb[32].mxu0  ;;  %v1251_v43 = vpop.f32.mrb[32].mxu1  ;;  %3809 = vmatprep.subr.bf16.mxu0 %v4151_v42  ;;  %3921 = vmatprep.subr.bf16.mxu1 %v4153_v35 }
 0x229   : > { %v1060_v34 = vpop.f32.mrb[33].mxu0  ;;  %v1253_v31 = vpop.f32.mrb[33].mxu1  ;;  %v1844_v57 = vmax.f32 %v1058_v30, 0.0  ;;  %v1846_v45 = vmax.f32 %v1251_v43, 0.0 }
 0x22a   : > { %v1062_v38 = vpop.f32.mrb[34].mxu0  ;;  %v1255_v6 = vpop.f32.mrb[34].mxu1  ;;  %v1845_v50 = vmax.f32 %v1060_v34, 0.0  ;;  %v1847_v55 = vmax.f32 %v1253_v31, 0.0 }
 0x22b   : > { %v1852_v46 = vmax.f32 %v1062_v38, 0.0  ;;  %v1854_v33 = vmax.f32 %v1255_v6, 0.0  ;;  %v1064_v16 = vpop.f32.mrb[35].mxu0  ;;  %v1257_v49 = vpop.f32.mrb[35].mxu1  ;;  %3810 = vmatpush3.bf16.msra.mxu0 %v4152_v27  ;;  %3922 = vmatpush3.bf16.msra.mxu1 %v4154_v24 }
 0x22c   : > { %v1853_v18 = vmax.f32 %v1064_v16, 0.0  ;;  %v1855_v58 = vmax.f32 %v1257_v49, 0.0  ;;  %3811 = vmatprep.subr.bf16.mxu0 %v4155_v17  ;;  %3923 = vmatprep.subr.bf16.mxu1 %v4157_v32 }
 0x22d   : > { %v5132_v8 = vpack.c.bf16 %v1852_v46, %v1844_v57  ;;  %v5134_v2 = vpack.c.bf16 %v1854_v33, %v1846_v45  ;;  %2669 = vmatmul.mubr.bf16.gmra.mrb[140].mxu0 %v5072_v20  ;;  %2830 = vmatmul.mubr.bf16.gmra.mrb[140].mxu1 %v5074_v44 }
 0x22e   : > { %v5138_v39 = vpack.c.bf16 %v1853_v18, %v1845_v50  ;;  %v5140_v59 = vpack.c.bf16 %v1855_v58, %v1847_v55  ;;  %2676 = vmatprep.mubr.bf16.mxu0 %v5090_v51  ;;  %2837 = vmatprep.mubr.bf16.mxu1 %v5092_v11 }
 0x22f   : > { %3812 = vmatpush3.bf16.msra.mxu0 %v4156_v14  ;;  %3924 = vmatpush3.bf16.msra.mxu1 %v4158_v15 }
 0x230   : > { %v1068_v19 = vpop.f32.mrb[36].mxu0  ;;  %v1261_v21 = vpop.f32.mrb[36].mxu1  ;;  %3813 = vmatprep.subr.bf16.mxu0 %v4159_v61  ;;  %3925 = vmatprep.subr.bf16.mxu1 %v4161_v9 }
 0x231   : > { %v1070_v52 = vpop.f32.mrb[37].mxu0  ;;  %v1263_v20 = vpop.f32.mrb[37].mxu1  ;;  %v1860_v40 = vmax.f32 %v1068_v19, 0.0  ;;  %v1862_v26 = vmax.f32 %v1261_v21, 0.0 }
 0x232   : > { %v1072_v37 = vpop.f32.mrb[38].mxu0  ;;  %v1265_v44 = vpop.f32.mrb[38].mxu1  ;;  %v1861_v11 = vmax.f32 %v1070_v52, 0.0  ;;  %v1863_v36 = vmax.f32 %v1263_v20, 0.0 }
 0x233   : > { %v1868_v3 = vmax.f32 %v1072_v37, 0.0  ;;  %v1870_v28 = vmax.f32 %v1265_v44, 0.0  ;;  %v1074_v29 = vpop.f32.mrb[39].mxu0  ;;  %v1267_v51 = vpop.f32.mrb[39].mxu1  ;;  %3814 = vmatpush3.bf16.msra.mxu0 %v4160_v22  ;;  %3926 = vmatpush3.bf16.msra.mxu1 %v4162_v56 }
 0x234   : > { %v1869_v0 = vmax.f32 %v1074_v29, 0.0  ;;  %v1871_v53 = vmax.f32 %v1267_v51, 0.0 }
 0x235   : > { %v5144_v25 = vpack.c.bf16 %v1868_v3, %v1860_v40  ;;  %v5146_v54 = vpack.c.bf16 %v1870_v28, %v1862_v26  ;;  %2677 = vmatmul.mubr.bf16.gmra.mrb[144].mxu0 %v5084_v12  ;;  %2838 = vmatmul.mubr.bf16.gmra.mrb[144].mxu1 %v5086_v4 }
 0x236   : > { %v5150_v42 = vpack.c.bf16 %v1869_v0, %v1861_v11  ;;  %v5152_v35 = vpack.c.bf16 %v1871_v53, %v1863_v36  ;;  %2684 = vmatprep.mubr.bf16.mxu0 %v5102_v10  ;;  %2845 = vmatprep.mubr.bf16.mxu1 %v5104_v41 }
 0x238   : > { %v1078_v27 = vpop.f32.mrb[40].mxu0  ;;  %v1271_v24 = vpop.f32.mrb[40].mxu1 }
 0x239   : > { %v1080_v30 = vpop.f32.mrb[41].mxu0  ;;  %v1273_v43 = vpop.f32.mrb[41].mxu1  ;;  %v1876_v34 = vmax.f32 %v1078_v27, 0.0  ;;  %v1878_v31 = vmax.f32 %v1271_v24, 0.0 }
 0x23a   : > { %v1082_v17 = vpop.f32.mrb[42].mxu0  ;;  %v1275_v32 = vpop.f32.mrb[42].mxu1  ;;  %v1877_v14 = vmax.f32 %v1080_v30, 0.0  ;;  %v1879_v15 = vmax.f32 %v1273_v43, 0.0 }
 0x23b   : > { %v1884_v38 = vmax.f32 %v1082_v17, 0.0  ;;  %v1886_v12 = vmax.f32 %v1275_v32, 0.0  ;;  %v1084_v6 = vpop.f32.mrb[43].mxu0  ;;  %v1277_v4 = vpop.f32.mrb[43].mxu1 }
 0x23c   : > { %v1885_v57 = vmax.f32 %v1084_v6, 0.0  ;;  %v1887_v45 = vmax.f32 %v1277_v4, 0.0 }
 0x23d   : > { %v5156_v46 = vpack.c.bf16 %v1884_v38, %v1876_v34  ;;  %v5158_v10 = vpack.c.bf16 %v1886_v12, %v1878_v31  ;;  %2685 = vmatmul.mubr.bf16.gmra.mrb[148].mxu0 %v5096_v7  ;;  %2846 = vmatmul.mubr.bf16.gmra.mrb[148].mxu1 %v5098_v48 }
 0x23e   : > { %v5162_v41 = vpack.c.bf16 %v1885_v57, %v1877_v14  ;;  %v5164_v33 = vpack.c.bf16 %v1887_v45, %v1879_v15  ;;  %2692 = vmatprep.mubr.bf16.mxu0 %v5114_v60  ;;  %2853 = vmatprep.mubr.bf16.mxu1 %v5116_v63 }
 0x240   : > { %v1088_v16 = vpop.f32.mrb[44].mxu0  ;;  %v1281_v49 = vpop.f32.mrb[44].mxu1 }
 0x241   : > { %v1090_v50 = vpop.f32.mrb[45].mxu0  ;;  %v1283_v55 = vpop.f32.mrb[45].mxu1  ;;  %v1892_v61 = vmax.f32 %v1088_v16, 0.0  ;;  %v1894_v9 = vmax.f32 %v1281_v49, 0.0 }
 0x242   : > { %v1092_v18 = vpop.f32.mrb[46].mxu0  ;;  %v1285_v58 = vpop.f32.mrb[46].mxu1  ;;  %v1893_v19 = vmax.f32 %v1090_v50, 0.0  ;;  %v1895_v21 = vmax.f32 %v1283_v55, 0.0 }
 0x243   : > { %v1900_v22 = vmax.f32 %v1092_v18, 0.0  ;;  %v1902_v7 = vmax.f32 %v1285_v58, 0.0  ;;  %v1094_v56 = vpop.f32.mrb[47].mxu0  ;;  %v1287_v48 = vpop.f32.mrb[47].mxu1 }
 0x244   : > { %v1901_v52 = vmax.f32 %v1094_v56, 0.0  ;;  %v1903_v20 = vmax.f32 %v1287_v48, 0.0 }
 0x245   : > { %v5168_v37 = vpack.c.bf16 %v1900_v22, %v1892_v61  ;;  %v5170_v60 = vpack.c.bf16 %v1902_v7, %v1894_v9  ;;  %2693 = vmatmul.mubr.bf16.gmra.mrb[152].mxu0 %v5108_v62  ;;  %2854 = vmatmul.mubr.bf16.gmra.mrb[152].mxu1 %v5110_v13 }
 0x246   : > { %v5174_v63 = vpack.c.bf16 %v1901_v52, %v1893_v19  ;;  %v5176_v44 = vpack.c.bf16 %v1903_v20, %v1895_v21  ;;  %2700 = vmatprep.mubr.bf16.mxu0 %v5126_v47  ;;  %2861 = vmatprep.mubr.bf16.mxu1 %v5128_v23 }
 0x248   : > { %v1098_v40 = vpop.f32.mrb[48].mxu0  ;;  %v1291_v26 = vpop.f32.mrb[48].mxu1 }
 0x249   : > { %v1100_v3 = vpop.f32.mrb[49].mxu0  ;;  %v1293_v28 = vpop.f32.mrb[49].mxu1  ;;  %v1908_v11 = vmax.f32 %v1098_v40, 0.0  ;;  %v1910_v36 = vmax.f32 %v1291_v26, 0.0 }
 0x24a   : > { %v1102_v29 = vpop.f32.mrb[50].mxu0  ;;  %v1295_v51 = vpop.f32.mrb[50].mxu1  ;;  %v1909_v27 = vmax.f32 %v1100_v3, 0.0  ;;  %v1911_v24 = vmax.f32 %v1293_v28, 0.0 }
 0x24b   : > { %v1916_v0 = vmax.f32 %v1102_v29, 0.0  ;;  %v1918_v62 = vmax.f32 %v1295_v51, 0.0  ;;  %v1104_v53 = vpop.f32.mrb[51].mxu0  ;;  %v1297_v13 = vpop.f32.mrb[51].mxu1 }
 0x24c   : > { %v1917_v30 = vmax.f32 %v1104_v53, 0.0  ;;  %v1919_v43 = vmax.f32 %v1297_v13, 0.0 }
 0x24d   : > { %v5180_v17 = vpack.c.bf16 %v1916_v0, %v1908_v11  ;;  %v5182_v47 = vpack.c.bf16 %v1918_v62, %v1910_v36  ;;  %2701 = vmatmul.mubr.bf16.gmra.mrb[156].mxu0 %v5120_v1  ;;  %2862 = vmatmul.mubr.bf16.gmra.mrb[156].mxu1 %v5122_v5 }
 0x24e   : > { %v5186_v23 = vpack.c.bf16 %v1917_v30, %v1909_v27  ;;  %v5188_v32 = vpack.c.bf16 %v1919_v43, %v1911_v24  ;;  %2708 = vmatprep.mubr.bf16.mxu0 %v5138_v39  ;;  %2869 = vmatprep.mubr.bf16.mxu1 %v5140_v59 }
 0x250   : > { %v1108_v34 = vpop.f32.mrb[52].mxu0  ;;  %v1301_v31 = vpop.f32.mrb[52].mxu1 }
 0x251   : > { %v1110_v38 = vpop.f32.mrb[53].mxu0  ;;  %v1303_v12 = vpop.f32.mrb[53].mxu1  ;;  %v1924_v14 = vmax.f32 %v1108_v34, 0.0  ;;  %v1926_v15 = vmax.f32 %v1301_v31, 0.0 }
 0x252   : > { %v1112_v6 = vpop.f32.mrb[54].mxu0  ;;  %v1305_v4 = vpop.f32.mrb[54].mxu1  ;;  %v1925_v16 = vmax.f32 %v1110_v38, 0.0  ;;  %v1927_v49 = vmax.f32 %v1303_v12, 0.0 }
 0x253   : > { %v1932_v57 = vmax.f32 %v1112_v6, 0.0  ;;  %v1934_v1 = vmax.f32 %v1305_v4, 0.0  ;;  %v1114_v45 = vpop.f32.mrb[55].mxu0  ;;  %v1307_v5 = vpop.f32.mrb[55].mxu1 }
 0x254   : > { %v1933_v50 = vmax.f32 %v1114_v45, 0.0  ;;  %v1935_v55 = vmax.f32 %v1307_v5, 0.0 }
 0x255   : > { %v5192_v18 = vpack.c.bf16 %v1932_v57, %v1924_v14  ;;  %v5194_v39 = vpack.c.bf16 %v1934_v1, %v1926_v15  ;;  %2709 = vmatmul.mubr.bf16.gmra.mrb[160].mxu0 %v5132_v8  ;;  %2870 = vmatmul.mubr.bf16.gmra.mrb[160].mxu1 %v5134_v2 }
 0x256   : > { %v5198_v59 = vpack.c.bf16 %v1933_v50, %v1925_v16  ;;  %v5200_v58 = vpack.c.bf16 %v1935_v55, %v1927_v49  ;;  %2716 = vmatprep.mubr.bf16.mxu0 %v5150_v42  ;;  %2877 = vmatprep.mubr.bf16.mxu1 %v5152_v35 }
 0x258   : > { %v1118_v61 = vpop.f32.mrb[56].mxu0  ;;  %v1311_v9 = vpop.f32.mrb[56].mxu1 }
 0x259   : > { %v1120_v22 = vpop.f32.mrb[57].mxu0  ;;  %v1313_v7 = vpop.f32.mrb[57].mxu1  ;;  %v1940_v19 = vmax.f32 %v1118_v61, 0.0  ;;  %v1942_v21 = vmax.f32 %v1311_v9, 0.0 }
 0x25a   : > { %v1122_v56 = vpop.f32.mrb[58].mxu0  ;;  %v1315_v48 = vpop.f32.mrb[58].mxu1  ;;  %v1941_v40 = vmax.f32 %v1120_v22, 0.0  ;;  %v1943_v26 = vmax.f32 %v1313_v7, 0.0 }
 0x25b   : > { %v1948_v52 = vmax.f32 %v1122_v56, 0.0  ;;  %v1950_v8 = vmax.f32 %v1315_v48, 0.0  ;;  %v1124_v20 = vpop.f32.mrb[59].mxu0  ;;  %v1317_v2 = vpop.f32.mrb[59].mxu1 }
 0x25c   : > { %v1949_v3 = vmax.f32 %v1124_v20, 0.0  ;;  %v1951_v28 = vmax.f32 %v1317_v2, 0.0 }
 0x25d   : > { %v5204_v29 = vpack.c.bf16 %v1948_v52, %v1940_v19  ;;  %v5206_v42 = vpack.c.bf16 %v1950_v8, %v1942_v21  ;;  %2717 = vmatmul.mubr.bf16.gmra.mrb[164].mxu0 %v5144_v25  ;;  %2878 = vmatmul.mubr.bf16.gmra.mrb[164].mxu1 %v5146_v54 }
 0x25e   : > { %v5210_v35 = vpack.c.bf16 %v1949_v3, %v1941_v40  ;;  %v5212_v51 = vpack.c.bf16 %v1951_v28, %v1943_v26  ;;  %2724 = vmatprep.mubr.bf16.mxu0 %v5162_v41  ;;  %2885 = vmatprep.mubr.bf16.mxu1 %v5164_v33 }
 0x260   : > { %v1128_v11 = vpop.f32.mrb[60].mxu0  ;;  %v1321_v36 = vpop.f32.mrb[60].mxu1 }
 0x261   : > { %v1130_v0 = vpop.f32.mrb[61].mxu0  ;;  %v1323_v62 = vpop.f32.mrb[61].mxu1  ;;  %v1956_v27 = vmax.f32 %v1128_v11, 0.0  ;;  %v1958_v24 = vmax.f32 %v1321_v36, 0.0 }
 0x262   : > { %v1132_v53 = vpop.f32.mrb[62].mxu0  ;;  %v1325_v13 = vpop.f32.mrb[62].mxu1  ;;  %v1957_v34 = vmax.f32 %v1130_v0, 0.0  ;;  %v1959_v31 = vmax.f32 %v1323_v62, 0.0 }
 0x263   : > { %v1964_v30 = vmax.f32 %v1132_v53, 0.0  ;;  %v1966_v25 = vmax.f32 %v1325_v13, 0.0  ;;  %v1134_v43 = vpop.f32.mrb[63].mxu0  ;;  %v1327_v54 = vpop.f32.mrb[63].mxu1 }
 0x264   : > { %v1965_v38 = vmax.f32 %v1134_v43, 0.0  ;;  %v1967_v12 = vmax.f32 %v1327_v54, 0.0 }
 0x265   : > { %v5216_v6 = vpack.c.bf16 %v1964_v30, %v1956_v27  ;;  %v5218_v41 = vpack.c.bf16 %v1966_v25, %v1958_v24  ;;  %2725 = vmatmul.mubr.bf16.gmra.mrb[168].mxu0 %v5156_v46  ;;  %2886 = vmatmul.mubr.bf16.gmra.mrb[168].mxu1 %v5158_v10 }
 0x266   : > { %v5222_v33 = vpack.c.bf16 %v1965_v38, %v1957_v34  ;;  %v5224_v4 = vpack.c.bf16 %v1967_v12, %v1959_v31  ;;  %2732 = vmatprep.mubr.bf16.mxu0 %v5174_v63  ;;  %2893 = vmatprep.mubr.bf16.mxu1 %v5176_v44 }
 0x268   : > { %v1364_v14 = vpop.f32.mrb[64].mxu0  ;;  %v1557_v15 = vpop.f32.mrb[64].mxu1 }
 0x269   : > { %v1366_v57 = vpop.f32.mrb[65].mxu0  ;;  %v1559_v1 = vpop.f32.mrb[65].mxu1  ;;  %v1720_v16 = vmax.f32 %v1364_v14, 0.0  ;;  %v1722_v49 = vmax.f32 %v1557_v15, 0.0 }
 0x26a   : > { %v1368_v45 = vpop.f32.mrb[66].mxu0  ;;  %v1561_v5 = vpop.f32.mrb[66].mxu1  ;;  %v1721_v61 = vmax.f32 %v1366_v57, 0.0  ;;  %v1723_v9 = vmax.f32 %v1559_v1, 0.0 }
 0x26b   : > { %v1728_v50 = vmax.f32 %v1368_v45, 0.0  ;;  %v1730_v46 = vmax.f32 %v1561_v5, 0.0  ;;  %v1370_v55 = vpop.f32.mrb[67].mxu0  ;;  %v1563_v10 = vpop.f32.mrb[67].mxu1 }
 0x26c   : > { %v1729_v22 = vmax.f32 %v1370_v55, 0.0  ;;  %v1731_v7 = vmax.f32 %v1563_v10, 0.0 }
 0x26d   : > { %v5228_v56 = vpack.c.bf16 %v1728_v50, %v1720_v16  ;;  %v5230_v63 = vpack.c.bf16 %v1730_v46, %v1722_v49  ;;  %2733 = vmatmul.mubr.bf16.gmra.mrb[172].mxu0 %v5168_v37  ;;  %2894 = vmatmul.mubr.bf16.gmra.mrb[172].mxu1 %v5170_v60 }
 0x26e   : > { %v5234_v44 = vpack.c.bf16 %v1729_v22, %v1721_v61  ;;  %v5236_v48 = vpack.c.bf16 %v1731_v7, %v1723_v9  ;;  %2740 = vmatprep.mubr.bf16.mxu0 %v5186_v23  ;;  %2901 = vmatprep.mubr.bf16.mxu1 %v5188_v32 }
 0x270   : > { %v1374_v19 = vpop.f32.mrb[68].mxu0  ;;  %v1567_v21 = vpop.f32.mrb[68].mxu1 }
 0x271   : > { %v1376_v52 = vpop.f32.mrb[69].mxu0  ;;  %v1569_v8 = vpop.f32.mrb[69].mxu1  ;;  %v1736_v40 = vmax.f32 %v1374_v19, 0.0  ;;  %v1738_v26 = vmax.f32 %v1567_v21, 0.0 }
 0x272   : > { %v1378_v20 = vpop.f32.mrb[70].mxu0  ;;  %v1571_v2 = vpop.f32.mrb[70].mxu1  ;;  %v1737_v11 = vmax.f32 %v1376_v52, 0.0  ;;  %v1739_v36 = vmax.f32 %v1569_v8, 0.0 }
 0x273   : > { %v1744_v3 = vmax.f32 %v1378_v20, 0.0  ;;  %v1746_v37 = vmax.f32 %v1571_v2, 0.0  ;;  %v1380_v28 = vpop.f32.mrb[71].mxu0  ;;  %v1573_v60 = vpop.f32.mrb[71].mxu1 }
 0x274   : > { %v1745_v0 = vmax.f32 %v1380_v28, 0.0  ;;  %v1747_v62 = vmax.f32 %v1573_v60, 0.0 }
 0x275   : > { %v5240_v53 = vpack.c.bf16 %v1744_v3, %v1736_v40  ;;  %v5242_v23 = vpack.c.bf16 %v1746_v37, %v1738_v26  ;;  %2741 = vmatmul.mubr.bf16.gmra.mrb[176].mxu0 %v5180_v17  ;;  %2902 = vmatmul.mubr.bf16.gmra.mrb[176].mxu1 %v5182_v47 }
 0x276   : > { %v5246_v32 = vpack.c.bf16 %v1745_v0, %v1737_v11  ;;  %v5248_v13 = vpack.c.bf16 %v1747_v62, %v1739_v36  ;;  %2748 = vmatprep.mubr.bf16.mxu0 %v5198_v59  ;;  %2909 = vmatprep.mubr.bf16.mxu1 %v5200_v58 }
 0x278   : > { %v1384_v27 = vpop.f32.mrb[72].mxu0  ;;  %v1577_v24 = vpop.f32.mrb[72].mxu1 }
 0x279   : > { %v1386_v30 = vpop.f32.mrb[73].mxu0  ;;  %v1579_v25 = vpop.f32.mrb[73].mxu1  ;;  %v1752_v34 = vmax.f32 %v1384_v27, 0.0  ;;  %v1754_v31 = vmax.f32 %v1577_v24, 0.0 }
 0x27a   : > { %v1388_v43 = vpop.f32.mrb[74].mxu0  ;;  %v1581_v54 = vpop.f32.mrb[74].mxu1  ;;  %v1753_v14 = vmax.f32 %v1386_v30, 0.0  ;;  %v1755_v15 = vmax.f32 %v1579_v25, 0.0 }
 0x27b   : > { %v1760_v38 = vmax.f32 %v1388_v43, 0.0  ;;  %v1762_v17 = vmax.f32 %v1581_v54, 0.0  ;;  %v1390_v12 = vpop.f32.mrb[75].mxu0  ;;  %v1583_v47 = vpop.f32.mrb[75].mxu1 }
 0x27c   : > { %v1761_v57 = vmax.f32 %v1390_v12, 0.0  ;;  %v1763_v1 = vmax.f32 %v1583_v47, 0.0 }
 0x27d   : > { %v5252_v45 = vpack.c.bf16 %v1760_v38, %v1752_v34  ;;  %v5254_v59 = vpack.c.bf16 %v1762_v17, %v1754_v31  ;;  %2749 = vmatmul.mubr.bf16.gmra.mrb[180].mxu0 %v5192_v18  ;;  %2910 = vmatmul.mubr.bf16.gmra.mrb[180].mxu1 %v5194_v39 }
 0x27e   : > { %v5258_v58 = vpack.c.bf16 %v1761_v57, %v1753_v14  ;;  %v5260_v5 = vpack.c.bf16 %v1763_v1, %v1755_v15  ;;  %2756 = vmatprep.mubr.bf16.mxu0 %v5210_v35  ;;  %2917 = vmatprep.mubr.bf16.mxu1 %v5212_v51 }
 0x280   : > { %v1394_v16 = vpop.f32.mrb[76].mxu0  ;;  %v1587_v49 = vpop.f32.mrb[76].mxu1 }
 0x281   : > { %v1396_v50 = vpop.f32.mrb[77].mxu0  ;;  %v1589_v46 = vpop.f32.mrb[77].mxu1  ;;  %v1768_v61 = vmax.f32 %v1394_v16, 0.0  ;;  %v1770_v9 = vmax.f32 %v1587_v49, 0.0 }
 0x282   : > { %v1398_v55 = vpop.f32.mrb[78].mxu0  ;;  %v1591_v10 = vpop.f32.mrb[78].mxu1  ;;  %v1769_v19 = vmax.f32 %v1396_v50, 0.0  ;;  %v1771_v21 = vmax.f32 %v1589_v46, 0.0 }
 0x283   : > { %v1776_v22 = vmax.f32 %v1398_v55, 0.0  ;;  %v1778_v18 = vmax.f32 %v1591_v10, 0.0  ;;  %v1400_v7 = vpop.f32.mrb[79].mxu0  ;;  %v1593_v39 = vpop.f32.mrb[79].mxu1 }
 0x284   : > { %v1777_v52 = vmax.f32 %v1400_v7, 0.0  ;;  %v1779_v8 = vmax.f32 %v1593_v39, 0.0 }
 0x285   : > { %v5264_v20 = vpack.c.bf16 %v1776_v22, %v1768_v61  ;;  %v5266_v35 = vpack.c.bf16 %v1778_v18, %v1770_v9  ;;  %2757 = vmatmul.mubr.bf16.gmra.mrb[184].mxu0 %v5204_v29  ;;  %2918 = vmatmul.mubr.bf16.gmra.mrb[184].mxu1 %v5206_v42 }
 0x286   : > { %v5270_v51 = vpack.c.bf16 %v1777_v52, %v1769_v19  ;;  %v5272_v2 = vpack.c.bf16 %v1779_v8, %v1771_v21  ;;  %2764 = vmatprep.mubr.bf16.mxu0 %v5222_v33  ;;  %2925 = vmatprep.mubr.bf16.mxu1 %v5224_v4 }
 0x288   : > { %v1404_v40 = vpop.f32.mrb[80].mxu0  ;;  %v1597_v26 = vpop.f32.mrb[80].mxu1 }
 0x289   : > { %v1406_v3 = vpop.f32.mrb[81].mxu0  ;;  %v1599_v37 = vpop.f32.mrb[81].mxu1  ;;  %v1784_v11 = vmax.f32 %v1404_v40, 0.0  ;;  %v1786_v36 = vmax.f32 %v1597_v26, 0.0 }
 0x28a   : > { %v1408_v28 = vpop.f32.mrb[82].mxu0  ;;  %v1601_v60 = vpop.f32.mrb[82].mxu1  ;;  %v1785_v27 = vmax.f32 %v1406_v3, 0.0  ;;  %v1787_v24 = vmax.f32 %v1599_v37, 0.0 }
 0x28b   : > { %v1792_v0 = vmax.f32 %v1408_v28, 0.0  ;;  %v1794_v29 = vmax.f32 %v1601_v60, 0.0  ;;  %v1410_v62 = vpop.f32.mrb[83].mxu0  ;;  %v1603_v42 = vpop.f32.mrb[83].mxu1 }
 0x28c   : > { %v1793_v30 = vmax.f32 %v1410_v62, 0.0  ;;  %v1795_v25 = vmax.f32 %v1603_v42, 0.0 }
 0x28d   : > { %v5276_v43 = vpack.c.bf16 %v1792_v0, %v1784_v11  ;;  %v5278_v33 = vpack.c.bf16 %v1794_v29, %v1786_v36  ;;  %2765 = vmatmul.mubr.bf16.gmra.mrb[188].mxu0 %v5216_v6  ;;  %2926 = vmatmul.mubr.bf16.gmra.mrb[188].mxu1 %v5218_v41 }
 0x28e   : > { %v5282_v4 = vpack.c.bf16 %v1793_v30, %v1785_v27  ;;  %v5284_v54 = vpack.c.bf16 %v1795_v25, %v1787_v24  ;;  %2966 = vmatprep.mubr.bf16.mxu0 %v5234_v44  ;;  %3127 = vmatprep.mubr.bf16.mxu1 %v5236_v48 }
 0x290   : > { %v1414_v34 = vpop.f32.mrb[84].mxu0  ;;  %v1607_v31 = vpop.f32.mrb[84].mxu1 }
 0x291   : > { %v1416_v38 = vpop.f32.mrb[85].mxu0  ;;  %v1609_v17 = vpop.f32.mrb[85].mxu1  ;;  %v1800_v14 = vmax.f32 %v1414_v34, 0.0  ;;  %v1802_v15 = vmax.f32 %v1607_v31, 0.0 }
 0x292   : > { %v1418_v12 = vpop.f32.mrb[86].mxu0  ;;  %v1611_v47 = vpop.f32.mrb[86].mxu1  ;;  %v1801_v16 = vmax.f32 %v1416_v38, 0.0  ;;  %v1803_v49 = vmax.f32 %v1609_v17, 0.0 }
 0x293   : > { %v1808_v57 = vmax.f32 %v1418_v12, 0.0  ;;  %v1810_v6 = vmax.f32 %v1611_v47, 0.0  ;;  %v1420_v1 = vpop.f32.mrb[87].mxu0  ;;  %v1613_v41 = vpop.f32.mrb[87].mxu1 }
 0x294   : > { %v1809_v50 = vmax.f32 %v1420_v1, 0.0  ;;  %v1811_v46 = vmax.f32 %v1613_v41, 0.0 }
 0x295   : > { %v5288_v55 = vpack.c.bf16 %v1808_v57, %v1800_v14  ;;  %v5290_v44 = vpack.c.bf16 %v1810_v6, %v1802_v15  ;;  %2967 = vmatmul.mubr.bf16.vlgmr.msra.gmra.mrb[192].mxu0 %v5228_v56  ;;  %3128 = vmatmul.mubr.bf16.vlgmr.msra.gmra.mrb[192].mxu1 %v5230_v63 }
 0x296   : > { %v5294_v48 = vpack.c.bf16 %v1809_v50, %v1801_v16  ;;  %v5296_v10 = vpack.c.bf16 %v1811_v46, %v1803_v49  ;;  %2974 = vmatprep.mubr.bf16.mxu0 %v5246_v32  ;;  %3135 = vmatprep.mubr.bf16.mxu1 %v5248_v13 }
 0x298   : > { %v1424_v61 = vpop.f32.mrb[88].mxu0  ;;  %v1617_v9 = vpop.f32.mrb[88].mxu1 }
 0x299   : > { %v1426_v22 = vpop.f32.mrb[89].mxu0  ;;  %v1619_v18 = vpop.f32.mrb[89].mxu1  ;;  %v1816_v19 = vmax.f32 %v1424_v61, 0.0  ;;  %v1818_v21 = vmax.f32 %v1617_v9, 0.0 }
 0x29a   : > { %v1428_v7 = vpop.f32.mrb[90].mxu0  ;;  %v1621_v39 = vpop.f32.mrb[90].mxu1  ;;  %v1817_v40 = vmax.f32 %v1426_v22, 0.0  ;;  %v1819_v26 = vmax.f32 %v1619_v18, 0.0 }
 0x29b   : > { %v1824_v52 = vmax.f32 %v1428_v7, 0.0  ;;  %v1826_v56 = vmax.f32 %v1621_v39, 0.0  ;;  %v1430_v8 = vpop.f32.mrb[91].mxu0  ;;  %v1623_v63 = vpop.f32.mrb[91].mxu1 }
 0x29c   : > { %v1825_v3 = vmax.f32 %v1430_v8, 0.0  ;;  %v1827_v37 = vmax.f32 %v1623_v63, 0.0 }
 0x29d   : > { %v5300_v28 = vpack.c.bf16 %v1824_v52, %v1816_v19  ;;  %v5302_v32 = vpack.c.bf16 %v1826_v56, %v1818_v21  ;;  %2975 = vmatmul.mubr.bf16.gmra.mrb[196].mxu0 %v5240_v53  ;;  %3136 = vmatmul.mubr.bf16.gmra.mrb[196].mxu1 %v5242_v23 }
 0x29e   : > { %v5306_v13 = vpack.c.bf16 %v1825_v3, %v1817_v40  ;;  %v5308_v60 = vpack.c.bf16 %v1827_v37, %v1819_v26  ;;  %2982 = vmatprep.mubr.bf16.mxu0 %v5258_v58  ;;  %3143 = vmatprep.mubr.bf16.mxu1 %v5260_v5 }
 0x2a0   : > { %v1434_v11 = vpop.f32.mrb[92].mxu0  ;;  %v1627_v36 = vpop.f32.mrb[92].mxu1 }
 0x2a1   : > { %v1436_v0 = vpop.f32.mrb[93].mxu0  ;;  %v1629_v29 = vpop.f32.mrb[93].mxu1  ;;  %v1832_v27 = vmax.f32 %v1434_v11, 0.0  ;;  %v1834_v24 = vmax.f32 %v1627_v36, 0.0 }
 0x2a2   : > { %v1438_v62 = vpop.f32.mrb[94].mxu0  ;;  %v1631_v42 = vpop.f32.mrb[94].mxu1  ;;  %v1833_v34 = vmax.f32 %v1436_v0, 0.0  ;;  %v1835_v31 = vmax.f32 %v1629_v29, 0.0 }
 0x2a3   : > { %v1840_v30 = vmax.f32 %v1438_v62, 0.0  ;;  %v1842_v53 = vmax.f32 %v1631_v42, 0.0  ;;  %v1440_v25 = vpop.f32.mrb[95].mxu0  ;;  %v1633_v23 = vpop.f32.mrb[95].mxu1 }
 0x2a4   : > { %v1841_v38 = vmax.f32 %v1440_v25, 0.0  ;;  %v1843_v17 = vmax.f32 %v1633_v23, 0.0 }
 0x2a5   : > { %v5312_v12 = vpack.c.bf16 %v1840_v30, %v1832_v27  ;;  %v5314_v58 = vpack.c.bf16 %v1842_v53, %v1834_v24  ;;  %2983 = vmatmul.mubr.bf16.gmra.mrb[200].mxu0 %v5252_v45  ;;  %3144 = vmatmul.mubr.bf16.gmra.mrb[200].mxu1 %v5254_v59 }
 0x2a6   : > { %v5318_v5 = vpack.c.bf16 %v1841_v38, %v1833_v34  ;;  %v5320_v47 = vpack.c.bf16 %v1843_v17, %v1835_v31  ;;  %2990 = vmatprep.mubr.bf16.mxu0 %v5270_v51  ;;  %3151 = vmatprep.mubr.bf16.mxu1 %v5272_v2 }
 0x2a8   : > { %v1444_v14 = vpop.f32.mrb[96].mxu0  ;;  %v1637_v15 = vpop.f32.mrb[96].mxu1 }
 0x2a9   : > { %v1446_v57 = vpop.f32.mrb[97].mxu0  ;;  %v1639_v6 = vpop.f32.mrb[97].mxu1  ;;  %v1848_v16 = vmax.f32 %v1444_v14, 0.0  ;;  %v1850_v49 = vmax.f32 %v1637_v15, 0.0 }
 0x2aa   : > { %v1448_v1 = vpop.f32.mrb[98].mxu0  ;;  %v1641_v41 = vpop.f32.mrb[98].mxu1  ;;  %v1849_v61 = vmax.f32 %v1446_v57, 0.0  ;;  %v1851_v9 = vmax.f32 %v1639_v6, 0.0 }
 0x2ab   : > { %v1856_v50 = vmax.f32 %v1448_v1, 0.0  ;;  %v1858_v45 = vmax.f32 %v1641_v41, 0.0  ;;  %v1450_v46 = vpop.f32.mrb[99].mxu0  ;;  %v1643_v59 = vpop.f32.mrb[99].mxu1 }
 0x2ac   : > { %v1857_v22 = vmax.f32 %v1450_v46, 0.0  ;;  %v1859_v18 = vmax.f32 %v1643_v59, 0.0 }
 0x2ad   : > { %v5324_v7 = vpack.c.bf16 %v1856_v50, %v1848_v16  ;;  %v5326_v51 = vpack.c.bf16 %v1858_v45, %v1850_v49  ;;  %2991 = vmatmul.mubr.bf16.gmra.mrb[204].mxu0 %v5264_v20  ;;  %3152 = vmatmul.mubr.bf16.gmra.mrb[204].mxu1 %v5266_v35 }
 0x2ae   : > { %v5330_v2 = vpack.c.bf16 %v1857_v22, %v1849_v61  ;;  %v5332_v39 = vpack.c.bf16 %v1859_v18, %v1851_v9  ;;  %2998 = vmatprep.mubr.bf16.mxu0 %v5282_v4  ;;  %3159 = vmatprep.mubr.bf16.mxu1 %v5284_v54 }
 0x2b0   : > { %v1454_v19 = vpop.f32.mrb[100].mxu0  ;;  %v1647_v21 = vpop.f32.mrb[100].mxu1 }
 0x2b1   : > { %v1456_v52 = vpop.f32.mrb[101].mxu0  ;;  %v1649_v56 = vpop.f32.mrb[101].mxu1  ;;  %v1864_v40 = vmax.f32 %v1454_v19, 0.0  ;;  %v1866_v26 = vmax.f32 %v1647_v21, 0.0 }
 0x2b2   : > { %v1458_v8 = vpop.f32.mrb[102].mxu0  ;;  %v1651_v63 = vpop.f32.mrb[102].mxu1  ;;  %v1865_v11 = vmax.f32 %v1456_v52, 0.0  ;;  %v1867_v36 = vmax.f32 %v1649_v56, 0.0 }
 0x2b3   : > { %v1872_v3 = vmax.f32 %v1458_v8, 0.0  ;;  %v1874_v20 = vmax.f32 %v1651_v63, 0.0  ;;  %v1460_v37 = vpop.f32.mrb[103].mxu0  ;;  %v1653_v35 = vpop.f32.mrb[103].mxu1 }
 0x2b4   : > { %v1873_v0 = vmax.f32 %v1460_v37, 0.0  ;;  %v1875_v29 = vmax.f32 %v1653_v35, 0.0 }
 0x2b5   : > { %v5336_v62 = vpack.c.bf16 %v1872_v3, %v1864_v40  ;;  %v5338_v4 = vpack.c.bf16 %v1874_v20, %v1866_v26  ;;  %2999 = vmatmul.mubr.bf16.gmra.mrb[208].mxu0 %v5276_v43  ;;  %3160 = vmatmul.mubr.bf16.gmra.mrb[208].mxu1 %v5278_v33 }
 0x2b6   : > { %v5342_v54 = vpack.c.bf16 %v1873_v0, %v1865_v11  ;;  %v5344_v42 = vpack.c.bf16 %v1875_v29, %v1867_v36  ;;  %3006 = vmatprep.mubr.bf16.mxu0 %v5294_v48  ;;  %3167 = vmatprep.mubr.bf16.mxu1 %v5296_v10 }
 0x2b8   : > { %v1464_v27 = vpop.f32.mrb[104].mxu0  ;;  %v1657_v24 = vpop.f32.mrb[104].mxu1 }
 0x2b9   : > { %v1466_v30 = vpop.f32.mrb[105].mxu0  ;;  %v1659_v53 = vpop.f32.mrb[105].mxu1  ;;  %v1880_v34 = vmax.f32 %v1464_v27, 0.0  ;;  %v1882_v31 = vmax.f32 %v1657_v24, 0.0 }
 0x2ba   : > { %v1468_v25 = vpop.f32.mrb[106].mxu0  ;;  %v1661_v23 = vpop.f32.mrb[106].mxu1  ;;  %v1881_v14 = vmax.f32 %v1466_v30, 0.0  ;;  %v1883_v15 = vmax.f32 %v1659_v53, 0.0 }
 0x2bb   : > { %v1888_v38 = vmax.f32 %v1468_v25, 0.0  ;;  %v1890_v43 = vmax.f32 %v1661_v23, 0.0  ;;  %v1470_v17 = vpop.f32.mrb[107].mxu0  ;;  %v1663_v33 = vpop.f32.mrb[107].mxu1 }
 0x2bc   : > { %v1889_v57 = vmax.f32 %v1470_v17, 0.0  ;;  %v1891_v6 = vmax.f32 %v1663_v33, 0.0 }
 0x2bd   : > { %v5348_v1 = vpack.c.bf16 %v1888_v38, %v1880_v34  ;;  %v5350_v48 = vpack.c.bf16 %v1890_v43, %v1882_v31  ;;  %3007 = vmatmul.mubr.bf16.gmra.mrb[212].mxu0 %v5288_v55  ;;  %3168 = vmatmul.mubr.bf16.gmra.mrb[212].mxu1 %v5290_v44 }
 0x2be   : > { %v5354_v10 = vpack.c.bf16 %v1889_v57, %v1881_v14  ;;  %v5356_v41 = vpack.c.bf16 %v1891_v6, %v1883_v15  ;;  %3014 = vmatprep.mubr.bf16.mxu0 %v5306_v13  ;;  %3175 = vmatprep.mubr.bf16.mxu1 %v5308_v60 }
 0x2c0   : > { %v1474_v16 = vpop.f32.mrb[108].mxu0  ;;  %v1667_v49 = vpop.f32.mrb[108].mxu1 }
 0x2c1   : > { %v1476_v50 = vpop.f32.mrb[109].mxu0  ;;  %v1669_v45 = vpop.f32.mrb[109].mxu1  ;;  %v1896_v61 = vmax.f32 %v1474_v16, 0.0  ;;  %v1898_v9 = vmax.f32 %v1667_v49, 0.0 }
 0x2c2   : > { %v1478_v46 = vpop.f32.mrb[110].mxu0  ;;  %v1671_v59 = vpop.f32.mrb[110].mxu1  ;;  %v1897_v19 = vmax.f32 %v1476_v50, 0.0  ;;  %v1899_v21 = vmax.f32 %v1669_v45, 0.0 }
 0x2c3   : > { %v1904_v22 = vmax.f32 %v1478_v46, 0.0  ;;  %v1906_v55 = vmax.f32 %v1671_v59, 0.0  ;;  %v1480_v18 = vpop.f32.mrb[111].mxu0  ;;  %v1673_v44 = vpop.f32.mrb[111].mxu1 }
 0x2c4   : > { %v1905_v52 = vmax.f32 %v1480_v18, 0.0  ;;  %v1907_v56 = vmax.f32 %v1673_v44, 0.0 }
 0x2c5   : > { %v5360_v8 = vpack.c.bf16 %v1904_v22, %v1896_v61  ;;  %v5362_v13 = vpack.c.bf16 %v1906_v55, %v1898_v9  ;;  %3015 = vmatmul.mubr.bf16.gmra.mrb[216].mxu0 %v5300_v28  ;;  %3176 = vmatmul.mubr.bf16.gmra.mrb[216].mxu1 %v5302_v32 }
 0x2c6   : > { %v5366_v60 = vpack.c.bf16 %v1905_v52, %v1897_v19  ;;  %v5368_v63 = vpack.c.bf16 %v1907_v56, %v1899_v21  ;;  %3022 = vmatprep.mubr.bf16.mxu0 %v5318_v5  ;;  %3183 = vmatprep.mubr.bf16.mxu1 %v5320_v47 }
 0x2c8   : > { %v1484_v40 = vpop.f32.mrb[112].mxu0  ;;  %v1677_v26 = vpop.f32.mrb[112].mxu1 }
 0x2c9   : > { %v1486_v3 = vpop.f32.mrb[113].mxu0  ;;  %v1679_v20 = vpop.f32.mrb[113].mxu1  ;;  %v1912_v11 = vmax.f32 %v1484_v40, 0.0  ;;  %v1914_v36 = vmax.f32 %v1677_v26, 0.0 }
 0x2ca   : > { %v1488_v37 = vpop.f32.mrb[114].mxu0  ;;  %v1681_v35 = vpop.f32.mrb[114].mxu1  ;;  %v1913_v27 = vmax.f32 %v1486_v3, 0.0  ;;  %v1915_v24 = vmax.f32 %v1679_v20, 0.0 }
 0x2cb   : > { %v1920_v0 = vmax.f32 %v1488_v37, 0.0  ;;  %v1922_v28 = vmax.f32 %v1681_v35, 0.0  ;;  %v1490_v29 = vpop.f32.mrb[115].mxu0  ;;  %v1683_v32 = vpop.f32.mrb[115].mxu1 }
 0x2cc   : > { %v1921_v30 = vmax.f32 %v1490_v29, 0.0  ;;  %v1923_v53 = vmax.f32 %v1683_v32, 0.0 }
 0x2cd   : > { %v5372_v25 = vpack.c.bf16 %v1920_v0, %v1912_v11  ;;  %v5374_v5 = vpack.c.bf16 %v1922_v28, %v1914_v36  ;;  %3023 = vmatmul.mubr.bf16.gmra.mrb[220].mxu0 %v5312_v12  ;;  %3184 = vmatmul.mubr.bf16.gmra.mrb[220].mxu1 %v5314_v58 }
 0x2ce   : > { %v5378_v47 = vpack.c.bf16 %v1921_v30, %v1913_v27  ;;  %v5380_v23 = vpack.c.bf16 %v1923_v53, %v1915_v24  ;;  %3030 = vmatprep.mubr.bf16.mxu0 %v5330_v2  ;;  %3191 = vmatprep.mubr.bf16.mxu1 %v5332_v39 }
 0x2d0   : > { %v1494_v34 = vpop.f32.mrb[116].mxu0  ;;  %v1687_v31 = vpop.f32.mrb[116].mxu1 }
 0x2d1   : > { %v1496_v38 = vpop.f32.mrb[117].mxu0  ;;  %v1689_v43 = vpop.f32.mrb[117].mxu1  ;;  %v1928_v14 = vmax.f32 %v1494_v34, 0.0  ;;  %v1930_v15 = vmax.f32 %v1687_v31, 0.0 }
 0x2d2   : > { %v1498_v17 = vpop.f32.mrb[118].mxu0  ;;  %v1691_v33 = vpop.f32.mrb[118].mxu1  ;;  %v1929_v16 = vmax.f32 %v1496_v38, 0.0  ;;  %v1931_v49 = vmax.f32 %v1689_v43, 0.0 }
 0x2d3   : > { %v1936_v57 = vmax.f32 %v1498_v17, 0.0  ;;  %v1938_v12 = vmax.f32 %v1691_v33, 0.0  ;;  %v1500_v6 = vpop.f32.mrb[119].mxu0  ;;  %v1693_v58 = vpop.f32.mrb[119].mxu1 }
 0x2d4   : > { %v1937_v50 = vmax.f32 %v1500_v6, 0.0  ;;  %v1939_v45 = vmax.f32 %v1693_v58, 0.0 }
 0x2d5   : > { %v5384_v46 = vpack.c.bf16 %v1936_v57, %v1928_v14  ;;  %v5386_v2 = vpack.c.bf16 %v1938_v12, %v1930_v15  ;;  %3031 = vmatmul.mubr.bf16.gmra.mrb[224].mxu0 %v5324_v7  ;;  %3192 = vmatmul.mubr.bf16.gmra.mrb[224].mxu1 %v5326_v51 }
 0x2d6   : > { %v5390_v39 = vpack.c.bf16 %v1937_v50, %v1929_v16  ;;  %v5392_v59 = vpack.c.bf16 %v1939_v45, %v1931_v49  ;;  %3038 = vmatprep.mubr.bf16.mxu0 %v5342_v54  ;;  %3199 = vmatprep.mubr.bf16.mxu1 %v5344_v42 }
 0x2d8   : > { %v1504_v61 = vpop.f32.mrb[120].mxu0  ;;  %v1697_v9 = vpop.f32.mrb[120].mxu1 }
 0x2d9   : > { %v1506_v22 = vpop.f32.mrb[121].mxu0  ;;  %v1699_v55 = vpop.f32.mrb[121].mxu1  ;;  %v1944_v19 = vmax.f32 %v1504_v61, 0.0  ;;  %v1946_v21 = vmax.f32 %v1697_v9, 0.0 }
 0x2da   : > { %v1508_v18 = vpop.f32.mrb[122].mxu0  ;;  %v1701_v44 = vpop.f32.mrb[122].mxu1  ;;  %v1945_v40 = vmax.f32 %v1506_v22, 0.0  ;;  %v1947_v26 = vmax.f32 %v1699_v55, 0.0 }
 0x2db   : > { %v1952_v52 = vmax.f32 %v1508_v18, 0.0  ;;  %v1954_v7 = vmax.f32 %v1701_v44, 0.0  ;;  %v1510_v56 = vpop.f32.mrb[123].mxu0  ;;  %v1703_v51 = vpop.f32.mrb[123].mxu1 }
 0x2dc   : > { %v1953_v3 = vmax.f32 %v1510_v56, 0.0  ;;  %v1955_v20 = vmax.f32 %v1703_v51, 0.0 }
 0x2dd   : > { %v5396_v37 = vpack.c.bf16 %v1952_v52, %v1944_v19  ;;  %v5398_v54 = vpack.c.bf16 %v1954_v7, %v1946_v21  ;;  %3039 = vmatmul.mubr.bf16.gmra.mrb[228].mxu0 %v5336_v62  ;;  %3200 = vmatmul.mubr.bf16.gmra.mrb[228].mxu1 %v5338_v4 }
 0x2de   : > { %v5402_v42 = vpack.c.bf16 %v1953_v3, %v1945_v40  ;;  %v5404_v35 = vpack.c.bf16 %v1955_v20, %v1947_v26  ;;  %3046 = vmatprep.mubr.bf16.mxu0 %v5354_v10  ;;  %3207 = vmatprep.mubr.bf16.mxu1 %v5356_v41 }
 0x2e0   : > { %v1514_v11 = vpop.f32.mrb[124].mxu0  ;;  %v1707_v36 = vpop.f32.mrb[124].mxu1 }
 0x2e1   : > { %v1516_v0 = vpop.f32.mrb[125].mxu0  ;;  %v1709_v28 = vpop.f32.mrb[125].mxu1  ;;  %v1960_v27 = vmax.f32 %v1514_v11, 0.0  ;;  %v1962_v24 = vmax.f32 %v1707_v36, 0.0 }
 0x2e2   : > { %v1518_v29 = vpop.f32.mrb[126].mxu0  ;;  %v1711_v32 = vpop.f32.mrb[126].mxu1  ;;  %v1961_v34 = vmax.f32 %v1516_v0, 0.0  ;;  %v1963_v31 = vmax.f32 %v1709_v28, 0.0 }
 0x2e3   : > { %v1968_v30 = vmax.f32 %v1518_v29, 0.0  ;;  %v1970_v62 = vmax.f32 %v1711_v32, 0.0  ;;  %v1520_v53 = vpop.f32.mrb[127].mxu0  ;;  %v1713_v4 = vpop.f32.mrb[127].mxu1 }
 0x2e4   : > { %v1969_v38 = vmax.f32 %v1520_v53, 0.0  ;;  %v1971_v43 = vmax.f32 %v1713_v4, 0.0 }
 0x2e5   : > { %v5408_v17 = vpack.c.bf16 %v1968_v30, %v1960_v27  ;;  %v5410_v10 = vpack.c.bf16 %v1970_v62, %v1962_v24  ;;  %3047 = vmatmul.mubr.bf16.gmra.mrb[232].mxu0 %v5348_v1  ;;  %3208 = vmatmul.mubr.bf16.gmra.mrb[232].mxu1 %v5350_v48 }
 0x2e6   : > { %v5414_v41 = vpack.c.bf16 %v1969_v38, %v1961_v34  ;;  %v5416_v33 = vpack.c.bf16 %v1971_v43, %v1963_v31  ;;  %3054 = vmatprep.mubr.bf16.mxu0 %v5366_v60  ;;  %3215 = vmatprep.mubr.bf16.mxu1 %v5368_v63 }
 0x2e8   : > { %v3591_v14 = vpop.f32.mrb[128].mxu0  ;;  %v3703_v15 = vpop.f32.mrb[128].mxu1 }
 0x2e9   : > { %v3592_v57 = vpop.f32.mrb[129].mxu0  ;;  %v3704_v12 = vpop.f32.mrb[129].mxu1 }
 0x2ea   : > { %v3593_v6 = vadd.f32 %v3592_v57, %v3591_v14  ;;  %v3705_v58 = vadd.f32 %v3704_v12, %v3703_v15  ;;  %v3594_v16 = vpop.f32.mrb[130].mxu0  ;;  %v3706_v49 = vpop.f32.mrb[130].mxu1 }
 0x2eb   : > { %v3595_v50 = vpop.f32.mrb[131].mxu0  ;;  %v3707_v1 = vpop.f32.mrb[131].mxu1 }
 0x2ec   : > { %v5420_v45 = vadd.f32 %v3705_v58, %v3593_v6  ;;  %v3596_v48 = vadd.f32 %v3595_v50, %v3594_v16  ;;  %v3708_v61 = vadd.f32 %v3707_v1, %v3706_v49 }
 0x2ed   : > { %3055 = vmatmul.mubr.bf16.gmra.mrb[236].mxu0 %v5360_v8  ;;  %3216 = vmatmul.mubr.bf16.gmra.mrb[236].mxu1 %v5362_v13 }
 0x2ee   : > { %v5424_v60 = vadd.f32 %v3708_v61, %v3596_v48  ;;  %3062 = vmatprep.mubr.bf16.mxu0 %v5378_v47  ;;  %3223 = vmatprep.mubr.bf16.mxu1 %v5380_v23 }
 0x2f0   : > { %v3597_v63 = vpop.f32.mrb[132].mxu0  ;;  %v3709_v9 = vpop.f32.mrb[132].mxu1 }
 0x2f1   : > { %v3598_v22 = vpop.f32.mrb[133].mxu0  ;;  %v3710_v55 = vpop.f32.mrb[133].mxu1 }
 0x2f2   : > { %v3599_v18 = vadd.f32 %v3598_v22, %v3597_v63  ;;  %v3711_v44 = vadd.f32 %v3710_v55, %v3709_v9  ;;  %v3600_v19 = vpop.f32.mrb[134].mxu0  ;;  %v3712_v21 = vpop.f32.mrb[134].mxu1 }
 0x2f3   : > { %v3601_v52 = vpop.f32.mrb[135].mxu0  ;;  %v3713_v7 = vpop.f32.mrb[135].mxu1 }
 0x2f4   : > { %v5428_v56 = vadd.f32 %v3711_v44, %v3599_v18  ;;  %v3602_v8 = vadd.f32 %v3601_v52, %v3600_v19  ;;  %v3714_v13 = vadd.f32 %v3713_v7, %v3712_v21 }
 0x2f5   : > { %3063 = vmatmul.mubr.bf16.gmra.mrb[240].mxu0 %v5372_v25  ;;  %3224 = vmatmul.mubr.bf16.gmra.mrb[240].mxu1 %v5374_v5 }
 0x2f6   : > { %v5432_v47 = vadd.f32 %v3714_v13, %v3602_v8  ;;  %3070 = vmatprep.mubr.bf16.mxu0 %v5390_v39  ;;  %3231 = vmatprep.mubr.bf16.mxu1 %v5392_v59 }
 0x2f8   : > { %v3603_v23 = vpop.f32.mrb[136].mxu0  ;;  %v3715_v51 = vpop.f32.mrb[136].mxu1 }
 0x2f9   : > { %v3604_v40 = vpop.f32.mrb[137].mxu0  ;;  %v3716_v26 = vpop.f32.mrb[137].mxu1 }
 0x2fa   : > { %v3605_v3 = vadd.f32 %v3604_v40, %v3603_v23  ;;  %v3717_v20 = vadd.f32 %v3716_v26, %v3715_v51  ;;  %v3606_v11 = vpop.f32.mrb[138].mxu0  ;;  %v3718_v36 = vpop.f32.mrb[138].mxu1 }
 0x2fb   : > { %v3607_v0 = vpop.f32.mrb[139].mxu0  ;;  %v3719_v28 = vpop.f32.mrb[139].mxu1 }
 0x2fc   : > { %v5436_v29 = vadd.f32 %v3717_v20, %v3605_v3  ;;  %v3608_v25 = vadd.f32 %v3607_v0, %v3606_v11  ;;  %v3720_v5 = vadd.f32 %v3719_v28, %v3718_v36 }
 0x2fd   : > { %3071 = vmatmul.mubr.bf16.gmra.mrb[244].mxu0 %v5384_v46  ;;  %3232 = vmatmul.mubr.bf16.gmra.mrb[244].mxu1 %v5386_v2 }
 0x2fe   : > { %v5440_v39 = vadd.f32 %v3720_v5, %v3608_v25  ;;  %3078 = vmatprep.mubr.bf16.mxu0 %v5402_v42  ;;  %3239 = vmatprep.mubr.bf16.mxu1 %v5404_v35 }
 0x300   : > { %v3609_v59 = vpop.f32.mrb[140].mxu0  ;;  %v3721_v32 = vpop.f32.mrb[140].mxu1 }
 0x301   : > { %v3610_v27 = vpop.f32.mrb[141].mxu0  ;;  %v3722_v24 = vpop.f32.mrb[141].mxu1 }
 0x302   : > { %v3611_v30 = vadd.f32 %v3610_v27, %v3609_v59  ;;  %v3723_v62 = vadd.f32 %v3722_v24, %v3721_v32  ;;  %v3612_v53 = vpop.f32.mrb[142].mxu0  ;;  %v3724_v4 = vpop.f32.mrb[142].mxu1 }
 0x303   : > { %v3613_v34 = vpop.f32.mrb[143].mxu0  ;;  %v3725_v31 = vpop.f32.mrb[143].mxu1 }
 0x304   : > { %v5444_v38 = vadd.f32 %v3723_v62, %v3611_v30  ;;  %v3614_v46 = vadd.f32 %v3613_v34, %v3612_v53  ;;  %v3726_v2 = vadd.f32 %v3725_v31, %v3724_v4 }
 0x305   : > { %3079 = vmatmul.mubr.bf16.gmra.mrb[248].mxu0 %v5396_v37  ;;  %3240 = vmatmul.mubr.bf16.gmra.mrb[248].mxu1 %v5398_v54 }
 0x306   : > { %v5448_v42 = vadd.f32 %v3726_v2, %v3614_v46  ;;  %3086 = vmatprep.mubr.bf16.mxu0 %v5414_v41  ;;  %3247 = vmatprep.mubr.bf16.mxu1 %v5416_v33 }
 0x308   : > { %v3615_v35 = vpop.f32.mrb[144].mxu0  ;;  %v3727_v43 = vpop.f32.mrb[144].mxu1 }
 0x309   : > { %v3616_v14 = vpop.f32.mrb[145].mxu0  ;;  %v3728_v15 = vpop.f32.mrb[145].mxu1 }
 0x30a   : > { %v3617_v57 = vadd.f32 %v3616_v14, %v3615_v35  ;;  %v3729_v12 = vadd.f32 %v3728_v15, %v3727_v43  ;;  %v3618_v6 = vpop.f32.mrb[146].mxu0  ;;  %v3730_v58 = vpop.f32.mrb[146].mxu1 }
 0x30b   : > { %v3619_v16 = vpop.f32.mrb[147].mxu0  ;;  %v3731_v49 = vpop.f32.mrb[147].mxu1 }
 0x30c   : > { %v5452_v50 = vadd.f32 %v3729_v12, %v3617_v57  ;;  %v3620_v37 = vadd.f32 %v3619_v16, %v3618_v6  ;;  %v3732_v54 = vadd.f32 %v3731_v49, %v3730_v58 }
 0x30d   : > { %3087 = vmatmul.mubr.bf16.gmra.mrb[252].mxu0 %v5408_v17  ;;  %3248 = vmatmul.mubr.bf16.gmra.mrb[252].mxu1 %v5410_v10 }
 0x30e   : > { %v5456_v41 = vadd.f32 %v3732_v54, %v3620_v37 }
 0x310   : > { %v3621_v33 = vpop.f32.mrb[148].mxu0  ;;  %v3733_v1 = vpop.f32.mrb[148].mxu1 }
 0x311   : > { %v3622_v48 = vpop.f32.mrb[149].mxu0  ;;  %v3734_v61 = vpop.f32.mrb[149].mxu1 }
 0x312   : > { %v3623_v63 = vadd.f32 %v3622_v48, %v3621_v33  ;;  %v3735_v9 = vadd.f32 %v3734_v61, %v3733_v1  ;;  %v3624_v22 = vpop.f32.mrb[150].mxu0  ;;  %v3736_v55 = vpop.f32.mrb[150].mxu1 }
 0x313   : > { %v3625_v18 = vpop.f32.mrb[151].mxu0  ;;  %v3737_v44 = vpop.f32.mrb[151].mxu1 }
 0x314   : > { %v5458_v19 = vadd.f32 %v3735_v9, %v3623_v63  ;;  %v3626_v21 = vadd.f32 %v3625_v18, %v3624_v22  ;;  %v3738_v52 = vadd.f32 %v3737_v44, %v3736_v55 }
 0x316   : > { %v5460_v7 = vadd.f32 %v3738_v52, %v3626_v21 }
 0x318   : > { %v3627_v17 = vpop.f32.mrb[152].mxu0  ;;  %v3739_v10 = vpop.f32.mrb[152].mxu1 }
 0x319   : > { %v3628_v8 = vpop.f32.mrb[153].mxu0  ;;  %v3740_v13 = vpop.f32.mrb[153].mxu1 }
 0x31a   : > { %v3629_v23 = vadd.f32 %v3628_v8, %v3627_v17  ;;  %v3741_v51 = vadd.f32 %v3740_v13, %v3739_v10  ;;  %v3630_v40 = vpop.f32.mrb[154].mxu0  ;;  %v3742_v26 = vpop.f32.mrb[154].mxu1 }
 0x31b   : > { %v3631_v3 = vpop.f32.mrb[155].mxu0  ;;  %v3743_v20 = vpop.f32.mrb[155].mxu1 }
 0x31c   : > { %v5462_v11 = vadd.f32 %v3741_v51, %v3629_v23  ;;  %v3632_v36 = vadd.f32 %v3631_v3, %v3630_v40  ;;  %v3744_v0 = vadd.f32 %v3743_v20, %v3742_v26 }
 0x31e   : > { %v5464_v28 = vadd.f32 %v3744_v0, %v3632_v36 }
 0x320   : > { %v3633_v25 = vpop.f32.mrb[156].mxu0  ;;  %v3745_v5 = vpop.f32.mrb[156].mxu1 }
 0x321   : > { %v3634_v59 = vpop.f32.mrb[157].mxu0  ;;  %v3746_v32 = vpop.f32.mrb[157].mxu1 }
 0x322   : > { %v3635_v27 = vadd.f32 %v3634_v59, %v3633_v25  ;;  %v3747_v24 = vadd.f32 %v3746_v32, %v3745_v5  ;;  %v3636_v30 = vpop.f32.mrb[158].mxu0  ;;  %v3748_v62 = vpop.f32.mrb[158].mxu1 }
 0x323   : > { %v3637_v53 = vpop.f32.mrb[159].mxu0  ;;  %v3749_v4 = vpop.f32.mrb[159].mxu1 }
 0x324   : > { %v5466_v34 = vadd.f32 %v3747_v24, %v3635_v27  ;;  %v3638_v31 = vadd.f32 %v3637_v53, %v3636_v30  ;;  %v3750_v46 = vadd.f32 %v3749_v4, %v3748_v62 }
 0x326   : > { %v5468_v2 = vadd.f32 %v3750_v46, %v3638_v31 }
 0x328   : > { %v3639_v35 = vpop.f32.mrb[160].mxu0  ;;  %v3751_v43 = vpop.f32.mrb[160].mxu1 }
 0x329   : > { %v3640_v14 = vpop.f32.mrb[161].mxu0  ;;  %v3752_v15 = vpop.f32.mrb[161].mxu1 }
 0x32a   : > { %v3641_v57 = vadd.f32 %v3640_v14, %v3639_v35  ;;  %v3753_v12 = vadd.f32 %v3752_v15, %v3751_v43  ;;  %v3642_v6 = vpop.f32.mrb[162].mxu0  ;;  %v3754_v58 = vpop.f32.mrb[162].mxu1 }
 0x32b   : > { %v3643_v16 = vpop.f32.mrb[163].mxu0  ;;  %v3755_v49 = vpop.f32.mrb[163].mxu1 }
 0x32c   : > { %v5470_v37 = vadd.f32 %v3753_v12, %v3641_v57  ;;  %v3644_v54 = vadd.f32 %v3643_v16, %v3642_v6  ;;  %v3756_v33 = vadd.f32 %v3755_v49, %v3754_v58 }
 0x32e   : > { %v5472_v1 = vadd.f32 %v3756_v33, %v3644_v54 }
 0x330   : > { %v3645_v48 = vpop.f32.mrb[164].mxu0  ;;  %v3757_v61 = vpop.f32.mrb[164].mxu1 }
 0x331   : > { %v3646_v63 = vpop.f32.mrb[165].mxu0  ;;  %v3758_v9 = vpop.f32.mrb[165].mxu1 }
 0x332   : > { %v3647_v22 = vadd.f32 %v3646_v63, %v3645_v48  ;;  %v3759_v55 = vadd.f32 %v3758_v9, %v3757_v61  ;;  %v3648_v18 = vpop.f32.mrb[166].mxu0  ;;  %v3760_v44 = vpop.f32.mrb[166].mxu1 }
 0x333   : > { %v3649_v21 = vpop.f32.mrb[167].mxu0  ;;  %v3761_v52 = vpop.f32.mrb[167].mxu1 }
 0x334   : > { %v5474_v17 = vadd.f32 %v3759_v55, %v3647_v22  ;;  %v3650_v10 = vadd.f32 %v3649_v21, %v3648_v18  ;;  %v3762_v8 = vadd.f32 %v3761_v52, %v3760_v44 }
 0x336   : > { %v5476_v13 = vadd.f32 %v3762_v8, %v3650_v10 }
 0x338   : > { %v3651_v23 = vpop.f32.mrb[168].mxu0  ;;  %v3763_v51 = vpop.f32.mrb[168].mxu1 }
 0x339   : > { %v3652_v40 = vpop.f32.mrb[169].mxu0  ;;  %v3764_v26 = vpop.f32.mrb[169].mxu1 }
 0x33a   : > { %v3653_v3 = vadd.f32 %v3652_v40, %v3651_v23  ;;  %v3765_v20 = vadd.f32 %v3764_v26, %v3763_v51  ;;  %v3654_v36 = vpop.f32.mrb[170].mxu0  ;;  %v3766_v0 = vpop.f32.mrb[170].mxu1 }
 0x33b   : > { %v3655_v25 = vpop.f32.mrb[171].mxu0  ;;  %v3767_v5 = vpop.f32.mrb[171].mxu1 }
 0x33c   : > { %v5478_v59 = vadd.f32 %v3765_v20, %v3653_v3  ;;  %v3656_v32 = vadd.f32 %v3655_v25, %v3654_v36  ;;  %v3768_v27 = vadd.f32 %v3767_v5, %v3766_v0 }
 0x33e   : > { %v5480_v24 = vadd.f32 %v3768_v27, %v3656_v32 }
 0x340   : > { %v3657_v30 = vpop.f32.mrb[172].mxu0  ;;  %v3769_v62 = vpop.f32.mrb[172].mxu1 }
 0x341   : > { %v3658_v53 = vpop.f32.mrb[173].mxu0  ;;  %v3770_v4 = vpop.f32.mrb[173].mxu1 }
 0x342   : > { %v3659_v31 = vadd.f32 %v3658_v53, %v3657_v30  ;;  %v3771_v46 = vadd.f32 %v3770_v4, %v3769_v62  ;;  %v3660_v35 = vpop.f32.mrb[174].mxu0  ;;  %v3772_v43 = vpop.f32.mrb[174].mxu1 }
 0x343   : > { %v3661_v14 = vpop.f32.mrb[175].mxu0  ;;  %v3773_v15 = vpop.f32.mrb[175].mxu1 }
 0x344   : > { %v5482_v57 = vadd.f32 %v3771_v46, %v3659_v31  ;;  %v3662_v12 = vadd.f32 %v3661_v14, %v3660_v35  ;;  %v3774_v6 = vadd.f32 %v3773_v15, %v3772_v43 }
 0x346   : > { %v5484_v58 = vadd.f32 %v3774_v6, %v3662_v12 }
 0x348   : > { %v3663_v16 = vpop.f32.mrb[176].mxu0  ;;  %v3775_v49 = vpop.f32.mrb[176].mxu1 }
 0x349   : > { %v3664_v54 = vpop.f32.mrb[177].mxu0  ;;  %v3776_v33 = vpop.f32.mrb[177].mxu1 }
 0x34a   : > { %v3665_v48 = vadd.f32 %v3664_v54, %v3663_v16  ;;  %v3777_v61 = vadd.f32 %v3776_v33, %v3775_v49  ;;  %v3666_v63 = vpop.f32.mrb[178].mxu0  ;;  %v3778_v9 = vpop.f32.mrb[178].mxu1 }
 0x34b   : > { %v3667_v22 = vpop.f32.mrb[179].mxu0  ;;  %v3779_v55 = vpop.f32.mrb[179].mxu1 }
 0x34c   : > { %v5486_v18 = vadd.f32 %v3777_v61, %v3665_v48  ;;  %v3668_v44 = vadd.f32 %v3667_v22, %v3666_v63  ;;  %v3780_v21 = vadd.f32 %v3779_v55, %v3778_v9 }
 0x34e   : > { %v5488_v52 = vadd.f32 %v3780_v21, %v3668_v44 }
 0x350   : > { %v3669_v10 = vpop.f32.mrb[180].mxu0  ;;  %v3781_v8 = vpop.f32.mrb[180].mxu1 }
 0x351   : > { %v3670_v23 = vpop.f32.mrb[181].mxu0  ;;  %v3782_v51 = vpop.f32.mrb[181].mxu1 }
 0x352   : > { %v3671_v40 = vadd.f32 %v3670_v23, %v3669_v10  ;;  %v3783_v26 = vadd.f32 %v3782_v51, %v3781_v8  ;;  %v3672_v3 = vpop.f32.mrb[182].mxu0  ;;  %v3784_v20 = vpop.f32.mrb[182].mxu1 }
 0x353   : > { %v3673_v36 = vpop.f32.mrb[183].mxu0  ;;  %v3785_v0 = vpop.f32.mrb[183].mxu1 }
 0x354   : > { %v5490_v25 = vadd.f32 %v3783_v26, %v3671_v40  ;;  %v3674_v5 = vadd.f32 %v3673_v36, %v3672_v3  ;;  %v3786_v32 = vadd.f32 %v3785_v0, %v3784_v20 }
 0x356   : > { %v5492_v27 = vadd.f32 %v3786_v32, %v3674_v5 }
 0x358   : > { %v3675_v30 = vpop.f32.mrb[184].mxu0  ;;  %v3787_v62 = vpop.f32.mrb[184].mxu1 }
 0x359   : > { %v3676_v53 = vpop.f32.mrb[185].mxu0  ;;  %v3788_v4 = vpop.f32.mrb[185].mxu1 }
 0x35a   : > { %v3677_v31 = vadd.f32 %v3676_v53, %v3675_v30  ;;  %v3789_v46 = vadd.f32 %v3788_v4, %v3787_v62  ;;  %v3678_v35 = vpop.f32.mrb[186].mxu0  ;;  %v3790_v43 = vpop.f32.mrb[186].mxu1 }
 0x35b   : > { %v3679_v14 = vpop.f32.mrb[187].mxu0  ;;  %v3791_v15 = vpop.f32.mrb[187].mxu1 }
 0x35c   : > { %v5494_v12 = vadd.f32 %v3789_v46, %v3677_v31  ;;  %v3680_v6 = vadd.f32 %v3679_v14, %v3678_v35  ;;  %v3792_v16 = vadd.f32 %v3791_v15, %v3790_v43  ;;  %v4227_v43 = vld [vmem:[%s4633_s13] sm:$0xff] }
 0x35e   : > { %v5496_v49 = vadd.f32 %v3792_v16, %v3680_v6 }
 0x360   : > { %v3681_v54 = vpop.f32.mrb[188].mxu0  ;;  %v3793_v33 = vpop.f32.mrb[188].mxu1 }
 0x361   : > { %v3682_v48 = vpop.f32.mrb[189].mxu0  ;;  %v3794_v61 = vpop.f32.mrb[189].mxu1 }
 0x362   : > { %v3683_v63 = vadd.f32 %v3682_v48, %v3681_v54  ;;  %v3795_v9 = vadd.f32 %v3794_v61, %v3793_v33  ;;  %v3684_v22 = vpop.f32.mrb[190].mxu0  ;;  %v3796_v55 = vpop.f32.mrb[190].mxu1 }
 0x363   : > { %v3685_v44 = vpop.f32.mrb[191].mxu0  ;;  %v3797_v21 = vpop.f32.mrb[191].mxu1 }
 0x364   : > { %v5498_v10 = vadd.f32 %v3795_v9, %v3683_v63  ;;  %v3686_v8 = vadd.f32 %v3685_v44, %v3684_v22  ;;  %v3798_v23 = vadd.f32 %v3797_v21, %v3796_v55 }
 0x366   : > { %v5500_v51 = vadd.f32 %v3798_v23, %v3686_v8 }
 0x368   : > { %v3815_v40 = vpop.f32.mrb[192].mxu0  ;;  %v3927_v26 = vpop.f32.mrb[192].mxu1 }
 0x369   : > { %v3816_v3 = vpop.f32.mrb[193].mxu0  ;;  %v3928_v20 = vpop.f32.mrb[193].mxu1 }
 0x36a   : > { %v3817_v36 = vadd.f32 %v3816_v3, %v3815_v40  ;;  %v3929_v0 = vadd.f32 %v3928_v20, %v3927_v26  ;;  %v3818_v5 = vpop.f32.mrb[194].mxu0  ;;  %v3930_v32 = vpop.f32.mrb[194].mxu1  ;;  %v4229_v26 = vld [vmem:[%s4633_s13 + $0x10] sm:$0xff] }
 0x36b   : > { %v3819_v30 = vpop.f32.mrb[195].mxu0  ;;  %v3931_v62 = vpop.f32.mrb[195].mxu1 }
 0x36c   : > { %v2969_v53 = vadd.f32 %v3817_v36, %v5420_v45  ;;  %v3820_v4 = vadd.f32 %v3819_v30, %v3818_v5  ;;  %v3932_v31 = vadd.f32 %v3931_v62, %v3930_v32  ;;  %v4228_v45 = vld [vmem:[%s4633_s13 + $0x8] sm:$0xff]  ;;  %v4230_v30 = vld [vmem:[%s4633_s13 + $0x18] sm:$0xff] }
 0x36e   : > { %v3130_v46 = vadd.f32 %v3929_v0, %v2969_v53  ;;  %v2972_v35 = vadd.f32 %v3820_v4, %v5424_v60 }
 0x370   : > { %v3256_v14 = vadd.f32 %v4227_v43, %v3130_v46  ;;  %v3133_v15 = vadd.f32 %v3932_v31, %v2972_v35  ;;  %v3821_v6 = vpop.f32.mrb[196].mxu0  ;;  %v3933_v16 = vpop.f32.mrb[196].mxu1 }
 0x371   : > { %v3822_v54 = vpop.f32.mrb[197].mxu0  ;;  %v3934_v33 = vpop.f32.mrb[197].mxu1 }
 0x372   : > { %3288 = vst [vmem:[%s5507_s30] sm:$0xff] %v3256_v14  ;;  %v3257_v48 = vadd.f32 %v4228_v45, %v3133_v15  ;;  %v3823_v61 = vadd.f32 %v3822_v54, %v3821_v6  ;;  %v3935_v63 = vadd.f32 %v3934_v33, %v3933_v16  ;;  %v3824_v9 = vpop.f32.mrb[198].mxu0  ;;  %v3936_v60 = vpop.f32.mrb[198].mxu1  ;;  %v4231_v16 = vld [vmem:[%s4633_s13 + $0x20] sm:$0xff] }
 0x373   : > { %v3825_v22 = vpop.f32.mrb[199].mxu0  ;;  %v3937_v55 = vpop.f32.mrb[199].mxu1 }
 0x374   : > { %3289 = vst [vmem:[%s5507_s30 + $0x8] sm:$0xff] %v3257_v48  ;;  %v2977_v44 = vadd.f32 %v3823_v61, %v5428_v56  ;;  %v3826_v21 = vadd.f32 %v3825_v22, %v3824_v9  ;;  %v3938_v8 = vadd.f32 %v3937_v55, %v3936_v60  ;;  %v4232_v9 = vld [vmem:[%s4633_s13 + $0x28] sm:$0xff] }
 0x376   : > { %v3138_v23 = vadd.f32 %v3935_v63, %v2977_v44  ;;  %v2980_v40 = vadd.f32 %v3826_v21, %v5432_v47 }
 0x378   : > { %v3258_v3 = vadd.f32 %v4229_v26, %v3138_v23  ;;  %v3141_v20 = vadd.f32 %v3938_v8, %v2980_v40  ;;  %v3827_v36 = vpop.f32.mrb[200].mxu0  ;;  %v3939_v0 = vpop.f32.mrb[200].mxu1 }
 0x379   : > { %v3828_v5 = vpop.f32.mrb[201].mxu0  ;;  %v3940_v32 = vpop.f32.mrb[201].mxu1 }
 0x37a   : > { %3290 = vst [vmem:[%s5507_s30 + $0x10] sm:$0xff] %v3258_v3  ;;  %v3259_v62 = vadd.f32 %v4230_v30, %v3141_v20  ;;  %v3829_v53 = vadd.f32 %v3828_v5, %v3827_v36  ;;  %v3941_v4 = vadd.f32 %v3940_v32, %v3939_v0  ;;  %v3830_v56 = vpop.f32.mrb[202].mxu0  ;;  %v3942_v31 = vpop.f32.mrb[202].mxu1  ;;  %v4233_v20 = vld [vmem:[%s4633_s13 + $0x30] sm:$0xff] }
 0x37b   : > { %v3831_v46 = vpop.f32.mrb[203].mxu0  ;;  %v3943_v47 = vpop.f32.mrb[203].mxu1 }
 0x37c   : > { %3291 = vst [vmem:[%s5507_s30 + $0x18] sm:$0xff] %v3259_v62  ;;  %v2985_v35 = vadd.f32 %v3829_v53, %v5436_v29  ;;  %v3832_v43 = vadd.f32 %v3831_v46, %v3830_v56  ;;  %v3944_v14 = vadd.f32 %v3943_v47, %v3942_v31  ;;  %v4234_v53 = vld [vmem:[%s4633_s13 + $0x38] sm:$0xff] }
 0x37e   : > { %v3146_v15 = vadd.f32 %v3941_v4, %v2985_v35  ;;  %v2988_v6 = vadd.f32 %v3832_v43, %v5440_v39 }
 0x380   : > { %v3260_v54 = vadd.f32 %v4231_v16, %v3146_v15  ;;  %v3149_v33 = vadd.f32 %v3944_v14, %v2988_v6  ;;  %v3833_v45 = vpop.f32.mrb[204].mxu0  ;;  %v3945_v48 = vpop.f32.mrb[204].mxu1  ;;  %v4235_v16 = vld [vmem:[%s4633_s13 + $0x40] sm:$0xff] }
 0x381   : > { %v3834_v61 = vpop.f32.mrb[205].mxu0  ;;  %v3946_v63 = vpop.f32.mrb[205].mxu1 }
 0x382   : > { %3292 = vst [vmem:[%s5507_s30 + $0x20] sm:$0xff] %v3260_v54  ;;  %v3261_v60 = vadd.f32 %v4232_v9, %v3149_v33  ;;  %v3835_v22 = vadd.f32 %v3834_v61, %v3833_v45  ;;  %v3947_v55 = vadd.f32 %v3946_v63, %v3945_v48  ;;  %v3836_v29 = vpop.f32.mrb[206].mxu0  ;;  %v3948_v44 = vpop.f32.mrb[206].mxu1  ;;  %v4236_v9 = vld [vmem:[%s4633_s13 + $0x48] sm:$0xff] }
 0x383   : > { %v3837_v21 = vpop.f32.mrb[207].mxu0  ;;  %v3949_v39 = vpop.f32.mrb[207].mxu1 }
 0x384   : > { %3293 = vst [vmem:[%s5507_s30 + $0x28] sm:$0xff] %v3261_v60  ;;  %v2993_v8 = vadd.f32 %v3835_v22, %v5444_v38  ;;  %v3838_v23 = vadd.f32 %v3837_v21, %v3836_v29  ;;  %v3950_v40 = vadd.f32 %v3949_v39, %v3948_v44 }
 0x386   : > { %v3154_v26 = vadd.f32 %v3947_v55, %v2993_v8  ;;  %v2996_v3 = vadd.f32 %v3838_v23, %v5448_v42 }
 0x388   : > { %v3262_v36 = vadd.f32 %v4233_v20, %v3154_v26  ;;  %v3157_v0 = vadd.f32 %v3950_v40, %v2996_v3  ;;  %v3839_v5 = vpop.f32.mrb[208].mxu0  ;;  %v3951_v32 = vpop.f32.mrb[208].mxu1  ;;  %v4237_v26 = vld [vmem:[%s4633_s13 + $0x50] sm:$0xff] }
 0x389   : > { %v3840_v30 = vpop.f32.mrb[209].mxu0  ;;  %v3952_v62 = vpop.f32.mrb[209].mxu1 }
 0x38a   : > { %3294 = vst [vmem:[%s5507_s30 + $0x30] sm:$0xff] %v3262_v36  ;;  %v3263_v4 = vadd.f32 %v4234_v53, %v3157_v0  ;;  %v3841_v56 = vadd.f32 %v3840_v30, %v3839_v5  ;;  %v3953_v31 = vadd.f32 %v3952_v62, %v3951_v32  ;;  %v3842_v38 = vpop.f32.mrb[210].mxu0  ;;  %v3954_v46 = vpop.f32.mrb[210].mxu1  ;;  %v4238_v30 = vld [vmem:[%s4633_s13 + $0x58] sm:$0xff] }
 0x38b   : > { %v3843_v47 = vpop.f32.mrb[211].mxu0  ;;  %v3955_v42 = vpop.f32.mrb[211].mxu1 }
 0x38c   : > { %3295 = vst [vmem:[%s5507_s30 + $0x38] sm:$0xff] %v3263_v4  ;;  %v3001_v35 = vadd.f32 %v3841_v56, %v5452_v50  ;;  %v3844_v43 = vadd.f32 %v3843_v47, %v3842_v38  ;;  %v3956_v14 = vadd.f32 %v3955_v42, %v3954_v46 }
 0x38e   : > { %v3162_v15 = vadd.f32 %v3953_v31, %v3001_v35  ;;  %v3004_v6 = vadd.f32 %v3844_v43, %v5456_v41  ;;  %v4239_v43 = vld [vmem:[%s4633_s13 + $0x60] sm:$0xff] }
 0x390   : > { %v3264_v54 = vadd.f32 %v4235_v16, %v3162_v15  ;;  %v3165_v33 = vadd.f32 %v3956_v14, %v3004_v6  ;;  %v3845_v45 = vpop.f32.mrb[212].mxu0  ;;  %v3957_v48 = vpop.f32.mrb[212].mxu1 }
 0x391   : > { %v3846_v61 = vpop.f32.mrb[213].mxu0  ;;  %v3958_v63 = vpop.f32.mrb[213].mxu1 }
 0x392   : > { %3296 = vst [vmem:[%s5507_s30 + $0x40] sm:$0xff] %v3264_v54  ;;  %v3265_v60 = vadd.f32 %v4236_v9, %v3165_v33  ;;  %v3847_v22 = vadd.f32 %v3846_v61, %v3845_v45  ;;  %v3959_v55 = vadd.f32 %v3958_v63, %v3957_v48  ;;  %v3848_v50 = vpop.f32.mrb[214].mxu0  ;;  %v3960_v29 = vpop.f32.mrb[214].mxu1  ;;  %v4240_v45 = vld [vmem:[%s4633_s13 + $0x68] sm:$0xff] }
 0x393   : > { %v3849_v44 = vpop.f32.mrb[215].mxu0  ;;  %v3961_v41 = vpop.f32.mrb[215].mxu1 }
 0x394   : > { %3297 = vst [vmem:[%s5507_s30 + $0x48] sm:$0xff] %v3265_v60  ;;  %v3009_v21 = vadd.f32 %v3847_v22, %v5458_v19  ;;  %v3850_v39 = vadd.f32 %v3849_v44, %v3848_v50  ;;  %v3962_v8 = vadd.f32 %v3961_v41, %v3960_v29  ;;  %v4241_v41 = vld [vmem:[%s4633_s13 + $0x70] sm:$0xff] }
 0x396   : > { %v3170_v23 = vadd.f32 %v3959_v55, %v3009_v21  ;;  %v3012_v40 = vadd.f32 %v3850_v39, %v5460_v7 }
 0x398   : > { %v3266_v3 = vadd.f32 %v4237_v26, %v3170_v23  ;;  %v3173_v20 = vadd.f32 %v3962_v8, %v3012_v40  ;;  %v3851_v36 = vpop.f32.mrb[216].mxu0  ;;  %v3963_v0 = vpop.f32.mrb[216].mxu1 }
 0x399   : > { %v3852_v5 = vpop.f32.mrb[217].mxu0  ;;  %v3964_v32 = vpop.f32.mrb[217].mxu1 }
 0x39a   : > { %3298 = vst [vmem:[%s5507_s30 + $0x50] sm:$0xff] %v3266_v3  ;;  %v3267_v62 = vadd.f32 %v4238_v30, %v3173_v20  ;;  %v3853_v53 = vadd.f32 %v3852_v5, %v3851_v36  ;;  %v3965_v4 = vadd.f32 %v3964_v32, %v3963_v0  ;;  %v3854_v19 = vpop.f32.mrb[218].mxu0  ;;  %v3966_v56 = vpop.f32.mrb[218].mxu1  ;;  %v4242_v3 = vld [vmem:[%s4633_s13 + $0x78] sm:$0xff] }
 0x39b   : > { %v3855_v31 = vpop.f32.mrb[219].mxu0  ;;  %v3967_v7 = vpop.f32.mrb[219].mxu1 }
 0x39c   : > { %3299 = vst [vmem:[%s5507_s30 + $0x58] sm:$0xff] %v3267_v62  ;;  %v3017_v38 = vadd.f32 %v3853_v53, %v5462_v11  ;;  %v3856_v46 = vadd.f32 %v3855_v31, %v3854_v19  ;;  %v3968_v47 = vadd.f32 %v3967_v7, %v3966_v56  ;;  %v4243_v56 = vld [vmem:[%s4633_s13 + $0x80] sm:$0xff] }
 0x39e   : > { %v3178_v42 = vadd.f32 %v3965_v4, %v3017_v38  ;;  %v3020_v35 = vadd.f32 %v3856_v46, %v5464_v28 }
 0x3a0   : > { %v3268_v14 = vadd.f32 %v4239_v43, %v3178_v42  ;;  %v3181_v15 = vadd.f32 %v3968_v47, %v3020_v35  ;;  %v3857_v6 = vpop.f32.mrb[220].mxu0  ;;  %v3969_v16 = vpop.f32.mrb[220].mxu1  ;;  %v4244_v35 = vld [vmem:[%s4633_s13 + $0x88] sm:$0xff] }
 0x3a1   : > { %v3858_v54 = vpop.f32.mrb[221].mxu0  ;;  %v3970_v33 = vpop.f32.mrb[221].mxu1 }
 0x3a2   : > { %3300 = vst [vmem:[%s5507_s30 + $0x60] sm:$0xff] %v3268_v14  ;;  %v3269_v48 = vadd.f32 %v4240_v45, %v3181_v15  ;;  %v3859_v61 = vadd.f32 %v3858_v54, %v3857_v6  ;;  %v3971_v63 = vadd.f32 %v3970_v33, %v3969_v16  ;;  %v3860_v11 = vpop.f32.mrb[222].mxu0  ;;  %v3972_v9 = vpop.f32.mrb[222].mxu1 }
 0x3a3   : > { %v3861_v60 = vpop.f32.mrb[223].mxu0  ;;  %v3973_v28 = vpop.f32.mrb[223].mxu1 }
 0x3a4   : > { %3301 = vst [vmem:[%s5507_s30 + $0x68] sm:$0xff] %v3269_v48  ;;  %v3025_v22 = vadd.f32 %v3859_v61, %v5466_v34  ;;  %v3862_v55 = vadd.f32 %v3861_v60, %v3860_v11  ;;  %v3974_v50 = vadd.f32 %v3973_v28, %v3972_v9 }
 0x3a6   : > { %v3186_v29 = vadd.f32 %v3971_v63, %v3025_v22  ;;  %v3028_v44 = vadd.f32 %v3862_v55, %v5468_v2  ;;  %v4245_v63 = vld [vmem:[%s4633_s13 + $0x90] sm:$0xff] }
 0x3a8   : > { %v3270_v21 = vadd.f32 %v4241_v41, %v3186_v29  ;;  %v3189_v39 = vadd.f32 %v3974_v50, %v3028_v44  ;;  %v3863_v8 = vpop.f32.mrb[224].mxu0  ;;  %v3975_v23 = vpop.f32.mrb[224].mxu1  ;;  %v4246_v50 = vld [vmem:[%s4633_s13 + $0x98] sm:$0xff] }
 0x3a9   : > { %v3864_v40 = vpop.f32.mrb[225].mxu0  ;;  %v3976_v26 = vpop.f32.mrb[225].mxu1 }
 0x3aa   : > { %3302 = vst [vmem:[%s5507_s30 + $0x70] sm:$0xff] %v3270_v21  ;;  %v3271_v20 = vadd.f32 %v4242_v3, %v3189_v39  ;;  %v3865_v36 = vadd.f32 %v3864_v40, %v3863_v8  ;;  %v3977_v0 = vadd.f32 %v3976_v26, %v3975_v23  ;;  %v3866_v34 = vpop.f32.mrb[226].mxu0  ;;  %v3978_v5 = vpop.f32.mrb[226].mxu1 }
 0x3ab   : > { %v3867_v32 = vpop.f32.mrb[227].mxu0  ;;  %v3979_v2 = vpop.f32.mrb[227].mxu1 }
 0x3ac   : > { %3303 = vst [vmem:[%s5507_s30 + $0x78] sm:$0xff] %v3271_v20  ;;  %v3033_v30 = vadd.f32 %v3865_v36, %v5470_v37  ;;  %v3868_v62 = vadd.f32 %v3867_v32, %v3866_v34  ;;  %v3980_v53 = vadd.f32 %v3979_v2, %v3978_v5  ;;  %v4247_v20 = vld [vmem:[%s4633_s13 + $0xa0] sm:$0xff] }
 0x3ae   : > { %v3194_v4 = vadd.f32 %v3977_v0, %v3033_v30  ;;  %v3036_v19 = vadd.f32 %v3868_v62, %v5472_v1  ;;  %v4248_v30 = vld [vmem:[%s4633_s13 + $0xa8] sm:$0xff] }
 0x3b0   : > { %v3272_v31 = vadd.f32 %v4243_v56, %v3194_v4  ;;  %v3197_v7 = vadd.f32 %v3980_v53, %v3036_v19  ;;  %v3869_v38 = vpop.f32.mrb[228].mxu0  ;;  %v3981_v46 = vpop.f32.mrb[228].mxu1 }
 0x3b1   : > { %v3870_v47 = vpop.f32.mrb[229].mxu0  ;;  %v3982_v42 = vpop.f32.mrb[229].mxu1 }
 0x3b2   : > { %3304 = vst [vmem:[%s5507_s30 + $0x80] sm:$0xff] %v3272_v31  ;;  %v3273_v43 = vadd.f32 %v4244_v35, %v3197_v7  ;;  %v3871_v14 = vadd.f32 %v3870_v47, %v3869_v38  ;;  %v3983_v15 = vadd.f32 %v3982_v42, %v3981_v46  ;;  %v3872_v37 = vpop.f32.mrb[230].mxu0  ;;  %v3984_v6 = vpop.f32.mrb[230].mxu1  ;;  %v4249_v42 = vld [vmem:[%s4633_s13 + $0xb0] sm:$0xff] }
 0x3b3   : > { %v3873_v16 = vpop.f32.mrb[231].mxu0  ;;  %v3985_v1 = vpop.f32.mrb[231].mxu1 }
 0x3b4   : > { %3305 = vst [vmem:[%s5507_s30 + $0x88] sm:$0xff] %v3273_v43  ;;  %v3041_v54 = vadd.f32 %v3871_v14, %v5474_v17  ;;  %v3874_v33 = vadd.f32 %v3873_v16, %v3872_v37  ;;  %v3986_v45 = vadd.f32 %v3985_v1, %v3984_v6  ;;  %v4250_v16 = vld [vmem:[%s4633_s13 + $0xb8] sm:$0xff] }
 0x3b6   : > { %v3202_v48 = vadd.f32 %v3983_v15, %v3041_v54  ;;  %v3044_v61 = vadd.f32 %v3874_v33, %v5476_v13 }
 0x3b8   : > { %v3274_v11 = vadd.f32 %v4245_v63, %v3202_v48  ;;  %v3205_v9 = vadd.f32 %v3986_v45, %v3044_v61  ;;  %v3875_v60 = vpop.f32.mrb[232].mxu0  ;;  %v3987_v28 = vpop.f32.mrb[232].mxu1 }
 0x3b9   : > { %v3876_v22 = vpop.f32.mrb[233].mxu0  ;;  %v3988_v55 = vpop.f32.mrb[233].mxu1 }
 0x3ba   : > { %3306 = vst [vmem:[%s5507_s30 + $0x90] sm:$0xff] %v3274_v11  ;;  %v3275_v29 = vadd.f32 %v4246_v50, %v3205_v9  ;;  %v3877_v44 = vadd.f32 %v3876_v22, %v3875_v60  ;;  %v3989_v41 = vadd.f32 %v3988_v55, %v3987_v28  ;;  %v3878_v17 = vpop.f32.mrb[234].mxu0  ;;  %v3990_v21 = vpop.f32.mrb[234].mxu1  ;;  %v4251_v28 = vld [vmem:[%s4633_s13 + $0xc0] sm:$0xff] }
 0x3bb   : > { %v3879_v39 = vpop.f32.mrb[235].mxu0  ;;  %v3991_v13 = vpop.f32.mrb[235].mxu1 }
 0x3bc   : > { %3307 = vst [vmem:[%s5507_s30 + $0x98] sm:$0xff] %v3275_v29  ;;  %v3049_v8 = vadd.f32 %v3877_v44, %v5478_v59  ;;  %v3880_v23 = vadd.f32 %v3879_v39, %v3878_v17  ;;  %v3992_v40 = vadd.f32 %v3991_v13, %v3990_v21  ;;  %v4252_v17 = vld [vmem:[%s4633_s13 + $0xc8] sm:$0xff] }
 0x3be   : > { %v3210_v26 = vadd.f32 %v3989_v41, %v3049_v8  ;;  %v3052_v3 = vadd.f32 %v3880_v23, %v5480_v24 }
 0x3c0   : > { %v3276_v36 = vadd.f32 %v4247_v20, %v3210_v26  ;;  %v3213_v0 = vadd.f32 %v3992_v40, %v3052_v3  ;;  %v3881_v34 = vpop.f32.mrb[236].mxu0  ;;  %v3993_v5 = vpop.f32.mrb[236].mxu1 }
 0x3c1   : > { %v3882_v32 = vpop.f32.mrb[237].mxu0  ;;  %v3994_v2 = vpop.f32.mrb[237].mxu1 }
 0x3c2   : > { %3308 = vst [vmem:[%s5507_s30 + $0xa0] sm:$0xff] %v3276_v36  ;;  %v3277_v62 = vadd.f32 %v4248_v30, %v3213_v0  ;;  %v3883_v53 = vadd.f32 %v3882_v32, %v3881_v34  ;;  %v3995_v4 = vadd.f32 %v3994_v2, %v3993_v5  ;;  %v3884_v59 = vpop.f32.mrb[238].mxu0  ;;  %v3996_v19 = vpop.f32.mrb[238].mxu1  ;;  %v4253_v0 = vld [vmem:[%s4633_s13 + $0xd0] sm:$0xff] }
 0x3c3   : > { %v3885_v56 = vpop.f32.mrb[239].mxu0  ;;  %v3997_v24 = vpop.f32.mrb[239].mxu1 }
 0x3c4   : > { %3309 = vst [vmem:[%s5507_s30 + $0xa8] sm:$0xff] %v3277_v62  ;;  %v3057_v31 = vadd.f32 %v3883_v53, %v5482_v57  ;;  %v3886_v7 = vadd.f32 %v3885_v56, %v3884_v59  ;;  %v3998_v38 = vadd.f32 %v3997_v24, %v3996_v19  ;;  %v4254_v53 = vld [vmem:[%s4633_s13 + $0xd8] sm:$0xff] }
 0x3c6   : > { %v3218_v46 = vadd.f32 %v3995_v4, %v3057_v31  ;;  %v3060_v47 = vadd.f32 %v3886_v7, %v5484_v58 }
 0x3c8   : > { %v3278_v35 = vadd.f32 %v4249_v42, %v3218_v46  ;;  %v3221_v43 = vadd.f32 %v3998_v38, %v3060_v47  ;;  %v3887_v14 = vpop.f32.mrb[240].mxu0  ;;  %v3999_v15 = vpop.f32.mrb[240].mxu1  ;;  %v4255_v42 = vld [vmem:[%s4633_s13 + $0xe0] sm:$0xff] }
 0x3c9   : > { %v3888_v37 = vpop.f32.mrb[241].mxu0  ;;  %v4000_v6 = vpop.f32.mrb[241].mxu1 }
 0x3ca   : > { %3310 = vst [vmem:[%s5507_s30 + $0xb0] sm:$0xff] %v3278_v35  ;;  %v3279_v1 = vadd.f32 %v4250_v16, %v3221_v43  ;;  %v3889_v54 = vadd.f32 %v3888_v37, %v3887_v14  ;;  %v4001_v33 = vadd.f32 %v4000_v6, %v3999_v15  ;;  %v3890_v57 = vpop.f32.mrb[242].mxu0  ;;  %v4002_v45 = vpop.f32.mrb[242].mxu1  ;;  %v4256_v16 = vld [vmem:[%s4633_s13 + $0xe8] sm:$0xff] }
 0x3cb   : > { %v3891_v48 = vpop.f32.mrb[243].mxu0  ;;  %v4003_v58 = vpop.f32.mrb[243].mxu1 }
 0x3cc   : > { %3311 = vst [vmem:[%s5507_s30 + $0xb8] sm:$0xff] %v3279_v1  ;;  %v3065_v61 = vadd.f32 %v3889_v54, %v5486_v18  ;;  %v3892_v63 = vadd.f32 %v3891_v48, %v3890_v57  ;;  %v4004_v11 = vadd.f32 %v4003_v58, %v4002_v45 }
 0x3ce   : > { %v3226_v9 = vadd.f32 %v4001_v33, %v3065_v61  ;;  %v3068_v60 = vadd.f32 %v3892_v63, %v5488_v52 }
 0x3d0   : > { %v3280_v22 = vadd.f32 %v4251_v28, %v3226_v9  ;;  %v3229_v55 = vadd.f32 %v4004_v11, %v3068_v60  ;;  %v3893_v50 = vpop.f32.mrb[244].mxu0  ;;  %v4005_v29 = vpop.f32.mrb[244].mxu1  ;;  %v4257_v9 = vld [vmem:[%s4633_s13 + $0xf0] sm:$0xff] }
 0x3d1   : > { %v3894_v44 = vpop.f32.mrb[245].mxu0  ;;  %v4006_v41 = vpop.f32.mrb[245].mxu1 }
 0x3d2   : > { %3312 = vst [vmem:[%s5507_s30 + $0xc0] sm:$0xff] %v3280_v22  ;;  %v3281_v21 = vadd.f32 %v4252_v17, %v3229_v55  ;;  %v3895_v39 = vadd.f32 %v3894_v44, %v3893_v50  ;;  %v4007_v13 = vadd.f32 %v4006_v41, %v4005_v29  ;;  %v3896_v18 = vpop.f32.mrb[246].mxu0  ;;  %v4008_v8 = vpop.f32.mrb[246].mxu1 }
 0x3d3   : > { %v3897_v23 = vpop.f32.mrb[247].mxu0  ;;  %v4009_v52 = vpop.f32.mrb[247].mxu1 }
 0x3d4   : > { %3313 = vst [vmem:[%s5507_s30 + $0xc8] sm:$0xff] %v3281_v21  ;;  %v3073_v40 = vadd.f32 %v3895_v39, %v5490_v25  ;;  %v3898_v26 = vadd.f32 %v3897_v23, %v3896_v18  ;;  %v4010_v3 = vadd.f32 %v4009_v52, %v4008_v8 }
 0x3d6   : > { %v3234_v20 = vadd.f32 %v4007_v13, %v3073_v40  ;;  %v3076_v36 = vadd.f32 %v3898_v26, %v5492_v27 }
 0x3d8   : > { %v3282_v34 = vadd.f32 %v4253_v0, %v3234_v20  ;;  %v3237_v5 = vadd.f32 %v4010_v3, %v3076_v36  ;;  %v3899_v32 = vpop.f32.mrb[248].mxu0  ;;  %v4011_v2 = vpop.f32.mrb[248].mxu1 }
 0x3d9   : > { %v3900_v30 = vpop.f32.mrb[249].mxu0  ;;  %v4012_v62 = vpop.f32.mrb[249].mxu1 }
 0x3da   : > { %3314 = vst [vmem:[%s5507_s30 + $0xd0] sm:$0xff] %v3282_v34  ;;  %v3283_v4 = vadd.f32 %v4254_v53, %v3237_v5  ;;  %v3901_v59 = vadd.f32 %v3900_v30, %v3899_v32  ;;  %v4013_v19 = vadd.f32 %v4012_v62, %v4011_v2  ;;  %v3902_v25 = vpop.f32.mrb[250].mxu0  ;;  %v4014_v56 = vpop.f32.mrb[250].mxu1 }
 0x3db   : > { %v3903_v24 = vpop.f32.mrb[251].mxu0  ;;  %v4015_v27 = vpop.f32.mrb[251].mxu1 }
 0x3dc   : > { %3315 = vst [vmem:[%s5507_s30 + $0xd8] sm:$0xff] %v3283_v4  ;;  %v3081_v31 = vadd.f32 %v3901_v59, %v5494_v12  ;;  %v3904_v7 = vadd.f32 %v3903_v24, %v3902_v25  ;;  %v4016_v38 = vadd.f32 %v4015_v27, %v4014_v56 }
 0x3de   : > { %v3242_v46 = vadd.f32 %v4013_v19, %v3081_v31  ;;  %v3084_v47 = vadd.f32 %v3904_v7, %v5496_v49 }
 0x3e0   : > { %v3284_v35 = vadd.f32 %v4255_v42, %v3242_v46  ;;  %v3245_v43 = vadd.f32 %v4016_v38, %v3084_v47  ;;  %v3905_v14 = vpop.f32.mrb[252].mxu0  ;;  %v4017_v15 = vpop.f32.mrb[252].mxu1 }
 0x3e1   : > { %v3906_v37 = vpop.f32.mrb[253].mxu0  ;;  %v4018_v6 = vpop.f32.mrb[253].mxu1 }
 0x3e2   : > { %3316 = vst [vmem:[%s5507_s30 + $0xe0] sm:$0xff] %v3284_v35  ;;  %v3285_v1 = vadd.f32 %v4256_v16, %v3245_v43  ;;  %v3907_v12 = vadd.f32 %v3906_v37, %v3905_v14  ;;  %v4019_v54 = vadd.f32 %v4018_v6, %v4017_v15  ;;  %v3908_v33 = vpop.f32.mrb[254].mxu0  ;;  %v4020_v57 = vpop.f32.mrb[254].mxu1 }
 0x3e3   : > { %v3909_v49 = vpop.f32.mrb[255].mxu0  ;;  %v4021_v45 = vpop.f32.mrb[255].mxu1 }
 0x3e4   : > { %3317 = vst [vmem:[%s5507_s30 + $0xe8] sm:$0xff] %v3285_v1  ;;  %v3089_v48 = vadd.f32 %v3907_v12, %v5498_v10  ;;  %v3910_v58 = vadd.f32 %v3909_v49, %v3908_v33  ;;  %v4022_v61 = vadd.f32 %v4021_v45, %v4020_v57  ;;  %v4258_v10 = vld [vmem:[%s4633_s13 + $0xf8] sm:$0xff] }
 0x3e6   : > { %v3250_v63 = vadd.f32 %v4019_v54, %v3089_v48  ;;  %v3092_v11 = vadd.f32 %v3910_v58, %v5500_v51 }
 0x3e8   : > { %v3286_v60 = vadd.f32 %v4257_v9, %v3250_v63  ;;  %v3253_v28 = vadd.f32 %v4022_v61, %v3092_v11 }
 0x3ea   : > { %3318 = vst [vmem:[%s5507_s30 + $0xf0] sm:$0xff] %v3286_v60  ;;  %v3287_v22 = vadd.f32 %v4258_v10, %v3253_v28 }
 0x3ec   : > { %3319 = vst [vmem:[%s5507_s30 + $0xf8] sm:$0xff] %v3287_v22 }
 0x3ed   : > { %4358 = shalt.err (!%p4355_p2)
}
 0x3ee   : > { %s4359_s8 = scalar_lea.hbm %s5604_s26, 4096  ;;  %s4363_s13 = scalar_lea.hbm %s5657_s4, 8192 }
 0x3ef   : > { %p4360_p13 = scmp.ne.s32.totalorder %s5604_s26, %s4359_s8  ;;  %p4364_p4 = scmp.lt.u32.totalorder %s5604_s26, %s5657_s4 }
 0x3f0   : > { %p4365_p7 = scmp.lt.u32.totalorder %s4363_s13, %s4359_s8  ;;  %p4367_p11 = scmp.lt.u32.totalorder %s4359_s8, %s5604_s26 }
 0x3f1   : > { %p4361_p6 = pnand %p4360_p13, %p5671_p0 }
 0x3f2   : > { %p4366_p8 = por %p4365_p7, %p4364_p4 }
 0x3f3   : > { %p4362_p10 = pneg %p4361_p6 }
 0x3f4   : > { %p4368_p1 = por %p4367_p11, %p4366_p8 }
 0x3f6   : > { %p4369_p3 = pnand %p4368_p1, %p4362_p10 }
 0x3f8   : > { %4372 = shalt.err (!%p4369_p3)
}
 0x3f9   : > { %s4428_s30 = smov 128   ;;  %s4429_s6 = smov 8  }
 0x3fa   : > { %4033 = dma.vmem_to_hbm [thread:$0]  (%p5671_p0), %s5606_s25, 4096, %s5604_s26, %s3321_s28, %s4428_s30, %s4428_s30, %s4429_s6  }
 0x3fb PF: > { %s3349_s7 = sand.u32 1, %s4403_s15   ;;  %p5672_p5 = scmp.ne.s32.totalorder %s5662_s22, 0 }
 0x3fc   : > { %p5673_p9 = scmp.ge.s32.totalorder %s4415_s18, 2  ;;  %s3350_s24 = scalar_lea.sflag [#allocation4], %s3349_s7 }
 0x3fe   : > { %p4047_p12 = pnand %p5673_p9, %p5672_p5 }
 0x400   : > { %4398 = dma.done.wait (!%p4047_p12), %s3350_s24, 4096  }
 0x401   : > { %4400 = vsyncadd (!%p4047_p12), %s3350_s24, 4294963200  ;;  %p18_p2 = scmp.ge.s32.totalorder %s4565_s11, 4   ;;  %s5674_s15 = smov %s4407_s16 }
 0x402   : > { %s5675_s16 = smov %s4411_s17  ;;  %s5676_s17 = smov %s4574_s14 }
 0x403   : > { %s5677_s18 = smov %s4565_s11  ;;  %20 = sbr.rel (!%p18_p2) target bundleno = 6 (0x6), region = 89 }
 0x40a   :  { %3355 = vsyncpa [#allocation3], 1 }
 0x40b   :  { %3357 = vsyncpa [#allocation3 + $0x1], 1 }
 0x40c   :  { %3358 = vsyncpa [#allocation6], 1 }
 0x40d   :  { %3359 = vsyncpa [#allocation4], 1 }
 0x40e   :  { %3361 = vsyncpa [#allocation4 + $0x1], 1 }

</bundles_post_ra>
